<compile_context>
chip_gen: v5e
topology: v5e:2x2
jax: 0.10.0
libtpu: 0.0.40
codegen_flags: <defaults>
</compile_context>

<pallas_src>
import functools

import numpy as np
import jax
import jax.numpy as jnp
from jax import lax
from jax.experimental import pallas as pl
from jax.experimental.pallas import tpu as pltpu

# e3nn FullyConnectedNet wraps relu with normalize2mom; for relu the constant
# is 1/sqrt(E[relu(N(0,1))^2]) = sqrt(2).  (Folded into the reordered W2.)
RELU_MOM = float(np.sqrt(2.0))


# ---------------------------------------------------------------------------
# Fused kernel: all layers of the RelaxedE3NN forward in one invocation.
# refs = (es, ea, src, dst, x0, [w1e, mer, ex, w2r] * L, out)
# ---------------------------------------------------------------------------
def _fused_relaxed_e3nn_kernel(*refs, num_layers):
    es_ref, ea_ref, src_ref, dst_ref, x_ref = refs[:5]
    w_refs = refs[5:5 + 4 * num_layers]
    out_ref = refs[5 + 4 * num_layers]

    e_pad = es_ref.shape[0]
    n_nodes = out_ref.shape[0]
    fed = es_ref.shape[1]        # fc_edge_dim (1)
    edge_dim = ea_ref.shape[1]   # irreps_edge dim (1)

    es = es_ref[...]                                           # (E, fed)
    ea = ea_ref[...]                                           # (E, edge_dim)

    # One-hot gather / scatter matrices, built once and reused by both layers.
    node_iota = lax.broadcasted_iota(jnp.int32, (e_pad, n_nodes), 1)
    src_oh = (node_iota == src_ref[...]).astype(jnp.float32)   # (E, N)
    dst_oh = (node_iota == dst_ref[...]).astype(jnp.float32)   # (E, N); padded rows (dst=-1) all zero

    x = x_ref[...]                                             # (N, c_in_padded)
    for l in range(num_layers):
        w1e = w_refs[4 * l + 0][...]   # (fed, K)   fc layer-1 weights expanded to TP layout
        mer = w_refs[4 * l + 1][...]   # (edge_dim, K)  relaxed_edge_tp folded + expanded
        ex = w_refs[4 * l + 2][...]    # (cx, K)    0/1 channel-expansion matrix
        w2r = w_refs[4 * l + 3][...]   # (K, c_out) reordered fc layer-2 weights (constants folded)

        # --- FC hidden layer, already expanded to the TP lane layout ---------
        # H_exp[e, m] = relu(es @ w1 / sqrt(fed))[e, j(m)]     (VPU broadcast-mul)
        pre = es[:, 0:1] * w1e[0:1, :]
        for d in range(1, fed):
            pre = pre + es[:, d:d + 1] * w1e[d:d + 1, :]
        h_exp = jnp.maximum(pre, 0.0)                          # (E, K)

        # --- relaxed_edge_tp(relaxed_weights, edge_attr), expanded -----------
        # R_exp[e, m] = (alpha_rel * edge_attr @ m_mat)[e, v(m)]
        r_exp = ea[:, 0:1] * mer[0:1, :]
        for d in range(1, edge_dim):
            r_exp = r_exp + ea[:, d:d + 1] * mer[d:d + 1, :]   # (E, K)

        hr = h_exp * r_exp                                     # edge-only factor (E, K)

        # --- gather (one-hot matmul) then channel-expansion on the MXU --------
        # Gather first: (E,N)@(N,cx) is cheaper than expanding at node level
        # and contracting over N in the wide matmul.
        x_src = jnp.dot(src_oh, x, preferred_element_type=jnp.float32)   # (E, cx)
        x_exp = jnp.dot(x_src, ex, preferred_element_type=jnp.float32)   # (E, K)

        # --- weighted FullyConnectedTensorProduct as ONE K-deep MXU matmul ----
        z = hr * x_exp                                         # (E, K)
        edge_feat = jnp.dot(z, w2r, preferred_element_type=jnp.float32)  # (E, c_out)

        # --- scatter-add over edge_dst (one-hot matmul, contraction over E) ---
        # inv_sqrt(num_neighbors) is already folded into w2r.
        x = lax.dot_general(dst_oh, edge_feat, (((0,), (0,)), ((), ())),
                            preferred_element_type=jnp.float32)          # (N, c_out)

    out_ref[...] = x


# ---------------------------------------------------------------------------
# One-time (init-time) parameter preprocessing: fold constants + reorder.
# ---------------------------------------------------------------------------
def preprocess_params(layer_params, c_in0, num_neighbors):
    prep = []
    cin = c_in0
    for li, p in enumerate(layer_params):
        w1 = np.asarray(p["w1"], np.float32)                 # (fc_edge_dim, fc_h)
        w2 = np.asarray(p["w2"], np.float32)                 # (fc_h, cin*c_rel*c_out)
        wr = np.asarray(p["wr"], np.float32)                 # (c_rel, edge_dim, c_rel)
        rw = np.asarray(p["relaxed_weights"], np.float32)    # (c_rel,)
        fed, fc_h = w1.shape
        c_rel = rw.shape[0]
        edge_dim = wr.shape[1]
        c_out = w2.shape[1] // (cin * c_rel)
        k_tot = cin * c_rel * fc_h

        m = np.arange(k_tot)
        j_of = m % fc_h                 # fastest axis: fc hidden unit
        k_of = m // fc_h
        u_of = k_of // c_rel            # input channel
        v_of = k_of % c_rel             # relaxed/inter channel

        # fc layer 1 (fold 1/sqrt(fan_in)); expanded to the TP lane layout.
        w1e = (w1 / np.sqrt(fed))[:, j_of]                                    # (fed, K)

        # relaxed_edge_tp with shared weights (all-0e): r = alpha_rel * ea @ m_mat
        alpha_rel = 1.0 / np.sqrt(c_rel * edge_dim)
        m_mat = alpha_rel * np.einsum("uvw,u->vw", wr, rw)                    # (edge_dim, c_rel)
        mer = m_mat[:, v_of]                                                  # (edge_dim, K)

        # 0/1 channel-expansion matrix (rows padded to >=8 for the first layer
        # so every in-kernel contraction dim is sublane-friendly).
        rows = ((cin + 7) // 8) * 8 if li == 0 else cin
        ex = np.zeros((rows, k_tot), np.float32)
        ex[u_of, m] = 1.0

        # fc layer 2 reordered to (K, c_out) with every scalar constant folded:
        # normalize2mom(relu) sqrt(2), 1/sqrt(fc_h), TP path norm, 1/sqrt(num_neighbors).
        scale = (RELU_MOM / np.sqrt(fc_h)) * (1.0 / np.sqrt(cin * c_rel)) \
            * (1.0 / np.sqrt(num_neighbors))
        w2r = w2.reshape(fc_h, cin * c_rel, c_out).transpose(1, 0, 2) \
                .reshape(k_tot, c_out) * scale

        prep.append(dict(w1e=jnp.asarray(w1e), mer=jnp.asarray(mer),
                         ex=jnp.asarray(ex), w2r=jnp.asarray(w2r)))
        cin = c_out
    return prep


# ---------------------------------------------------------------------------
# Forward wrapper: pads edges, builds the single fused pallas_call.
# ---------------------------------------------------------------------------
def relaxed_e3nn_forward(x, edge_src, edge_dst, edge_attr, edge_scalars, prep):
    n_nodes = x.shape[0]
    c_out_final = prep[-1]["w2r"].shape[1]
    e = int(edge_src.shape[0])
    if e == 0:                                   # empty graph: nothing to scatter
        return jnp.zeros((n_nodes, c_out_final), jnp.float32)

    e_pad = ((e + 7) // 8) * 8
    pad = e_pad - e

    es = edge_scalars.astype(jnp.float32).reshape(e, -1)
    ea = edge_attr.astype(jnp.float32).reshape(e, -1)
    src = edge_src.astype(jnp.int32).reshape(e, 1)
    dst = edge_dst.astype(jnp.int32).reshape(e, 1)
    if pad:
        es = jnp.pad(es, ((0, pad), (0, 0)))
        ea = jnp.pad(ea, ((0, pad), (0, 0)))
        src = jnp.pad(src, ((0, pad), (0, 0)))                       # padded src -> node 0 (harmless)
        dst = jnp.pad(dst, ((0, pad), (0, 0)), constant_values=-1)   # padded dst -> masked out

    # Channel-pad node features for the first layer's expansion matrix.
    cp0 = prep[0]["ex"].shape[0]
    xp = x.astype(jnp.float32)
    if xp.shape[1] < cp0:
        xp = jnp.pad(xp, ((0, 0), (0, cp0 - xp.shape[1])))

    num_layers = len(prep)
    inputs = [es, ea, src, dst, xp]
    for p in prep:
        inputs += [p["w1e"], p["mer"], p["ex"], p["w2r"]]

    kernel = functools.partial(_fused_relaxed_e3nn_kernel, num_layers=num_layers)

    # Everything is small: full-array blocks, single grid step.
    # TODO(synk): if N/E grow, tile edges / nodes, re-derive VMEM for v7x's
    #             64 MiB, and split edges across the two v7x TensorCores.
    in_specs = [pl.BlockSpec(a.shape, lambda i: (0, 0)) for a in inputs]

    out = pl.pallas_call(
        kernel,
        out_shape=jax.ShapeDtypeStruct((n_nodes, c_out_final), jnp.float32),
        grid_spec=pltpu.PrefetchScalarGridSpec(
            num_scalar_prefetch=0,
            grid=(1,),
            in_specs=in_specs,
            out_specs=pl.BlockSpec((n_nodes, c_out_final), lambda i: (0, 0)),
        ),
        compiler_params=pltpu.CompilerParams(
            dimension_semantics=("arbitrary",)),
    )(*inputs)
    return out


# ---------------------------------------------------------------------------
# Pure-JAX reference (same math, original parameterization) for correctness.
# ---------------------------------------------------------------------------
def reference_convolution(x, edge_src, edge_dst, edge_attr, edge_scalars,
                          params, num_neighbors):
    n, c_in = x.shape
    c_rel = params["relaxed_weights"].shape[0]
    fed, fc_h = params["w1"].shape
    c_out = params["w2"].shape[1] // (c_in * c_rel)
    h = jnp.maximum(edge_scalars @ params["w1"] / np.sqrt(fed), 0.0) * RELU_MOM
    tpw = (h @ params["w2"]) / np.sqrt(fc_h)                     # (E, WN)
    alpha_rel = 1.0 / np.sqrt(c_rel * edge_attr.shape[1])
    r = alpha_rel * jnp.einsum("ev,uvw,u->ew", edge_attr, params["wr"],
                               params["relaxed_weights"])        # (E, c_rel)
    x_src = x[edge_src]
    tpw4 = tpw.reshape(-1, c_in, c_rel, c_out)
    alpha_tp = 1.0 / np.sqrt(c_in * c_rel)
    ef = alpha_tp * jnp.einsum("euvw,eu,ev->ew", tpw4, x_src, r)
    node = jnp.zeros((n, c_out), jnp.float32).at[edge_dst].add(ef)
    return node / np.sqrt(num_neighbors)


if __name__ == "__main__":
    # ---- sizes (small, consistent with the module) --------------------------
    N = 16                 # nodes
    C_IN, C_OUT = 4, 8     # "4x0e" -> "8x0e"
    C_REL = 4              # irreps_relaxed = irreps_inter = "4x0e"
    FC_H = 16              # fc_neurons
    EDGE_DIM = 1           # irreps_edge = "1x0e" (l=0 spherical harmonics == 1)
    MAX_RADIUS = 1.8
    NUM_LAYERS = 2
    NUM_NEIGHBORS = N - 1

    key = jax.random.PRNGKey(0)
    kx, kpos, kp0, kp1 = jax.random.split(key, 4)
    x = jax.random.normal(kx, (N, C_IN), jnp.float32)
    pos = jax.random.uniform(kpos, (N, 3), jnp.float32)   # unit cube: all pairs < 1.8

    # ---- radius_graph (host-side glue; complete directed graph here) --------
    # TODO(synk): torch_cluster.radius_graph has no Pallas equivalent; built on host.
    pos_np = np.asarray(pos)
    dist = np.linalg.norm(pos_np[None, :, :] - pos_np[:, None, :], axis=-1)
    mask = (dist < MAX_RADIUS) & ~np.eye(N, dtype=bool)
    src_np, dst_np = np.nonzero(mask)
    edge_src = jnp.asarray(src_np, jnp.int32)
    edge_dst = jnp.asarray(dst_np, jnp.int32)
    E = int(edge_src.shape[0])
    assert E == N * (N - 1)          # 240 edges

    edge_vec = pos[edge_dst] - pos[edge_src]
    # l=0 spherical harmonics, normalization='component' -> constant 1.0
    edge_attr = jnp.ones((E, EDGE_DIM), jnp.float32)
    edge_scalars = jnp.linalg.norm(edge_vec, axis=1, keepdims=True)  # (E, 1)

    # ---- deterministic parameter init (shapes from module __init__) ---------
    layer_cfgs = [(C_IN, C_OUT), (C_OUT, C_OUT)]   # num_layers = 2
    layer_keys = [kp0, kp1]
    params = []
    for (ci, co), k in zip(layer_cfgs, layer_keys):
        k1, k2, k3 = jax.random.split(k, 3)
        params.append({
            "w1": jax.random.normal(k1, (EDGE_DIM, FC_H), jnp.float32),          # fc layer 1
            "w2": jax.random.normal(k2, (FC_H, ci * C_REL * co), jnp.float32),   # fc layer 2 (weight_numel)
            "wr": jax.random.normal(k3, (C_REL, EDGE_DIM, C_REL), jnp.float32),  # relaxed_edge_tp weights
            "relaxed_weights": jnp.ones((C_REL,), jnp.float32),                  # ones for 0e irreps
        })

    # ---- one-time weight folding + single fused forward ----------------------
    prep = preprocess_params(params, C_IN, NUM_NEIGHBORS)
    fwd = jax.jit(relaxed_e3nn_forward)
    out = fwd(x, edge_src, edge_dst, edge_attr, edge_scalars, prep)
    out = jax.block_until_ready(out)

    # ---- reference: sequential RelaxedConvolution layers ---------------------
    h_ref = x
    for p in params:
        h_ref = reference_convolution(h_ref, edge_src, edge_dst, edge_attr,
                                      edge_scalars, p, NUM_NEIGHBORS)

    np.testing.assert_allclose(np.asarray(out), np.asarray(h_ref),
                               rtol=1e-2, atol=1e-2)
    print("KERNEL_OK")
</pallas_src>

<mosaic_0001>
module attributes {stable_mosaic.version = 11 : i64} {
  func.func @_fused_relaxed_e3nn_kernel(%arg0: i32, %arg1: memref<240x1xf32, #tpu.memory_space<vmem>>, %arg2: memref<240x1xf32, #tpu.memory_space<vmem>>, %arg3: memref<240x1xi32, #tpu.memory_space<vmem>>, %arg4: memref<240x1xi32, #tpu.memory_space<vmem>>, %arg5: memref<16x8xf32, #tpu.memory_space<vmem>>, %arg6: memref<1x256xf32, #tpu.memory_space<vmem>>, %arg7: memref<1x256xf32, #tpu.memory_space<vmem>>, %arg8: memref<8x256xf32, #tpu.memory_space<vmem>>, %arg9: memref<256x8xf32, #tpu.memory_space<vmem>>, %arg10: memref<1x512xf32, #tpu.memory_space<vmem>>, %arg11: memref<1x512xf32, #tpu.memory_space<vmem>>, %arg12: memref<8x512xf32, #tpu.memory_space<vmem>>, %arg13: memref<512x8xf32, #tpu.memory_space<vmem>>, %arg14: memref<16x8xf32, #tpu.memory_space<vmem>>) attributes {dimension_semantics = [#tpu.dimension_semantics<arbitrary>], iteration_bounds = array<i64: 1>, scalar_prefetch = 0 : i64, scratch_operands = 0 : i64, tpu.core_type = #tpu.core_type<tc>, window_params = [{pipeline_mode = #tpu.pipeline_mode<synchronous>, transform_indices = @transform_0, window_bounds = array<i64: 240, 1>}, {pipeline_mode = #tpu.pipeline_mode<synchronous>, transform_indices = @transform_1, window_bounds = array<i64: 240, 1>}, {pipeline_mode = #tpu.pipeline_mode<synchronous>, transform_indices = @transform_2, window_bounds = array<i64: 240, 1>}, {pipeline_mode = #tpu.pipeline_mode<synchronous>, transform_indices = @transform_3, window_bounds = array<i64: 240, 1>}, {pipeline_mode = #tpu.pipeline_mode<synchronous>, transform_indices = @transform_4, window_bounds = array<i64: 16, 8>}, {pipeline_mode = #tpu.pipeline_mode<synchronous>, transform_indices = @transform_5, window_bounds = array<i64: 1, 256>}, {pipeline_mode = #tpu.pipeline_mode<synchronous>, transform_indices = @transform_6, window_bounds = array<i64: 1, 256>}, {pipeline_mode = #tpu.pipeline_mode<synchronous>, transform_indices = @transform_7, window_bounds = array<i64: 8, 256>}, {pipeline_mode = #tpu.pipeline_mode<synchronous>, transform_indices = @transform_8, window_bounds = array<i64: 256, 8>}, {pipeline_mode = #tpu.pipeline_mode<synchronous>, transform_indices = @transform_9, window_bounds = array<i64: 1, 512>}, {pipeline_mode = #tpu.pipeline_mode<synchronous>, transform_indices = @transform_10, window_bounds = array<i64: 1, 512>}, {pipeline_mode = #tpu.pipeline_mode<synchronous>, transform_indices = @transform_11, window_bounds = array<i64: 8, 512>}, {pipeline_mode = #tpu.pipeline_mode<synchronous>, transform_indices = @transform_12, window_bounds = array<i64: 512, 8>}, {pipeline_mode = #tpu.pipeline_mode<synchronous>, transform_indices = @transform_13, window_bounds = array<i64: 16, 8>}]} {
    %c0 = arith.constant 0 : index
    %c0_0 = arith.constant 0 : index
    %0 = vector.load %arg1[%c0, %c0_0] : memref<240x1xf32, #tpu.memory_space<vmem>>, vector<240x1xf32>
    %c0_1 = arith.constant 0 : index
    %c0_2 = arith.constant 0 : index
    %1 = vector.load %arg2[%c0_1, %c0_2] : memref<240x1xf32, #tpu.memory_space<vmem>>, vector<240x1xf32>
    %2 = tpu.iota {dimensions = array<i32: 1>} : vector<240x16xi32>
    %c0_3 = arith.constant 0 : index
    %c0_4 = arith.constant 0 : index
    %3 = vector.load %arg3[%c0_3, %c0_4] : memref<240x1xi32, #tpu.memory_space<vmem>>, vector<240x1xi32>
    %4 = vector.broadcast %3 : vector<240x1xi32> to vector<240x16xi32>
    %5 = arith.cmpi eq, %2, %4 : vector<240x16xi32>
    %6 = arith.extui %5 : vector<240x16xi1> to vector<240x16xi32>
    %7 = arith.sitofp %6 : vector<240x16xi32> to vector<240x16xf32>
    %c0_5 = arith.constant 0 : index
    %c0_6 = arith.constant 0 : index
    %8 = vector.load %arg4[%c0_5, %c0_6] : memref<240x1xi32, #tpu.memory_space<vmem>>, vector<240x1xi32>
    %9 = vector.broadcast %8 : vector<240x1xi32> to vector<240x16xi32>
    %10 = arith.cmpi eq, %2, %9 : vector<240x16xi32>
    %11 = arith.extui %10 : vector<240x16xi1> to vector<240x16xi32>
    %12 = arith.sitofp %11 : vector<240x16xi32> to vector<240x16xf32>
    %c0_7 = arith.constant 0 : index
    %c0_8 = arith.constant 0 : index
    %13 = vector.load %arg5[%c0_7, %c0_8] : memref<16x8xf32, #tpu.memory_space<vmem>>, vector<16x8xf32>
    %c0_9 = arith.constant 0 : index
    %c0_10 = arith.constant 0 : index
    %14 = vector.load %arg6[%c0_9, %c0_10] : memref<1x256xf32, #tpu.memory_space<vmem>>, vector<1x256xf32>
    %c0_11 = arith.constant 0 : index
    %c0_12 = arith.constant 0 : index
    %15 = vector.load %arg7[%c0_11, %c0_12] : memref<1x256xf32, #tpu.memory_space<vmem>>, vector<1x256xf32>
    %c0_13 = arith.constant 0 : index
    %c0_14 = arith.constant 0 : index
    %16 = vector.load %arg8[%c0_13, %c0_14] : memref<8x256xf32, #tpu.memory_space<vmem>>, vector<8x256xf32>
    %c0_15 = arith.constant 0 : index
    %c0_16 = arith.constant 0 : index
    %17 = vector.load %arg9[%c0_15, %c0_16] : memref<256x8xf32, #tpu.memory_space<vmem>>, vector<256x8xf32>
    %18 = vector.broadcast %0 : vector<240x1xf32> to vector<240x256xf32>
    %19 = vector.broadcast %14 : vector<1x256xf32> to vector<240x256xf32>
    %20 = arith.mulf %18, %19 : vector<240x256xf32>
    %cst = arith.constant 0.000000e+00 : f32
    %21 = vector.broadcast %cst : f32 to vector<240x256xf32>
    %22 = arith.maximumf %20, %21 : vector<240x256xf32>
    %23 = vector.broadcast %1 : vector<240x1xf32> to vector<240x256xf32>
    %24 = vector.broadcast %15 : vector<1x256xf32> to vector<240x256xf32>
    %25 = arith.mulf %23, %24 : vector<240x256xf32>
    %26 = arith.mulf %22, %25 : vector<240x256xf32>
    %cst_17 = arith.constant dense<0.000000e+00> : vector<240x8xf32>
    %27 = tpu.matmul %7, %13, %cst_17 {dimension_numbers = #tpu.dot_dimension_numbers<[1], [0], [0], [1], [0, 0, 1, 1], [], []>} : vector<240x16xf32>, vector<16x8xf32>, vector<240x8xf32> -> vector<240x8xf32>
    %cst_18 = arith.constant dense<0.000000e+00> : vector<240x256xf32>
    %28 = tpu.matmul %27, %16, %cst_18 {dimension_numbers = #tpu.dot_dimension_numbers<[1], [0], [0], [1], [0, 0, 1, 1], [], []>} : vector<240x8xf32>, vector<8x256xf32>, vector<240x256xf32> -> vector<240x256xf32>
    %29 = arith.mulf %26, %28 : vector<240x256xf32>
    %cst_19 = arith.constant dense<0.000000e+00> : vector<240x8xf32>
    %30 = tpu.matmul %29, %17, %cst_19 {dimension_numbers = #tpu.dot_dimension_numbers<[1], [0], [0], [1], [0, 0, 1, 1], [], []>} : vector<240x256xf32>, vector<256x8xf32>, vector<240x8xf32> -> vector<240x8xf32>
    %cst_20 = arith.constant dense<0.000000e+00> : vector<16x8xf32>
    %31 = tpu.matmul %12, %30, %cst_20 {dimension_numbers = #tpu.dot_dimension_numbers<[0], [0], [1], [1], [0, 1, 1, 1], [], []>} : vector<240x16xf32>, vector<240x8xf32>, vector<16x8xf32> -> vector<16x8xf32>
    %c0_21 = arith.constant 0 : index
    %c0_22 = arith.constant 0 : index
    %32 = vector.load %arg10[%c0_21, %c0_22] : memref<1x512xf32, #tpu.memory_space<vmem>>, vector<1x512xf32>
    %c0_23 = arith.constant 0 : index
    %c0_24 = arith.constant 0 : index
    %33 = vector.load %arg11[%c0_23, %c0_24] : memref<1x512xf32, #tpu.memory_space<vmem>>, vector<1x512xf32>
    %c0_25 = arith.constant 0 : index
    %c0_26 = arith.constant 0 : index
    %34 = vector.load %arg12[%c0_25, %c0_26] : memref<8x512xf32, #tpu.memory_space<vmem>>, vector<8x512xf32>
    %c0_27 = arith.constant 0 : index
    %c0_28 = arith.constant 0 : index
    %35 = vector.load %arg13[%c0_27, %c0_28] : memref<512x8xf32, #tpu.memory_space<vmem>>, vector<512x8xf32>
    %36 = vector.broadcast %0 : vector<240x1xf32> to vector<240x512xf32>
    %37 = vector.broadcast %32 : vector<1x512xf32> to vector<240x512xf32>
    %38 = arith.mulf %36, %37 : vector<240x512xf32>
    %cst_29 = arith.constant 0.000000e+00 : f32
    %39 = vector.broadcast %cst_29 : f32 to vector<240x512xf32>
    %40 = arith.maximumf %38, %39 : vector<240x512xf32>
    %41 = vector.broadcast %1 : vector<240x1xf32> to vector<240x512xf32>
    %42 = vector.broadcast %33 : vector<1x512xf32> to vector<240x512xf32>
    %43 = arith.mulf %41, %42 : vector<240x512xf32>
    %44 = arith.mulf %40, %43 : vector<240x512xf32>
    %cst_30 = arith.constant dense<0.000000e+00> : vector<240x8xf32>
    %45 = tpu.matmul %7, %31, %cst_30 {dimension_numbers = #tpu.dot_dimension_numbers<[1], [0], [0], [1], [0, 0, 1, 1], [], []>} : vector<240x16xf32>, vector<16x8xf32>, vector<240x8xf32> -> vector<240x8xf32>
    %cst_31 = arith.constant dense<0.000000e+00> : vector<240x512xf32>
    %46 = tpu.matmul %45, %34, %cst_31 {dimension_numbers = #tpu.dot_dimension_numbers<[1], [0], [0], [1], [0, 0, 1, 1], [], []>} : vector<240x8xf32>, vector<8x512xf32>, vector<240x512xf32> -> vector<240x512xf32>
    %47 = arith.mulf %44, %46 : vector<240x512xf32>
    %cst_32 = arith.constant dense<0.000000e+00> : vector<240x8xf32>
    %48 = tpu.matmul %47, %35, %cst_32 {dimension_numbers = #tpu.dot_dimension_numbers<[1], [0], [0], [1], [0, 0, 1, 1], [], []>} : vector<240x512xf32>, vector<512x8xf32>, vector<240x8xf32> -> vector<240x8xf32>
    %cst_33 = arith.constant dense<0.000000e+00> : vector<16x8xf32>
    %49 = tpu.matmul %12, %48, %cst_33 {dimension_numbers = #tpu.dot_dimension_numbers<[0], [0], [1], [1], [0, 1, 1, 1], [], []>} : vector<240x16xf32>, vector<240x8xf32>, vector<16x8xf32> -> vector<16x8xf32>
    %c0_34 = arith.constant 0 : index
    %c0_35 = arith.constant 0 : index
    %50 = vector.load %arg14[%c0_34, %c0_35] : memref<16x8xf32, #tpu.memory_space<vmem>>, vector<16x8xf32>
    tpu.vector_store %arg14[%c0_34, %c0_35], %49 {strides = array<i32>} : memref<16x8xf32, #tpu.memory_space<vmem>>, vector<16x8xf32>,
    return
  }
  func.func @transform_0(%arg0: i32) -> (i32, i32) {
    %c0_i32 = arith.constant 0 : i32
    %c0_i32_0 = arith.constant 0 : i32
    %c0_i32_1 = arith.constant 0 : i32
    return %c0_i32, %c0_i32_0 : i32, i32
  }
  func.func @transform_1(%arg0: i32) -> (i32, i32) {
    %c0_i32 = arith.constant 0 : i32
    %c0_i32_0 = arith.constant 0 : i32
    %c0_i32_1 = arith.constant 0 : i32
    return %c0_i32, %c0_i32_0 : i32, i32
  }
  func.func @transform_2(%arg0: i32) -> (i32, i32) {
    %c0_i32 = arith.constant 0 : i32
    %c0_i32_0 = arith.constant 0 : i32
    %c0_i32_1 = arith.constant 0 : i32
    return %c0_i32, %c0_i32_0 : i32, i32
  }
  func.func @transform_3(%arg0: i32) -> (i32, i32) {
    %c0_i32 = arith.constant 0 : i32
    %c0_i32_0 = arith.constant 0 : i32
    %c0_i32_1 = arith.constant 0 : i32
    return %c0_i32, %c0_i32_0 : i32, i32
  }
  func.func @transform_4(%arg0: i32) -> (i32, i32) {
    %c0_i32 = arith.constant 0 : i32
    %c0_i32_0 = arith.constant 0 : i32
    %c0_i32_1 = arith.constant 0 : i32
    return %c0_i32, %c0_i32_0 : i32, i32
  }
  func.func @transform_5(%arg0: i32) -> (i32, i32) {
    %c0_i32 = arith.constant 0 : i32
    %c0_i32_0 = arith.constant 0 : i32
    %c0_i32_1 = arith.constant 0 : i32
    return %c0_i32, %c0_i32_0 : i32, i32
  }
  func.func @transform_6(%arg0: i32) -> (i32, i32) {
    %c0_i32 = arith.constant 0 : i32
    %c0_i32_0 = arith.constant 0 : i32
    %c0_i32_1 = arith.constant 0 : i32
    return %c0_i32, %c0_i32_0 : i32, i32
  }
  func.func @transform_7(%arg0: i32) -> (i32, i32) {
    %c0_i32 = arith.constant 0 : i32
    %c0_i32_0 = arith.constant 0 : i32
    %c0_i32_1 = arith.constant 0 : i32
    return %c0_i32, %c0_i32_0 : i32, i32
  }
  func.func @transform_8(%arg0: i32) -> (i32, i32) {
    %c0_i32 = arith.constant 0 : i32
    %c0_i32_0 = arith.constant 0 : i32
    %c0_i32_1 = arith.constant 0 : i32
    return %c0_i32, %c0_i32_0 : i32, i32
  }
  func.func @transform_9(%arg0: i32) -> (i32, i32) {
    %c0_i32 = arith.constant 0 : i32
    %c0_i32_0 = arith.constant 0 : i32
    %c0_i32_1 = arith.constant 0 : i32
    return %c0_i32, %c0_i32_0 : i32, i32
  }
  func.func @transform_10(%arg0: i32) -> (i32, i32) {
    %c0_i32 = arith.constant 0 : i32
    %c0_i32_0 = arith.constant 0 : i32
    %c0_i32_1 = arith.constant 0 : i32
    return %c0_i32, %c0_i32_0 : i32, i32
  }
  func.func @transform_11(%arg0: i32) -> (i32, i32) {
    %c0_i32 = arith.constant 0 : i32
    %c0_i32_0 = arith.constant 0 : i32
    %c0_i32_1 = arith.constant 0 : i32
    return %c0_i32, %c0_i32_0 : i32, i32
  }
  func.func @transform_12(%arg0: i32) -> (i32, i32) {
    %c0_i32 = arith.constant 0 : i32
    %c0_i32_0 = arith.constant 0 : i32
    %c0_i32_1 = arith.constant 0 : i32
    return %c0_i32, %c0_i32_0 : i32, i32
  }
  func.func @transform_13(%arg0: i32) -> (i32, i32) {
    %c0_i32 = arith.constant 0 : i32
    %c0_i32_0 = arith.constant 0 : i32
    %c0_i32_1 = arith.constant 0 : i32
    return %c0_i32, %c0_i32_0 : i32, i32
  }
}

</mosaic_0001>

<bundles_post_ra>
// kernel: relaxed_e3nn_forward.1
= control target key start
LH: loop header
LB: loop body
LE: loop exit
PB: predicated region body
PF: predicated region fallthrough
CT: control target
= control target key end

     0   :  { %v4189_v0 = vmov 0   ;;  %v104_v48 = vlaneseq  ;;  %vm1114_vm0 = vcmask 130048   ;;  %v7773_v56 = vmov 0.0   ;;  %s7759_s2 = inlined_call_operand.vmem [shape: s32[240,1], index: 2, kind: input, shape index: {}]   ;;  %s7760_s0 = inlined_call_operand.vmem [shape: f32[240,1], index: 0, kind: input, shape index: {}]   ;;  %s7761_s1 = inlined_call_operand.vmem [shape: f32[240,1], index: 1, kind: input, shape index: {}]   ;;  %s7762_s4 = inlined_call_operand.vmem [shape: f32[16,8], index: 4, kind: input, shape index: {}]   ;;  %s7763_s5 = inlined_call_operand.vmem [shape: f32[1,256], index: 5, kind: input, shape index: {}]   ;;  %s7764_s9 = inlined_call_operand.vmem [shape: f32[1,512], index: 9, kind: input, shape index: {}]   ;;  %s7765_s6 = inlined_call_operand.vmem [shape: f32[1,256], index: 6, kind: input, shape index: {}]   ;;  %s7766_s10 = inlined_call_operand.vmem [shape: f32[1,512], index: 10, kind: input, shape index: {}]   ;;  %s7767_s7 = inlined_call_operand.vmem [shape: f32[8,256], index: 7, kind: input, shape index: {}]   ;;  %s7768_s3 = inlined_call_operand.vmem [shape: s32[240,1], index: 3, kind: input, shape index: {}]   ;;  %s7769_s8 = inlined_call_operand.vmem [shape: f32[256,8], index: 8, kind: input, shape index: {}]   ;;  %s7770_s11 = inlined_call_operand.vmem [shape: f32[8,512], index: 11, kind: input, shape index: {}]   ;;  %s7771_s12 = inlined_call_operand.vmem [shape: f32[512,8], index: 12, kind: input, shape index: {}]   ;;  %s7772_s13 = inlined_call_operand.vmem [shape: f32[16,8], index: 13, kind: output, shape index: {}]  }
   0x1   :  { %4188 = vset.pattern.permute.xlu2 %v4189_v0  ;;  %4187 = vset.pattern.permute.xlu1 %v4189_v0  ;;  %v110_v1 = vld [vmem:[%s7759_s2 + $0x20] sm:$0xff]  ;;  %v108_v2 = vld [vmem:[%s7759_s2 + $0x10] sm:$0xff]  ;;  %v111_v4 = vld [vmem:[%s7759_s2 + $0x28] sm:$0xff] }
   0x2   :  { %v106_v3 = vld [vmem:[%s7759_s2] sm:$0xff]  ;;  %4186 = vset.pattern.permute.xlu0 %v4189_v0  ;;  %149 = vperm.xlu2 %4188, %v110_v1   ;;  %v109_v5 = vld [vmem:[%s7759_s2 + $0x18] sm:$0xff]  ;;  %v107_v6 = vld [vmem:[%s7759_s2 + $0x8] sm:$0xff]  ;;  %v4411_v52 = vand.u32 127, %v104_v48 }
   0x3   :  { %143 = vperm.xlu1 %4187, %v108_v2   ;;  %137 = vperm.xlu0 %4186, %v106_v3   ;;  %v114_v7 = vld [vmem:[%s7759_s2 + $0x40] sm:$0xff]  ;;  %v113_v8 = vld [vmem:[%s7759_s2 + $0x38] sm:$0xff]  ;;  %v112_v9 = vld [vmem:[%s7759_s2 + $0x30] sm:$0xff] }
   0x4   :  { %v117_v10 = vld [vmem:[%s7759_s2 + $0x58] sm:$0xff]  ;;  %v116_v11 = vld [vmem:[%s7759_s2 + $0x50] sm:$0xff]  ;;  %v115_v12 = vld [vmem:[%s7759_s2 + $0x48] sm:$0xff] }
   0x5   :  { %v120_v13 = vld [vmem:[%s7759_s2 + $0x70] sm:$0xff]  ;;  %v119_v14 = vld [vmem:[%s7759_s2 + $0x68] sm:$0xff]  ;;  %v118_v15 = vld [vmem:[%s7759_s2 + $0x60] sm:$0xff] }
   0x6   :  { %v123_v16 = vld [vmem:[%s7759_s2 + $0x88] sm:$0xff]  ;;  %v122_v17 = vld [vmem:[%s7759_s2 + $0x80] sm:$0xff]  ;;  %v121_v18 = vld [vmem:[%s7759_s2 + $0x78] sm:$0xff] }
   0x7   :  { %v126_v19 = vld [vmem:[%s7759_s2 + $0xa0] sm:$0xff]  ;;  %v125_v20 = vld [vmem:[%s7759_s2 + $0x98] sm:$0xff]  ;;  %v124_v21 = vld [vmem:[%s7759_s2 + $0x90] sm:$0xff] }
   0x8   :  { %v129_v22 = vld [vmem:[%s7759_s2 + $0xb8] sm:$0xff]  ;;  %v128_v23 = vld [vmem:[%s7759_s2 + $0xb0] sm:$0xff]  ;;  %v127_v24 = vld [vmem:[%s7759_s2 + $0xa8] sm:$0xff] }
   0x9   :  { %v132_v25 = vld [vmem:[%s7759_s2 + $0xd0] sm:$0xff]  ;;  %v131_v26 = vld [vmem:[%s7759_s2 + $0xc8] sm:$0xff]  ;;  %v130_v27 = vld [vmem:[%s7759_s2 + $0xc0] sm:$0xff] }
   0xa   :  { %152 = vperm.xlu2 %4188, %v111_v4   ;;  %v135_v28 = vld [vmem:[%s7759_s2 + $0xe8] sm:$0xff]  ;;  %v134_v29 = vld [vmem:[%s7759_s2 + $0xe0] sm:$0xff]  ;;  %v133_v30 = vld [vmem:[%s7759_s2 + $0xd8] sm:$0xff] }
   0xb   :  { %146 = vperm.xlu1 %4187, %v109_v5   ;;  %140 = vperm.xlu0 %4186, %v107_v6   ;;  %v45_v31 = vld [vmem:[%s7760_s0 + $0x8] sm:$0xff]  ;;  %v74_v32 = vld [vmem:[%s7761_s1] sm:$0xff]  ;;  %v76_v36 = vld [vmem:[%s7761_s1 + $0x10] sm:$0xff] }
   0xc   :  { %v44_v33 = vld [vmem:[%s7760_s0] sm:$0xff]  ;;  %v527_v34 = vld [vmem:[%s7762_s4 + $0x8] sm:$0xff]  ;;  %v46_v37 = vld [vmem:[%s7760_s0 + $0x10] sm:$0xff] }
   0xd   :  { %1219 = vmatpush.msra.mxu0 %v527_v34  ;;  %v526_v35 = vld [vmem:[%s7762_s4] sm:$0xff]  ;;  %v75_v38 = vld [vmem:[%s7761_s1 + $0x8] sm:$0xff]  ;;  %v77_v41 = vld [vmem:[%s7761_s1 + $0x18] sm:$0xff] }
   0xe   :  { %v48_v40 = vld [vmem:[%s7760_s0 + $0x20] sm:$0xff]  ;;  %v47_v42 = vld [vmem:[%s7760_s0 + $0x18] sm:$0xff]  ;;  %v79_v44 = vld [vmem:[%s7761_s1 + $0x28] sm:$0xff] }
   0xf   :  { %1220 = vmatpush.msra.mxu0 %v526_v35  ;;  %v49_v45 = vld [vmem:[%s7760_s0 + $0x28] sm:$0xff]  ;;  %v78_v46 = vld [vmem:[%s7761_s1 + $0x20] sm:$0xff]  ;;  %v51_v49 = vld [vmem:[%s7760_s0 + $0x38] sm:$0xff] }
  0x10   :  { %v80_v50 = vld [vmem:[%s7761_s1 + $0x30] sm:$0xff]  ;;  %v82_v58 = vld [vmem:[%s7761_s1 + $0x40] sm:$0xff]  ;;  %v81_v60 = vld [vmem:[%s7761_s1 + $0x38] sm:$0xff] }
  0x11   :  { %v50_v51 = vld [vmem:[%s7760_s0 + $0x30] sm:$0xff]  ;;  %v52_v59 = vld [vmem:[%s7760_s0 + $0x40] sm:$0xff]  ;;  %v83_v2 = vld [vmem:[%s7761_s1 + $0x48] sm:$0xff] }
  0x12   :  { %161 = vperm.xlu2 %4188, %v114_v7   ;;  %v54_v1 = vld [vmem:[%s7760_s0 + $0x50] sm:$0xff]  ;;  %v53_v3 = vld [vmem:[%s7760_s0 + $0x48] sm:$0xff] }
  0x13   :  { %158 = vperm.xlu1 %4187, %v113_v8   ;;  %155 = vperm.xlu0 %4186, %v112_v9   ;;  %v85_v8 = vld [vmem:[%s7761_s1 + $0x58] sm:$0xff] }
  0x14   :  { %v55_v9 = vld [vmem:[%s7760_s0 + $0x58] sm:$0xff] }
  0x1a   :  { %170 = vperm.xlu2 %4188, %v117_v10   ;;  %v84_v10 = vld [vmem:[%s7761_s1 + $0x50] sm:$0xff] }
  0x1b   :  { %167 = vperm.xlu1 %4187, %v116_v11   ;;  %164 = vperm.xlu0 %4186, %v115_v12  }
  0x22   :  { %179 = vperm.xlu2 %4188, %v120_v13  }
  0x23   :  { %176 = vperm.xlu1 %4187, %v119_v14   ;;  %173 = vperm.xlu0 %4186, %v118_v15   ;;  %v57_v15 = vld [vmem:[%s7760_s0 + $0x68] sm:$0xff] }
  0x2a   :  { %188 = vperm.xlu2 %4188, %v123_v16   ;;  %v86_v16 = vld [vmem:[%s7761_s1 + $0x60] sm:$0xff] }
  0x2b   :  { %185 = vperm.xlu1 %4187, %v122_v17   ;;  %182 = vperm.xlu0 %4186, %v121_v18   ;;  %v56_v17 = vld [vmem:[%s7760_s0 + $0x60] sm:$0xff] }
  0x32   :  { %197 = vperm.xlu2 %4188, %v126_v19  }
  0x33   :  { %194 = vperm.xlu1 %4187, %v125_v20   ;;  %191 = vperm.xlu0 %4186, %v124_v21  }
  0x3a   :  { %206 = vperm.xlu2 %4188, %v129_v22   ;;  %v88_v22 = vld [vmem:[%s7761_s1 + $0x70] sm:$0xff] }
  0x3b   :  { %203 = vperm.xlu1 %4187, %v128_v23   ;;  %200 = vperm.xlu0 %4186, %v127_v24   ;;  %v58_v23 = vld [vmem:[%s7760_s0 + $0x70] sm:$0xff]  ;;  %v87_v24 = vld [vmem:[%s7761_s1 + $0x68] sm:$0xff] }
  0x42   :  { %215 = vperm.xlu2 %4188, %v132_v25  }
  0x43   :  { %212 = vperm.xlu1 %4187, %v131_v26   ;;  %209 = vperm.xlu0 %4186, %v130_v27  }
  0x4a   :  { %224 = vperm.xlu2 %4188, %v135_v28  }
  0x4b   :  { %221 = vperm.xlu1 %4187, %v134_v29   ;;  %218 = vperm.xlu0 %4186, %v133_v30   ;;  %v60_v29 = vld [vmem:[%s7760_s0 + $0x80] sm:$0xff]  ;;  %v89_v30 = vld [vmem:[%s7761_s1 + $0x78] sm:$0xff] }
  0x52   :  { %571 = vperm.xlu2 %4188, %v45_v31   ;;  %v59_v31 = vld [vmem:[%s7760_s0 + $0x78] sm:$0xff] }
  0x53   :  { %841 = vperm.xlu1 %4187, %v74_v32   ;;  %566 = vperm.xlu0 %4186, %v44_v33  }
  0x5a   :  { %851 = vperm.xlu2 %4188, %v76_v36   ;;  %v91_v36 = vld [vmem:[%s7761_s1 + $0x88] sm:$0xff] }
  0x5b   :  { %576 = vperm.xlu1 %4187, %v46_v37   ;;  %846 = vperm.xlu0 %4186, %v75_v38   ;;  %v61_v37 = vld [vmem:[%s7760_s0 + $0x88] sm:$0xff]  ;;  %v90_v38 = vld [vmem:[%s7761_s1 + $0x80] sm:$0xff] }
  0x5c   :  { %v4378_v39 = vpop.permute.xlu2 %149 }
  0x5d   :  { %vm230_vm5 = vcmp.eq.s32.totalorder %v4411_v52, %v4378_v39 }
  0x5e   :  { %v4490_v19 = vsel %vm230_vm5, 1.0, %v7773_v56 }
  0x5f   :  { %7843 = vst [vmem:[#allocation6_spill] sm:$0xff] %v4490_v19 }
  0x62   :  { %586 = vperm.xlu2 %4188, %v48_v40  }
  0x63   :  { %856 = vperm.xlu1 %4187, %v77_v41   ;;  %581 = vperm.xlu0 %4186, %v47_v42  }
  0x64   :  { %v4389_v43 = vpop.permute.xlu2 %152 }
  0x65   :  { %vm231_vm6 = vcmp.eq.s32.totalorder %v4411_v52, %v4389_v43  ;;  %v63_v43 = vld [vmem:[%s7760_s0 + $0x98] sm:$0xff] }
  0x66   :  { %v4516_v28 = vsel %vm231_vm6, 1.0, %v7773_v56 }
  0x67   :  { %7844 = vst [vmem:[#allocation7_spill] sm:$0xff] %v4516_v28 }
  0x6a   :  { %866 = vperm.xlu2 %4188, %v79_v44   ;;  %v92_v44 = vld [vmem:[%s7761_s1 + $0x90] sm:$0xff] }
  0x6b   :  { %591 = vperm.xlu1 %4187, %v49_v45   ;;  %861 = vperm.xlu0 %4186, %v78_v46   ;;  %v62_v45 = vld [vmem:[%s7760_s0 + $0x90] sm:$0xff] }
  0x6c   :  { %v4400_v47 = vpop.permute.xlu2 %161 }
  0x6d   :  { %vm234_vm9 = vcmp.eq.s32.totalorder %v4411_v52, %v4400_v47  ;;  %v64_v47 = vld [vmem:[%s7760_s0 + $0xa0] sm:$0xff] }
  0x72   :  { %601 = vperm.xlu2 %4188, %v51_v49  }
  0x73   :  { %871 = vperm.xlu1 %4187, %v80_v50   ;;  %596 = vperm.xlu0 %4186, %v50_v51   ;;  %v4580_v50 = vsel %vm234_vm9, 1.0, %v7773_v56  ;;  %v94_v51 = vld [vmem:[%s7761_s1 + $0xa0] sm:$0xff] }
  0x74   :  { %v4413_v53 = vpop.permute.xlu2 %170  ;;  %7848 = vst [vmem:[#allocation11_spill] sm:$0xff] %v4580_v50 }
  0x75   :  { %v144_v54 = vpop.permute.xlu1 %143  ;;  %v138_v55 = vpop.permute.xlu0 %137  ;;  %vm237_vm11 = vcmp.eq.s32.totalorder %v4411_v52, %v4413_v53 }
  0x76   :  { %vm226_vm1 = vcmp.eq.s32.totalorder %v4411_v52, %v138_v55  ;;  %vm228_vm3 = vcmp.eq.s32.totalorder %v4411_v52, %v144_v54  ;;  %v93_v54 = vld [vmem:[%s7761_s1 + $0x98] sm:$0xff] }
  0x77   :  { %v4417_v57 = vsel %vm226_vm1, 1.0, %v7773_v56  ;;  %v4451_v5 = vsel %vm228_vm3, 1.0, %v7773_v56 }
  0x78   :  { %7839 = vst [vmem:[#allocation2_spill] sm:$0xff] %v4417_v57  ;;  %3861 = vmatmul.msk.f32.vlgmr.msra.gmra.mxu0 %vm1114_vm0, %v4417_v57 }
  0x79   :  { %7841 = vst [vmem:[#allocation4_spill] sm:$0xff] %v4451_v5 }
  0x7a   :  { %881 = vperm.xlu2 %4188, %v82_v58  }
  0x7b   :  { %606 = vperm.xlu1 %4187, %v52_v59   ;;  %876 = vperm.xlu0 %4186, %v81_v60   ;;  %v528_v60 = vld [vmem:[%s7763_s5] sm:$0x3] }
  0x7c   :  { %v4430_v61 = vpop.permute.xlu2 %179  ;;  %v4630_v53 = vperm.slane %v528_v60, 1 }
  0x7d   :  { %v147_v62 = vpop.permute.xlu1 %146  ;;  %v141_v63 = vpop.permute.xlu0 %140  ;;  %vm240_vm15 = vcmp.eq.s32.totalorder %v4411_v52, %v4430_v61  ;;  %v103_v61 = vld [vmem:[%s7761_s1 + $0xe8] sm:$0xff] }
  0x7e   :  { %vm227_vm2 = vcmp.eq.s32.totalorder %v4411_v52, %v141_v63  ;;  %vm229_vm4 = vcmp.eq.s32.totalorder %v4411_v52, %v147_v62  ;;  %v66_v63 = vld [vmem:[%s7760_s0 + $0xb0] sm:$0xff] }
  0x7f   :  { %v4434_v0 = vsel %vm227_vm2, 1.0, %v7773_v56  ;;  %v4472_v14 = vsel %vm229_vm4, 1.0, %v7773_v56  ;;  %vm1312_vm2 = vcmask 64512  }
  0x80   :  { %7840 = vst [vmem:[#allocation3_spill] sm:$0xff] %v4434_v0  ;;  %3862 = vmatmul.msk.f32.gmra.mxu0 %vm1114_vm0, %v4434_v0 }
  0x81   :  { %7842 = vst [vmem:[#allocation5_spill] sm:$0xff] %v4472_v14 }
  0x82   :  { %616 = vperm.xlu2 %4188, %v54_v1   ;;  %v2008_v1 = vld [vmem:[%s7764_s9] sm:$0xf] }
  0x83   :  { %886 = vperm.xlu1 %4187, %v83_v2   ;;  %611 = vperm.xlu0 %4186, %v53_v3   ;;  %v95_v2 = vld [vmem:[%s7761_s1 + $0xa8] sm:$0xff] }
  0x84   :  { %v4448_v4 = vpop.permute.xlu2 %188  ;;  %v65_v3 = vld [vmem:[%s7760_s0 + $0xa8] sm:$0xff] }
  0x85   :  { %v159_v6 = vpop.permute.xlu1 %158  ;;  %v156_v7 = vpop.permute.xlu0 %155  ;;  %vm243_vm4 = vcmp.eq.s32.totalorder %v4411_v52, %v4448_v4 }
  0x86   :  { %vm232_vm7 = vcmp.eq.s32.totalorder %v4411_v52, %v156_v7  ;;  %vm233_vm8 = vcmp.eq.s32.totalorder %v4411_v52, %v159_v6  ;;  %v529_v6 = vld [vmem:[%s7765_s6] sm:$0x3]  ;;  %v4628_v7 = vperm.slane %v528_v60, 0 }
  0x87   :  { %v4537_v35 = vsel %vm232_vm7, 1.0, %v7773_v56  ;;  %v4558_v42 = vsel %vm233_vm8, 1.0, %v7773_v56 }
  0x88   :  { %3863 = vmatmul.msk.f32.gmra.mxu0 %vm1114_vm0, %v4451_v5  ;;  %7846 = vst [vmem:[#allocation9_spill] sm:$0xff] %v4537_v35 }
  0x89   :  { %7847 = vst [vmem:[#allocation10_spill] sm:$0xff] %v4558_v42 }
  0x8a   :  { %896 = vperm.xlu2 %4188, %v85_v8   ;;  %v2009_v8 = vld [vmem:[%s7766_s10] sm:$0xf] }
  0x8b   :  { %621 = vperm.xlu1 %4187, %v55_v9   ;;  %891 = vperm.xlu0 %4186, %v84_v10   ;;  %v4635_v9 = vperm.slane %v2008_v1, 0  ;;  %v4637_v10 = vperm.slane %v2008_v1, 2  ;;  %v4705_v0 = vperm.slane %v2009_v8, 3 }
  0x8c   :  { %v4465_v11 = vpop.permute.xlu2 %197 }
  0x8d   :  { %v4467_v12 = vpop.permute.xlu1 %167  ;;  %v4469_v13 = vpop.permute.xlu0 %164  ;;  %vm246_vm7 = vcmp.eq.s32.totalorder %v4411_v52, %v4465_v11 }
  0x8e   :  { %vm235_vm10 = vcmp.eq.s32.totalorder %v4411_v52, %v4469_v13  ;;  %vm236_vm12 = vcmp.eq.s32.totalorder %v4411_v52, %v4467_v12  ;;  %v4640_v12 = vsel %vm237_vm11, 1.0, %v7773_v56 }
  0x8f   :  { %v4605_v62 = vsel %vm235_vm10, 1.0, %v7773_v56  ;;  %7851 = vst [vmem:[#allocation14_spill] sm:$0xff] %v4640_v12  ;;  %v4643_v13 = vsel %vm236_vm12, 1.0, %v7773_v56 }
  0x90   :  { %3864 = vmatmul.msk.f32.gmra.mxu0 %vm1114_vm0, %v4472_v14  ;;  %7850 = vst [vmem:[#allocation13_spill] sm:$0xff] %v4605_v62 }
  0x91   :  { %7852 = vst [vmem:[#allocation15_spill] sm:$0xff] %v4643_v13 }
  0x92   :  { %631 = vperm.xlu2 %4188, %v57_v15   ;;  %v4645_v15 = vperm.slane %v2008_v1, 1 }
  0x93   :  { %901 = vperm.xlu1 %4187, %v86_v16   ;;  %626 = vperm.xlu0 %4186, %v56_v17   ;;  %v4649_v17 = vperm.slane %v529_v6, 0 }
  0x94   :  { %v4487_v18 = vpop.permute.xlu2 %206 }
  0x95   :  { %v4492_v20 = vpop.permute.xlu1 %176  ;;  %v4494_v21 = vpop.permute.xlu0 %173  ;;  %vm249_vm10 = vcmp.eq.s32.totalorder %v4411_v52, %v4487_v18 }
  0x96   :  { %vm238_vm13 = vcmp.eq.s32.totalorder %v4411_v52, %v4494_v21  ;;  %vm239_vm14 = vcmp.eq.s32.totalorder %v4411_v52, %v4492_v20 }
  0x98   :  { %3865 = vmatmul.msk.f32.gmra.mxu0 %vm1114_vm0, %v4490_v19 }
  0x9a   :  { %911 = vperm.xlu2 %4188, %v88_v22   ;;  %v4651_v22 = vperm.slane %v529_v6, 1 }
  0x9b   :  { %636 = vperm.xlu1 %4187, %v58_v23   ;;  %906 = vperm.xlu0 %4186, %v87_v24   ;;  %v4653_v23 = vperm.slane %v2009_v8, 0  ;;  %v4655_v24 = vperm.slane %v2009_v8, 2 }
  0x9c   :  { %v4509_v25 = vpop.permute.xlu2 %215 }
  0x9d   :  { %v4511_v26 = vpop.permute.xlu1 %185  ;;  %v4513_v27 = vpop.permute.xlu0 %182 }
  0x9e   :  { %vm241_vm1 = vcmp.eq.s32.totalorder %v4411_v52, %v4513_v27  ;;  %v329_v27 = vld [vmem:[%s7768_s3 + $0x68] sm:$0xff]  ;;  %vm242_vm3 = vcmp.eq.s32.totalorder %v4411_v52, %v4511_v26  ;;  %v332_v26 = vld [vmem:[%s7768_s3 + $0x80] sm:$0xff] }
  0xa0   :  { %3866 = vmatmul.msk.f32.gmra.mxu0 %vm1114_vm0, %v4516_v28 }
  0xa2   :  { %646 = vperm.xlu2 %4188, %v60_v29  }
  0xa3   :  { %916 = vperm.xlu1 %4187, %v89_v30   ;;  %641 = vperm.xlu0 %4186, %v59_v31  }
  0xa4   :  { %v4530_v32 = vpop.permute.xlu2 %224 }
  0xa5   :  { %7845 = vst [vmem:[#allocation8_spill] sm:$0xff] %v4530_v32  ;;  %v4532_v33 = vpop.permute.xlu1 %194  ;;  %v4534_v34 = vpop.permute.xlu0 %191 }
  0xa6   :  { %vm245_vm5 = vcmp.eq.s32.totalorder %v4411_v52, %v4532_v33  ;;  %vm244_vm6 = vcmp.eq.s32.totalorder %v4411_v52, %v4534_v34 }
  0xa8   :  { %3867 = vmatmul.msk.f32.gmra.mxu0 %vm1114_vm0, %v4537_v35 }
  0xaa   :  { %926 = vperm.xlu2 %4188, %v91_v36  }
  0xab   :  { %651 = vperm.xlu1 %4187, %v61_v37   ;;  %921 = vperm.xlu0 %4186, %v90_v38   ;;  %v4661_v37 = vperm.slane %v2009_v8, 1  ;;  %v4663_v38 = vperm.slane %v2008_v1, 3 }
  0xac   :  { %v4551_v39 = vpop.permute.xlu2 %571 }
  0xad   :  { %v4553_v40 = vpop.permute.xlu1 %203  ;;  %v4555_v41 = vpop.permute.xlu0 %200  ;;  %v721_v31 = vmul.f32 %v4628_v7, %v4551_v39  ;;  %v722_v36 = vmul.f32 %v4630_v53, %v4551_v39  ;;  %v4679_v1 = vmul.f32 %v4645_v15, %v4551_v39 }
  0xae   :  { %vm247_vm8 = vcmp.eq.s32.totalorder %v4411_v52, %v4555_v41  ;;  %vm248_vm9 = vcmp.eq.s32.totalorder %v4411_v52, %v4553_v40 }
  0xaf   :  { %v2212_v8 = vmax.f32 %v4679_v1, 0.0 }
  0xb0   :  { %3868 = vmatmul.msk.f32.gmra.mxu0 %vm1114_vm0, %v4558_v42 }
  0xb2   :  { %661 = vperm.xlu2 %4188, %v63_v43  }
  0xb3   :  { %931 = vperm.xlu1 %4187, %v92_v44   ;;  %656 = vperm.xlu0 %4186, %v62_v45   ;;  %v2091_v45 = vmul.f32 %v4635_v9, %v4551_v39 }
  0xb4   :  { %v4573_v46 = vpop.permute.xlu2 %851 }
  0xb5   :  { %v4575_v48 = vpop.permute.xlu1 %212  ;;  %v4577_v49 = vpop.permute.xlu0 %209 }
  0xb6   :  { %vm250_vm11 = vcmp.eq.s32.totalorder %v4411_v52, %v4577_v49  ;;  %vm251_vm12 = vcmp.eq.s32.totalorder %v4411_v52, %v4575_v48 }
  0xb8   :  { %3869 = vmatmul.msk.f32.gmra.mxu0 %vm1114_vm0, %v4580_v50 }
  0xba   :  { %941 = vperm.xlu2 %4188, %v94_v51   ;;  %v2093_v51 = vmul.f32 %v4637_v10, %v4551_v39 }
  0xbb   :  { %666 = vperm.xlu1 %4187, %v64_v47   ;;  %936 = vperm.xlu0 %4186, %v93_v54   ;;  %v97_v47 = vld [vmem:[%s7761_s1 + $0xb8] sm:$0xff] }
  0xbc   :  { %v4595_v55 = vpop.permute.xlu2 %586 }
  0xbd   :  { %v4597_v58 = vpop.permute.xlu1 %221  ;;  %v4599_v59 = vpop.permute.xlu0 %218 }
  0xbe   :  { %7849 = vst [vmem:[#allocation12_spill] sm:$0xff] %v4597_v58 }
  0xc0   :  { %3870 = vmatmul.msk.f32.gmra.mxu0 %vm1114_vm0, %v4605_v62 }
  0xc2   :  { %676 = vperm.xlu2 %4188, %v66_v63  }
  0xc3   :  { %946 = vperm.xlu1 %4187, %v95_v2   ;;  %671 = vperm.xlu0 %4186, %v65_v3   ;;  %v67_v2 = vld [vmem:[%s7760_s0 + $0xb8] sm:$0xff]  ;;  %v96_v3 = vld [vmem:[%s7761_s1 + $0xb0] sm:$0xff] }
  0xc4   :  { %v4647_v16 = vpop.permute.xlu2 %866 }
  0xc5   :  { %7853 = vst [vmem:[#allocation16_spill] sm:$0xff] %v4647_v16  ;;  %v842_v29 = vpop.permute.xlu1 %841  ;;  %v567_v30 = vpop.permute.xlu0 %566 }
  0xc6   :  { %v719_v43 = vmul.f32 %v4628_v7, %v567_v30  ;;  %v720_v44 = vmul.f32 %v4630_v53, %v567_v30  ;;  %v994_v54 = vmul.f32 %v4649_v17, %v842_v29  ;;  %v2087_v60 = vmul.f32 %v4635_v9, %v567_v30 }
  0xc7   :  { %v2089_v63 = vmul.f32 %v4637_v10, %v567_v30  ;;  %v995_v62 = vmul.f32 %v4651_v22, %v842_v29  ;;  %v2088_v50 = vmul.f32 %v4645_v15, %v567_v30  ;;  %v2336_v35 = vmul.f32 %v4653_v23, %v842_v29 }
  0xc8   :  { %3871 = vmatmul.msk.f32.gmra.mxu0 %vm1114_vm0, %v4643_v13  ;;  %v779_v6 = vmax.f32 %v719_v43, 0.0  ;;  %v780_v56 = vmax.f32 %v720_v44, 0.0  ;;  %v2207_v42 = vmax.f32 %v2087_v60, 0.0  ;;  %v2338_v13 = vmul.f32 %v4655_v24, %v842_v29 }
  0xc9   :  { %v2209_v28 = vmax.f32 %v2089_v63, 0.0  ;;  %v2208_v43 = vmax.f32 %v2088_v50, 0.0  ;;  %v2337_v44 = vmul.f32 %v4661_v37, %v842_v29  ;;  %v2090_v63 = vmul.f32 %v4663_v38, %v567_v30 }
  0xca   :  { %956 = vperm.xlu2 %4188, %v97_v47   ;;  %v4695_v19 = vmul.f32 %v994_v54, %v779_v6  ;;  %v4697_v14 = vmul.f32 %v995_v62, %v780_v56  ;;  %v4700_v5 = vmul.f32 %v2336_v35, %v2207_v42  ;;  %v781_v47 = vmax.f32 %v721_v31, 0.0 }
  0xcb   :  { %681 = vperm.xlu1 %4187, %v67_v2   ;;  %951 = vperm.xlu0 %4186, %v96_v3   ;;  %v4702_v60 = vmul.f32 %v2338_v13, %v2209_v28  ;;  %v782_v54 = vmax.f32 %v722_v36, 0.0  ;;  %v4709_v6 = vmul.f32 %v2337_v44, %v2208_v43  ;;  %v2211_v56 = vmax.f32 %v2091_v45, 0.0  ;;  %v69_v45 = vld [vmem:[%s7760_s0 + $0xc8] sm:$0xff]  ;;  %v98_v43 = vld [vmem:[%s7761_s1 + $0xc0] sm:$0xff] }
  0xcc   :  { %7854 = vst [vmem:[#allocation17_spill] sm:$0xff] %v4695_v19  ;;  %v4707_v57 = vpop.permute.xlu2 %601  ;;  %v998_v35 = vmul.f32 %v4649_v17, %v4573_v46  ;;  %v999_v28 = vmul.f32 %v4651_v22, %v4573_v46  ;;  %v2213_v42 = vmax.f32 %v2093_v51, 0.0  ;;  %v2210_v2 = vmax.f32 %v2090_v63, 0.0  ;;  %v68_v44 = vld [vmem:[%s7760_s0 + $0xc0] sm:$0xff] }
  0xcd   :  { %7855 = vst [vmem:[#allocation18_spill] sm:$0xff] %v4697_v14  ;;  %v4711_v50 = vpop.permute.xlu1 %576  ;;  %v4713_v62 = vpop.permute.xlu0 %846  ;;  %v2339_v3 = vmul.f32 %v4705_v0, %v842_v29 }
  0xce   :  { %7856 = vst [vmem:[#allocation19_spill] sm:$0xff] %v4700_v5  ;;  %v996_v13 = vmul.f32 %v4649_v17, %v4713_v62  ;;  %v997_v30 = vmul.f32 %v4651_v22, %v4713_v62  ;;  %v723_v31 = vmul.f32 %v4628_v7, %v4711_v50  ;;  %v724_v36 = vmul.f32 %v4630_v53, %v4711_v50 }
  0xcf   :  { %7857 = vst [vmem:[#allocation20_spill] sm:$0xff] %v4702_v60  ;;  %v2340_v51 = vmul.f32 %v4653_v23, %v4713_v62  ;;  %v2342_v1 = vmul.f32 %v4655_v24, %v4713_v62  ;;  %v2095_v16 = vmul.f32 %v4635_v9, %v4711_v50 }
  0xd0   :  { %7858 = vst [vmem:[#allocation21_spill] sm:$0xff] %v4707_v57  ;;  %3872 = vmatmul.msk.f32.gmra.mxu0 %vm1114_vm0, %v4640_v12  ;;  %v4744_v60 = vmul.f32 %v996_v13, %v781_v47  ;;  %v783_v5 = vmax.f32 %v723_v31, 0.0  ;;  %v784_v57 = vmax.f32 %v724_v36, 0.0  ;;  %v2341_v12 = vmul.f32 %v4661_v37, %v4713_v62 }
  0xd1   :  { %7859 = vst [vmem:[#allocation22_spill] sm:$0xff] %v4709_v6  ;;  %v4746_v6 = vmul.f32 %v997_v30, %v782_v54  ;;  %v4748_v63 = vmul.f32 %v2340_v51, %v2211_v56  ;;  %v4750_v29 = vmul.f32 %v2342_v1, %v2213_v42  ;;  %v2097_v47 = vmul.f32 %v4637_v10, %v4711_v50 }
  0xd2   :  { %7860 = vst [vmem:[#allocation23_spill] sm:$0xff] %v4744_v60  ;;  %691 = vperm.xlu2 %4188, %v69_v45   ;;  %v4756_v14 = vmul.f32 %v998_v35, %v783_v5  ;;  %v4758_v19 = vmul.f32 %v999_v28, %v784_v57  ;;  %v2096_v54 = vmul.f32 %v4645_v15, %v4711_v50  ;;  %v2215_v42 = vmax.f32 %v2095_v16, 0.0  ;;  %v530_v57 = vld [vmem:[%s7767_s7] sm:$0xff] }
  0xd3   :  { %7861 = vst [vmem:[#allocation24_spill] sm:$0xff] %v4746_v6  ;;  %961 = vperm.xlu1 %4187, %v98_v43   ;;  %686 = vperm.xlu0 %4186, %v68_v44   ;;  %v4764_v56 = vmul.f32 %v2341_v12, %v2212_v8  ;;  %v2344_v13 = vmul.f32 %v4653_v23, %v4573_v46  ;;  %v2217_v35 = vmax.f32 %v2097_v47, 0.0  ;;  %v7869_v31 = vmov 0.0   ;;  %v100_v43 = vld [vmem:[%s7761_s1 + $0xd0] sm:$0xff] }
  0xd4   :  { %7862 = vst [vmem:[#allocation25_spill] sm:$0xff] %v4748_v63  ;;  %v4770_v5 = vpop.permute.xlu2 %881  ;;  %v2216_v28 = vmax.f32 %v2096_v54, 0.0  ;;  %v4775_v30 = vmul.f32 %v2339_v3, %v2210_v2  ;;  %v4781_v12 = vsel %vm238_vm13, 1.0, %v7869_v31  ;;  %1418 = vmatpush.msra.mxu1 %v530_v57  ;;  %4105 = vmatpush.msra.mxu3 %v530_v57  ;;  %v2346_v45 = vmul.f32 %v4655_v24, %v4573_v46  ;;  %v99_v57 = vld [vmem:[%s7761_s1 + $0xc8] sm:$0xff] }
  0xd5   :  { %7863 = vst [vmem:[#allocation26_spill] sm:$0xff] %v4750_v29  ;;  %v4783_v16 = vpop.permute.xlu1 %856  ;;  %v4785_v8 = vpop.permute.xlu0 %581  ;;  %v4787_v36 = vmul.f32 %v2344_v13, %v2215_v42  ;;  %v2345_v51 = vmul.f32 %v4661_v37, %v4573_v46  ;;  %v727_v2 = vmul.f32 %v4628_v7, %v4595_v55  ;;  %v728_v3 = vmul.f32 %v4630_v53, %v4595_v55  ;;  %v70_v13 = vld [vmem:[%s7760_s0 + $0xd0] sm:$0xff] }
  0xd6   :  { %7864 = vst [vmem:[#allocation27_spill] sm:$0xff] %v4756_v14  ;;  %v725_v1 = vmul.f32 %v4628_v7, %v4785_v8  ;;  %v726_v21 = vmul.f32 %v4630_v53, %v4785_v8  ;;  %v1000_v44 = vmul.f32 %v4649_v17, %v4783_v16  ;;  %v4806_v47 = vmul.f32 %v2346_v45, %v2217_v35 }
  0xd7   :  { %7865 = vst [vmem:[#allocation28_spill] sm:$0xff] %v4758_v19  ;;  %v4808_v54 = vmul.f32 %v2345_v51, %v2216_v28  ;;  %v2099_v42 = vmul.f32 %v4635_v9, %v4785_v8  ;;  %v1001_v35 = vmul.f32 %v4651_v22, %v4783_v16  ;;  %v2101_v28 = vmul.f32 %v4637_v10, %v4785_v8 }
  0xd8   :  { %7866 = vst [vmem:[#allocation29_spill] sm:$0xff] %v4764_v56  ;;  %3873 = vmatmul.msk.f32.gmra.mxu0 %vm1114_vm0, %v4781_v12  ;;  %v786_v29 = vmax.f32 %v726_v21, 0.0  ;;  %v2348_v51 = vmul.f32 %v4653_v23, %v4783_v16  ;;  %v2350_v63 = vmul.f32 %v4655_v24, %v4783_v16  ;;  %v5048_v4 = vsel %vm243_vm4, 1.0, %v7869_v31 }
  0xd9   :  { %7867 = vst [vmem:[#allocation30_spill] sm:$0xff] %v4770_v5  ;;  %v2219_v45 = vmax.f32 %v2099_v42, 0.0  ;;  %v2221_v21 = vmax.f32 %v2101_v28, 0.0  ;;  %v2105_v5 = vmul.f32 %v4637_v10, %v4595_v55  ;;  %v5453_v18 = vsel %vm249_vm10, 1.0, %v7869_v31 }
  0xda   :  { %7868 = vst [vmem:[#allocation31_spill] sm:$0xff] %v4775_v30  ;;  %971 = vperm.xlu2 %4188, %v100_v43   ;;  %vm252_vm13 = vcmp.eq.s32.totalorder %v4411_v52, %v4509_v25 }
  0xdb   :  { %7870 = vst [vmem:[#allocation32_spill] sm:$0xff] %v4781_v12  ;;  %696 = vperm.xlu1 %4187, %v70_v13   ;;  %966 = vperm.xlu0 %4186, %v99_v57   ;;  %v4836_v42 = vmul.f32 %v2348_v51, %v2219_v45  ;;  %v2349_v12 = vmul.f32 %v4661_v37, %v4783_v16  ;;  %v788_v45 = vmax.f32 %v728_v3, 0.0  ;;  %v72_v51 = vld [vmem:[%s7760_s0 + $0xe0] sm:$0xff]  ;;  %v71_v3 = vld [vmem:[%s7760_s0 + $0xd8] sm:$0xff] }
  0xdc   :  { %7871 = vst [vmem:[#allocation33_spill] sm:$0xff] %v4787_v36  ;;  %v785_v36 = vmax.f32 %v725_v1, 0.0  ;;  %v4832_v1 = vmul.f32 %v1001_v35, %v786_v29  ;;  %v4842_v43 = vpop.permute.xlu2 %616  ;;  %v4850_v29 = vsel %vm239_vm14, 1.0, %v7869_v31  ;;  %v2104_v57 = vmul.f32 %v4645_v15, %v4595_v55 }
  0xdd   :  { %7872 = vst [vmem:[#allocation34_spill] sm:$0xff] %v4806_v47  ;;  %v2100_v47 = vmul.f32 %v4645_v15, %v4785_v8  ;;  %v4854_v13 = vpop.permute.xlu0 %861  ;;  %v2094_v35 = vmul.f32 %v4663_v38, %v4551_v39  ;;  %vm253_vm14 = vcmp.eq.s32.totalorder %v4411_v52, %v4599_v59 }
  0xde   :  { %7873 = vst [vmem:[#allocation35_spill] sm:$0xff] %v4808_v54  ;;  %v2103_v54 = vmul.f32 %v4635_v9, %v4595_v55  ;;  %v4830_v56 = vmul.f32 %v1000_v44, %v785_v36  ;;  %v4844_v36 = vmul.f32 %v2350_v63, %v2221_v21  ;;  %v4852_v44 = vpop.permute.xlu1 %591  ;;  %v787_v63 = vmax.f32 %v727_v2, 0.0  ;;  %v101_v2 = vld [vmem:[%s7761_s1 + $0xd8] sm:$0xff] }
  0xdf   :  { %7875 = vst [vmem:[#allocation37_spill] sm:$0xff] %v4832_v1  ;;  %v2220_v30 = vmax.f32 %v2100_v47, 0.0  ;;  %v1002_v28 = vmul.f32 %v4649_v17, %v4854_v13  ;;  %v1003_v20 = vmul.f32 %v4651_v22, %v4854_v13  ;;  %v2225_v21 = vmax.f32 %v2105_v5, 0.0 }
  0xe0   :  { %7874 = vst [vmem:[#allocation36_spill] sm:$0xff] %v4830_v56  ;;  %v2354_v39 = vmul.f32 %v4655_v24, %v4854_v13  ;;  %3874 = vmatmul.msk.f32.gmra.mxu0 %vm1114_vm0, %v4850_v29  ;;  %v2343_v5 = vmul.f32 %v4705_v0, %v4713_v62 }
  0xe1   :  { %7876 = vst [vmem:[#allocation38_spill] sm:$0xff] %v4836_v42  ;;  %v4856_v47 = vmul.f32 %v2349_v12, %v2220_v30  ;;  %v2223_v30 = vmax.f32 %v2103_v54, 0.0  ;;  %v2352_v12 = vmul.f32 %v4653_v23, %v4854_v13  ;;  %v4883_v54 = vmul.f32 %v1003_v20, %v788_v45  ;;  %v73_v20 = vld [vmem:[%s7760_s0 + $0xe8] sm:$0xff] }
  0xe2   :  { %7877 = vst [vmem:[#allocation39_spill] sm:$0xff] %v4842_v43  ;;  %v4889_v42 = vmul.f32 %v2354_v39, %v2225_v21  ;;  %v2353_v43 = vmul.f32 %v4661_v37, %v4854_v13  ;;  %706 = vperm.xlu2 %4188, %v72_v51   ;;  %v102_v51 = vld [vmem:[%s7761_s1 + $0xe0] sm:$0xff] }
  0xe3   :  { %7878 = vst [vmem:[#allocation40_spill] sm:$0xff] %v4844_v36  ;;  %v4881_v36 = vmul.f32 %v1002_v28, %v787_v63  ;;  %976 = vperm.xlu1 %4187, %v101_v2   ;;  %701 = vperm.xlu0 %4186, %v71_v3  }
  0xe4   :  { %7879 = vst [vmem:[#allocation41_spill] sm:$0xff] %v4850_v29  ;;  %v2224_v29 = vmax.f32 %v2104_v57, 0.0  ;;  %v4897_v63 = vpop.permute.xlu2 %896 }
  0xe5   :  { %7880 = vst [vmem:[#allocation42_spill] sm:$0xff] %v4852_v44  ;;  %v2214_v44 = vmax.f32 %v2094_v35, 0.0  ;;  %v4903_v45 = vpop.permute.xlu0 %596 }
  0xe6   :  { %7881 = vst [vmem:[#allocation43_spill] sm:$0xff] %v4856_v47  ;;  %v4887_v47 = vmul.f32 %v2352_v12, %v2223_v30  ;;  %v4893_v1 = vmul.f32 %v2353_v43, %v2224_v29  ;;  %v4901_v28 = vpop.permute.xlu1 %871  ;;  %v731_v57 = vmul.f32 %v4628_v7, %v4903_v45  ;;  %v732_v35 = vmul.f32 %v4630_v53, %v4903_v45 }
  0xe7   :  { %7882 = vst [vmem:[#allocation44_spill] sm:$0xff] %v4881_v36  ;;  %v4899_v62 = vmul.f32 %v2343_v5, %v2214_v44  ;;  %v4910_v43 = vsel %vm240_vm15, 1.0, %v7869_v31  ;;  %v1006_v29 = vmul.f32 %v4649_v17, %v4901_v28  ;;  %v2111_v44 = vmul.f32 %v4635_v9, %v4903_v45 }
  0xe8   :  { %7883 = vst [vmem:[#allocation45_spill] sm:$0xff] %v4883_v54  ;;  %3875 = vmatmul.msk.f32.gmra.mxu0 %vm1114_vm0, %v4910_v43  ;;  %v791_v30 = vmax.f32 %v731_v57, 0.0  ;;  %v792_v12 = vmax.f32 %v732_v35, 0.0  ;;  %v1007_v21 = vmul.f32 %v4651_v22, %v4901_v28  ;;  %v2113_v39 = vmul.f32 %v4637_v10, %v4903_v45 }
  0xe9   :  { %7884 = vst [vmem:[#allocation46_spill] sm:$0xff] %v4887_v47  ;;  %v2231_v2 = vmax.f32 %v2111_v44, 0.0  ;;  %v2360_v3 = vmul.f32 %v4653_v23, %v4901_v28  ;;  %v2112_v5 = vmul.f32 %v4645_v15, %v4903_v45  ;;  %v2362_v35 = vmul.f32 %v4655_v24, %v4901_v28 }
  0xea   :  { %7885 = vst [vmem:[#allocation47_spill] sm:$0xff] %v4889_v42  ;;  %986 = vperm.xlu2 %4188, %v103_v61   ;;  %v4935_v42 = vmul.f32 %v1006_v29, %v791_v30  ;;  %v2233_v57 = vmax.f32 %v2113_v39, 0.0  ;;  %v2098_v30 = vmul.f32 %v4663_v38, %v4711_v50  ;;  %v330_v50 = vld [vmem:[%s7768_s3 + $0x70] sm:$0xff]  ;;  %v331_v39 = vld [vmem:[%s7768_s3 + $0x78] sm:$0xff] }
  0xeb   :  { %7886 = vst [vmem:[#allocation48_spill] sm:$0xff] %v4893_v1  ;;  %v4937_v1 = vmul.f32 %v1007_v21, %v792_v12  ;;  %711 = vperm.xlu1 %4187, %v73_v20   ;;  %981 = vperm.xlu0 %4186, %v102_v51   ;;  %v4941_v47 = vmul.f32 %v2360_v3, %v2231_v2  ;;  %v2232_v44 = vmax.f32 %v2112_v5, 0.0  ;;  %v4960_v21 = vsel %vm241_vm1, 1.0, %v7869_v31 }
  0xec   :  { %7887 = vst [vmem:[#allocation49_spill] sm:$0xff] %v4897_v63  ;;  %v4947_v61 = vpop.permute.xlu2 %631  ;;  %v4949_v29 = vmul.f32 %v2362_v35, %v2233_v57  ;;  %v2347_v2 = vmul.f32 %v4705_v0, %v4573_v46  ;;  %v4990_v46 = vsel %vm242_vm3, 1.0, %v7869_v31 }
  0xed   :  { %7888 = vst [vmem:[#allocation50_spill] sm:$0xff] %v4899_v62  ;;  %v2361_v62 = vmul.f32 %v4661_v37, %v4901_v28  ;;  %v4955_v20 = vpop.permute.xlu0 %876 }
  0xee   :  { %7889 = vst [vmem:[#allocation51_spill] sm:$0xff] %v4910_v43  ;;  %v4953_v12 = vpop.permute.xlu1 %606 }
  0xef   :  { %7890 = vst [vmem:[#allocation52_spill] sm:$0xff] %v4935_v42  ;;  %v4957_v51 = vmul.f32 %v2361_v62, %v2232_v44  ;;  %v2218_v62 = vmax.f32 %v2098_v30, 0.0 }
  0xf0   :  { %7891 = vst [vmem:[#allocation53_spill] sm:$0xff] %v4937_v1  ;;  %3876 = vmatmul.msk.f32.gmra.mxu0 %vm1114_vm0, %v4960_v21 }
  0xf1   :  { %7892 = vst [vmem:[#allocation54_spill] sm:$0xff] %v4941_v47  ;;  %v4979_v5 = vmul.f32 %v2347_v2, %v2218_v62  ;;  %v328_v62 = vld [vmem:[%s7768_s3 + $0x60] sm:$0xff] }
  0xf2   :  { %7893 = vst [vmem:[#allocation55_spill] sm:$0xff] %v4949_v29  ;;  %386 = vperm.xlu2 %4188, %v329_v27  }
  0xf3   :  { %7894 = vst [vmem:[#allocation56_spill] sm:$0xff] %v4953_v12  ;;  %389 = vperm.xlu1 %4187, %v330_v50   ;;  %392 = vperm.xlu0 %4186, %v331_v39   ;;  %v327_v39 = vld [vmem:[%s7768_s3 + $0x58] sm:$0xff] }
  0xf4   :  { %7895 = vst [vmem:[#allocation57_spill] sm:$0xff] %v4955_v20  ;;  %v4977_v3 = vpop.permute.xlu2 %911 }
  0xf5   :  { %7896 = vst [vmem:[#allocation58_spill] sm:$0xff] %v4957_v51  ;;  %v4981_v57 = vpop.f32.mrf.mxu0  ;;  %v4985_v44 = vpop.permute.xlu0 %611  ;;  %v2395_v48 = vmul.f32 %v4705_v0, %v4977_v3 }
  0xf6   :  { %7897 = vst [vmem:[#allocation59_spill] sm:$0xff] %v4960_v21  ;;  %v4983_v35 = vpop.permute.xlu1 %886  ;;  %3891 = vmatmul.msk.f32.vlgmr.msra.gmra.mxu1 %vm1312_vm2, %v4981_v57  ;;  %v738_v30 = vmul.f32 %v4630_v53, %v4985_v44  ;;  %v737_v27 = vmul.f32 %v4628_v7, %v4985_v44  ;;  %v2123_v50 = vmul.f32 %v4635_v9, %v4985_v44 }
  0xf7   :  { %7898 = vst [vmem:[#allocation60_spill] sm:$0xff] %v4979_v5  ;;  %v1013_v2 = vmul.f32 %v4651_v22, %v4983_v35  ;;  %v1012_v29 = vmul.f32 %v4649_v17, %v4983_v35  ;;  %v2125_v51 = vmul.f32 %v4637_v10, %v4985_v44  ;;  %v2124_v47 = vmul.f32 %v4645_v15, %v4985_v44 }
  0xf8   :  { %7899 = vst [vmem:[#allocation61_spill] sm:$0xff] %v4981_v57  ;;  %3877 = vmatmul.msk.f32.gmra.mxu0 %vm1114_vm0, %v4990_v46  ;;  %v798_v5 = vmax.f32 %v738_v30, 0.0  ;;  %v2243_v21 = vmax.f32 %v2123_v50, 0.0  ;;  %v2372_v43 = vmul.f32 %v4653_v23, %v4983_v35  ;;  %v2374_v12 = vmul.f32 %v4655_v24, %v4983_v35 }
  0xf9   :  { %7900 = vst [vmem:[#allocation62_spill] sm:$0xff] %v4990_v46  ;;  %v797_v46 = vmax.f32 %v737_v27, 0.0  ;;  %v2245_v63 = vmax.f32 %v2125_v51, 0.0  ;;  %v2244_v1 = vmax.f32 %v2124_v47, 0.0  ;;  %v2373_v20 = vmul.f32 %v4661_v37, %v4983_v35 }
  0xfa   :  { %395 = vperm.xlu2 %4188, %v332_v26   ;;  %v5023_v42 = vmul.f32 %v1013_v2, %v798_v5  ;;  %v5027_v30 = vmul.f32 %v2372_v43, %v2243_v21  ;;  %v2102_v47 = vmul.f32 %v4663_v38, %v4785_v8  ;;  %7909 = vst [vmem:[#allocation71_spill] sm:$0xff] %v5048_v4  ;;  %v333_v8 = vld [vmem:[%s7768_s3 + $0x88] sm:$0xff] }
  0xfb   :  { %380 = vperm.xlu1 %4187, %v327_v39   ;;  %383 = vperm.xlu0 %4186, %v328_v62   ;;  %v5025_v54 = vmul.f32 %v1012_v29, %v797_v46  ;;  %v5033_v51 = vmul.f32 %v2374_v12, %v2245_v63  ;;  %v5035_v27 = vmul.f32 %v2373_v20, %v2244_v1  ;;  %v325_v1 = vld [vmem:[%s7768_s3 + $0x48] sm:$0xff]  ;;  %v326_v63 = vld [vmem:[%s7768_s3 + $0x50] sm:$0xff]  ;;  %v5074_v46 = vsel %vm245_vm5, 1.0, %v7869_v31 }
  0xfc   :  { %7901 = vst [vmem:[#allocation63_spill] sm:$0xff] %v5023_v42  ;;  %v5031_v26 = vpop.permute.xlu2 %646  ;;  %v2222_v43 = vmax.f32 %v2102_v47, 0.0  ;;  %v2106_v12 = vmul.f32 %v4663_v38, %v4595_v55  ;;  %v5069_v20 = vmul.f32 %v4628_v7, %v4947_v61  ;;  %v2351_v21 = vmul.f32 %v4705_v0, %v4783_v16 }
  0xfd   :  { %7902 = vst [vmem:[#allocation64_spill] sm:$0xff] %v5025_v54  ;;  %v5039_v50 = vpop.f32.mrf.mxu0  ;;  %v5043_v29 = vpop.permute.xlu0 %891  ;;  %v5081_v55 = vsel %vm244_vm6, 1.0, %v7869_v31  ;;  %v5089_v2 = vmul.f32 %v4630_v53, %v4947_v61  ;;  %v5093_v16 = vmul.f32 %v4635_v9, %v4947_v61  ;;  %v5250_v11 = vmul.f32 %v4630_v53, %v5031_v26 }
  0xfe   :  { %7903 = vst [vmem:[#allocation65_spill] sm:$0xff] %v5027_v30  ;;  %v5041_v5 = vpop.permute.xlu1 %621  ;;  %3892 = vmatmul.msk.f32.gmra.mxu1 %vm1312_vm2, %v5039_v50  ;;  %v5078_v39 = vmul.f32 %v2351_v21, %v2222_v43  ;;  %v2226_v47 = vmax.f32 %v2106_v12, 0.0  ;;  %v5106_v43 = vmul.f32 %v4645_v15, %v4947_v61  ;;  %v2355_v21 = vmul.f32 %v4705_v0, %v4854_v13  ;;  %v323_v12 = vld [vmem:[%s7768_s3 + $0x38] sm:$0xff]  ;;  %v334_v13 = vld [vmem:[%s7768_s3 + $0x90] sm:$0xff] }
  0xff   :  { %7904 = vst [vmem:[#allocation66_spill] sm:$0xff] %v5033_v51  ;;  %v2154_v25 = vmul.f32 %v4663_v38, %v5031_v26 }
 0x100   :  { %7905 = vst [vmem:[#allocation67_spill] sm:$0xff] %v5035_v27  ;;  %3878 = vmatmul.msk.f32.gmra.mxu0 %vm1114_vm0, %v5048_v4  ;;  %v5143_v60 = vmul.f32 %v2355_v21, %v2226_v47  ;;  %v2259_v47 = vmax.f32 %v5093_v16, 0.0  ;;  %v321_v16 = vld [vmem:[%s7768_s3 + $0x28] sm:$0xff] }
 0x101   :  { %7906 = vst [vmem:[#allocation68_spill] sm:$0xff] %v5039_v50 }
 0x102   :  { %7907 = vst [vmem:[#allocation69_spill] sm:$0xff] %v5041_v5  ;;  %374 = vperm.xlu2 %4188, %v325_v1  }
 0x103   :  { %7908 = vst [vmem:[#allocation70_spill] sm:$0xff] %v5043_v29  ;;  %398 = vperm.xlu1 %4187, %v333_v8   ;;  %377 = vperm.xlu0 %4186, %v326_v63   ;;  %v805_v8 = vmax.f32 %v5069_v20, 0.0  ;;  %v5102_v63 = vmul.f32 %v4637_v10, %v4947_v61 }
 0x104   :  { %7910 = vst [vmem:[#allocation72_spill] sm:$0xff] %v5074_v46  ;;  %v5076_v33 = vpop.permute.xlu2 %926 }
 0x105   :  { %7911 = vst [vmem:[#allocation73_spill] sm:$0xff] %v5078_v39  ;;  %v5083_v34 = vpop.f32.mrf.mxu0  ;;  %v5095_v1 = vpop.permute.xlu0 %626  ;;  %v324_v39 = vld [vmem:[%s7768_s3 + $0x40] sm:$0xff] }
 0x106   :  { %7912 = vst [vmem:[#allocation74_spill] sm:$0xff] %v5081_v55  ;;  %v5085_v62 = vpop.permute.xlu1 %901  ;;  %3893 = vmatmul.msk.f32.gmra.mxu1 %vm1312_vm2, %v5083_v34  ;;  %v743_v51 = vmul.f32 %v4628_v7, %v5095_v1  ;;  %v744_v27 = vmul.f32 %v4630_v53, %v5095_v1  ;;  %v2135_v30 = vmul.f32 %v4635_v9, %v5095_v1 }
 0x107   :  { %7913 = vst [vmem:[#allocation75_spill] sm:$0xff] %v5083_v34  ;;  %v1018_v20 = vmul.f32 %v4649_v17, %v5085_v62  ;;  %v1019_v4 = vmul.f32 %v4651_v22, %v5085_v62  ;;  %v2384_v5 = vmul.f32 %v4653_v23, %v5085_v62  ;;  %v2137_v42 = vmul.f32 %v4637_v10, %v5095_v1 }
 0x108   :  { %3879 = vmatmul.msk.f32.gmra.mxu0 %vm1114_vm0, %v5081_v55  ;;  %v2136_v55 = vmul.f32 %v4645_v15, %v5095_v1  ;;  %v803_v29 = vmax.f32 %v743_v51, 0.0  ;;  %v804_v54 = vmax.f32 %v744_v27, 0.0  ;;  %v2255_v36 = vmax.f32 %v2135_v30, 0.0  ;;  %7914 = vst [vmem:[#allocation76_spill] sm:$0xff] %v5143_v60 }
 0x109   :  { %v2386_v56 = vmul.f32 %v4655_v24, %v5085_v62  ;;  %v2257_v19 = vmax.f32 %v2137_v42, 0.0  ;;  %v2385_v6 = vmul.f32 %v4661_v37, %v5085_v62  ;;  %v806_v51 = vmax.f32 %v5089_v2, 0.0  ;;  %7955 = vst [vmem:[#allocation117_spill] sm:$0xff] %v5453_v18 }
 0x10a   :  { %368 = vperm.xlu2 %4188, %v323_v12   ;;  %v2256_v14 = vmax.f32 %v2136_v55, 0.0  ;;  %v5145_v34 = vmul.f32 %v1018_v20, %v803_v29  ;;  %v5147_v50 = vmul.f32 %v1019_v4, %v804_v54  ;;  %v5150_v30 = vmul.f32 %v2384_v5, %v2255_v36 }
 0x10b   :  { %401 = vperm.xlu1 %4187, %v334_v13   ;;  %371 = vperm.xlu0 %4186, %v324_v39   ;;  %v1022_v42 = vmul.f32 %v4649_v17, %v4977_v3  ;;  %v5156_v55 = vmul.f32 %v2386_v56, %v2257_v19  ;;  %v1023_v54 = vmul.f32 %v4651_v22, %v4977_v3  ;;  %v2261_v36 = vmax.f32 %v5102_v63, 0.0  ;;  %v322_v13 = vld [vmem:[%s7768_s3 + $0x30] sm:$0xff] }
 0x10c   :  { %7915 = vst [vmem:[#allocation77_spill] sm:$0xff] %v5145_v34  ;;  %v5152_v27 = vpop.permute.xlu2 %661  ;;  %v5158_v12 = vmul.f32 %v2385_v6, %v2256_v14  ;;  %v2260_v5 = vmax.f32 %v5106_v43, 0.0  ;;  %v2392_v4 = vmul.f32 %v4653_v23, %v4977_v3  ;;  %v2394_v2 = vmul.f32 %v4655_v24, %v4977_v3 }
 0x10d   :  { %7916 = vst [vmem:[#allocation78_spill] sm:$0xff] %v5147_v50  ;;  %v5161_v39 = vpop.f32.mrf.mxu0  ;;  %v5171_v19 = vpop.permute.xlu0 %906  ;;  %v5194_v20 = vmul.f32 %v4663_v38, %v4903_v45 }
 0x10e   :  { %7917 = vst [vmem:[#allocation79_spill] sm:$0xff] %v5150_v30  ;;  %v5163_v29 = vpop.permute.xlu1 %636  ;;  %3894 = vmatmul.msk.f32.gmra.mxu1 %vm1312_vm2, %v5161_v39  ;;  %v1020_v63 = vmul.f32 %v4649_v17, %v5171_v19  ;;  %v1021_v43 = vmul.f32 %v4651_v22, %v5171_v19  ;;  %v2388_v60 = vmul.f32 %v4653_v23, %v5171_v19 }
 0x10f   :  { %7918 = vst [vmem:[#allocation80_spill] sm:$0xff] %v5156_v55  ;;  %v747_v14 = vmul.f32 %v4628_v7, %v5163_v29  ;;  %v748_v6 = vmul.f32 %v4630_v53, %v5163_v29  ;;  %v2143_v56 = vmul.f32 %v4635_v9, %v5163_v29  ;;  %v2145_v21 = vmul.f32 %v4637_v10, %v5163_v29  ;;  %v335_v55 = vld [vmem:[%s7768_s3 + $0x98] sm:$0xff] }
 0x110   :  { %7919 = vst [vmem:[#allocation81_spill] sm:$0xff] %v5158_v12  ;;  %3880 = vmatmul.msk.f32.gmra.mxu0 %vm1114_vm0, %v5074_v46  ;;  %v2390_v45 = vmul.f32 %v4655_v24, %v5171_v19  ;;  %v5208_v50 = vmul.f32 %v1020_v63, %v805_v8  ;;  %v5210_v34 = vmul.f32 %v1021_v43, %v806_v51 }
 0x111   :  { %7920 = vst [vmem:[#allocation82_spill] sm:$0xff] %v5161_v39  ;;  %v807_v12 = vmax.f32 %v747_v14, 0.0  ;;  %v808_v30 = vmax.f32 %v748_v6, 0.0  ;;  %v2389_v46 = vmul.f32 %v4661_v37, %v5171_v19  ;;  %v2263_v39 = vmax.f32 %v2143_v56, 0.0 }
 0x112   :  { %7921 = vst [vmem:[#allocation83_spill] sm:$0xff] %v5208_v50  ;;  %362 = vperm.xlu2 %4188, %v321_v16   ;;  %v5218_v14 = vmul.f32 %v2388_v60, %v2259_v47  ;;  %v5220_v6 = vmul.f32 %v2390_v45, %v2261_v36  ;;  %v2265_v51 = vmax.f32 %v2145_v21, 0.0  ;;  %v2144_v63 = vmul.f32 %v4645_v15, %v5163_v29  ;;  %v337_v16 = vld [vmem:[%s7768_s3 + $0xa8] sm:$0xff] }
 0x113   :  { %7922 = vst [vmem:[#allocation84_spill] sm:$0xff] %v5210_v34  ;;  %v5214_v57 = vmul.f32 %v1022_v42, %v807_v12  ;;  %v5216_v58 = vmul.f32 %v1023_v54, %v808_v30  ;;  %365 = vperm.xlu1 %4187, %v322_v13   ;;  %404 = vperm.xlu0 %4186, %v335_v55   ;;  %v5232_v30 = vsel %vm246_vm7, 1.0, %v7869_v31  ;;  %v2234_v56 = vmax.f32 %v5194_v20, 0.0  ;;  %v336_v20 = vld [vmem:[%s7768_s3 + $0xa0] sm:$0xff] }
 0x114   :  { %7925 = vst [vmem:[#allocation87_spill] sm:$0xff] %v5218_v14  ;;  %v5222_v32 = vmul.f32 %v2389_v46, %v2260_v5  ;;  %v5224_v8 = vmul.f32 %v2392_v4, %v2263_v39  ;;  %v5236_v60 = vpop.permute.xlu2 %941  ;;  %v5240_v46 = vmul.f32 %v4628_v7, %v5031_v26  ;;  %v2393_v42 = vmul.f32 %v4661_v37, %v4977_v3 }
 0x115   :  { %7923 = vst [vmem:[#allocation85_spill] sm:$0xff] %v5214_v57  ;;  %v5244_v55 = vpop.f32.mrf.mxu0  ;;  %v5252_v47 = vmul.f32 %v2394_v2, %v2265_v51  ;;  %v2264_v39 = vmax.f32 %v2144_v63, 0.0  ;;  %v5256_v54 = vmul.f32 %v4635_v9, %v5031_v26  ;;  %v5258_v36 = vpop.permute.xlu0 %641  ;;  %v5264_v5 = vmul.f32 %v4637_v10, %v5031_v26 }
 0x116   :  { %7924 = vst [vmem:[#allocation86_spill] sm:$0xff] %v5216_v58  ;;  %v5246_v12 = vpop.permute.xlu1 %916  ;;  %3895 = vmatmul.msk.f32.gmra.mxu1 %vm1312_vm2, %v5244_v55  ;;  %v5268_v4 = vmul.f32 %v4645_v15, %v5031_v26  ;;  %v2363_v2 = vmul.f32 %v4705_v0, %v4901_v28  ;;  %v749_v43 = vmul.f32 %v4628_v7, %v5258_v36  ;;  %v320_v28 = vld [vmem:[%s7768_s3 + $0x20] sm:$0xff] }
 0x117   :  { %7926 = vst [vmem:[#allocation88_spill] sm:$0xff] %v5220_v6  ;;  %v750_v21 = vmul.f32 %v4630_v53, %v5258_v36  ;;  %v5280_v13 = vmul.f32 %v2393_v42, %v2264_v39  ;;  %v2147_v45 = vmul.f32 %v4635_v9, %v5258_v36  ;;  %v1024_v51 = vmul.f32 %v4649_v17, %v5246_v12 }
 0x118   :  { %7927 = vst [vmem:[#allocation89_spill] sm:$0xff] %v5222_v32  ;;  %3881 = vmatmul.msk.f32.gmra.mxu0 %vm1114_vm0, %v5232_v30  ;;  %v1025_v63 = vmul.f32 %v4651_v22, %v5246_v12  ;;  %v2149_v42 = vmul.f32 %v4637_v10, %v5258_v36  ;;  %v2148_v39 = vmul.f32 %v4645_v15, %v5258_v36 }
 0x119   :  { %7928 = vst [vmem:[#allocation90_spill] sm:$0xff] %v5224_v8  ;;  %v2267_v8 = vmax.f32 %v2147_v45, 0.0  ;;  %v2396_v6 = vmul.f32 %v4653_v23, %v5246_v12  ;;  %v2398_v14 = vmul.f32 %v4655_v24, %v5246_v12  ;;  %v2397_v58 = vmul.f32 %v4661_v37, %v5246_v12 }
 0x11a   :  { %7929 = vst [vmem:[#allocation91_spill] sm:$0xff] %v5232_v30  ;;  %410 = vperm.xlu2 %4188, %v337_v16   ;;  %v2269_v32 = vmax.f32 %v2149_v42, 0.0  ;;  %v2268_v30 = vmax.f32 %v2148_v39, 0.0  ;;  %v5318_v42 = vmul.f32 %v2363_v2, %v2234_v56  ;;  %v1029_v2 = vmul.f32 %v4651_v22, %v5076_v33 }
 0x11b   :  { %7930 = vst [vmem:[#allocation92_spill] sm:$0xff] %v5252_v47  ;;  %v809_v47 = vmax.f32 %v749_v43, 0.0  ;;  %359 = vperm.xlu1 %4187, %v320_v28   ;;  %407 = vperm.xlu0 %4186, %v336_v20   ;;  %v5310_v43 = vmul.f32 %v2396_v6, %v2267_v8  ;;  %v5324_v28 = vsel %vm247_vm8, 1.0, %v7869_v31  ;;  %v811_v6 = vmax.f32 %v5240_v46, 0.0 }
 0x11c   :  { %7931 = vst [vmem:[#allocation93_spill] sm:$0xff] %v5280_v13  ;;  %v810_v13 = vmax.f32 %v750_v21, 0.0  ;;  %v5312_v21 = vpop.permute.xlu2 %676  ;;  %v5314_v45 = vmul.f32 %v2398_v14, %v2269_v32  ;;  %v5316_v16 = vmul.f32 %v2397_v58, %v2268_v30  ;;  %v812_v8 = vmax.f32 %v5250_v11, 0.0  ;;  %v338_v11 = vld [vmem:[%s7768_s3 + $0xb0] sm:$0xff] }
 0x11d   :  { %v5306_v57 = vmul.f32 %v1024_v51, %v809_v47  ;;  %7934 = vst [vmem:[#allocation96_spill] sm:$0xff] %v5310_v43  ;;  %v5326_v47 = vpop.f32.mrf.mxu0  ;;  %v2271_v32 = vmax.f32 %v5256_v54, 0.0  ;;  %v5333_v58 = vpop.permute.xlu0 %921  ;;  %v1028_v14 = vmul.f32 %v4649_v17, %v5076_v33  ;;  %v2273_v46 = vmax.f32 %v5264_v5, 0.0  ;;  %v318_v5 = vld [vmem:[%s7768_s3 + $0x10] sm:$0xff]  ;;  %v319_v51 = vld [vmem:[%s7768_s3 + $0x18] sm:$0xff] }
 0x11e   :  { %v5308_v34 = vmul.f32 %v1025_v63, %v810_v13  ;;  %7935 = vst [vmem:[#allocation97_spill] sm:$0xff] %v5314_v45  ;;  %v5328_v13 = vpop.permute.xlu1 %651  ;;  %3896 = vmatmul.msk.f32.gmra.mxu1 %vm1312_vm2, %v5326_v47  ;;  %v1026_v54 = vmul.f32 %v4649_v17, %v5333_v58  ;;  %v1027_v56 = vmul.f32 %v4651_v22, %v5333_v58  ;;  %v2272_v20 = vmax.f32 %v5268_v4, 0.0 }
 0x11f   :  { %7932 = vst [vmem:[#allocation94_spill] sm:$0xff] %v5306_v57  ;;  %v753_v41 = vmul.f32 %v4628_v7, %v5328_v13  ;;  %v754_v30 = vmul.f32 %v4630_v53, %v5328_v13  ;;  %v2400_v45 = vmul.f32 %v4653_v23, %v5333_v58 }
 0x120   :  { %7933 = vst [vmem:[#allocation95_spill] sm:$0xff] %v5308_v34  ;;  %3882 = vmatmul.msk.f32.gmra.mxu0 %vm1114_vm0, %v5324_v28  ;;  %v5366_v4 = vmul.f32 %v1026_v54, %v811_v6  ;;  %v5368_v43 = vmul.f32 %v1027_v56, %v812_v8  ;;  %v2404_v54 = vmul.f32 %v4653_v23, %v5076_v33 }
 0x121   :  { %7936 = vst [vmem:[#allocation98_spill] sm:$0xff] %v5316_v16  ;;  %v813_v63 = vmax.f32 %v753_v41, 0.0  ;;  %v814_v39 = vmax.f32 %v754_v30, 0.0  ;;  %v2402_v16 = vmul.f32 %v4655_v24, %v5333_v58  ;;  %v5378_v30 = vmul.f32 %v2400_v45, %v2271_v32 }
 0x122   :  { %7937 = vst [vmem:[#allocation99_spill] sm:$0xff] %v5318_v42  ;;  %v2401_v42 = vmul.f32 %v4661_v37, %v5333_v58  ;;  %413 = vperm.xlu2 %4188, %v338_v11   ;;  %v2157_v56 = vmul.f32 %v4637_v10, %v5328_v13  ;;  %v2126_v45 = vmul.f32 %v4663_v38, %v4985_v44  ;;  %v5409_v44 = vsel %vm248_vm9, 1.0, %v7869_v31 }
 0x123   :  { %7938 = vst [vmem:[#allocation100_spill] sm:$0xff] %v5324_v28  ;;  %v2155_v28 = vmul.f32 %v4635_v9, %v5328_v13  ;;  %v5374_v34 = vmul.f32 %v1028_v14, %v813_v63  ;;  %v5376_v41 = vmul.f32 %v1029_v2, %v814_v39  ;;  %v5380_v57 = vmul.f32 %v2402_v16, %v2273_v46  ;;  %v317_v39 = vld [vmem:[%s7768_s3 + $0x8] sm:$0xff] }
 0x124   :  { %7939 = vst [vmem:[#allocation101_spill] sm:$0xff] %v5326_v47  ;;  %353 = vperm.xlu1 %4187, %v318_v5   ;;  %356 = vperm.xlu0 %4186, %v319_v51   ;;  %v5382_v6 = vmul.f32 %v2401_v42, %v2272_v20  ;;  %v5390_v14 = vpop.permute.xlu2 %956  ;;  %v2406_v46 = vmul.f32 %v4655_v24, %v5076_v33  ;;  %v2246_v40 = vmax.f32 %v2126_v45, 0.0  ;;  %v316_v20 = vld [vmem:[%s7768_s3] sm:$0xff] }
 0x125   :  { %7940 = vst [vmem:[#allocation102_spill] sm:$0xff] %v5366_v4  ;;  %v2275_v8 = vmax.f32 %v2155_v28, 0.0  ;;  %v5394_v16 = vpop.f32.mrf.mxu0  ;;  %v2277_v28 = vmax.f32 %v2157_v56, 0.0  ;;  %v5402_v11 = vpop.permute.xlu0 %656  ;;  %v2375_v2 = vmul.f32 %v4705_v0, %v4983_v35  ;;  %v339_v35 = vld [vmem:[%s7768_s3 + $0xb8] sm:$0xff] }
 0x126   :  { %7941 = vst [vmem:[#allocation103_spill] sm:$0xff] %v5368_v43  ;;  %v5396_v32 = vpop.permute.xlu1 %931  ;;  %3897 = vmatmul.msk.f32.gmra.mxu1 %vm1312_vm2, %v5394_v16  ;;  %v755_v5 = vmul.f32 %v4628_v7, %v5402_v11  ;;  %v756_v51 = vmul.f32 %v4630_v53, %v5402_v11  ;;  %v2159_v43 = vmul.f32 %v4635_v9, %v5402_v11 }
 0x127   :  { %7942 = vst [vmem:[#allocation104_spill] sm:$0xff] %v5374_v34  ;;  %v5398_v42 = vmul.f32 %v2404_v54, %v2275_v8  ;;  %v5418_v63 = vmul.f32 %v2406_v46, %v2277_v28  ;;  %v757_v8 = vmul.f32 %v4628_v7, %v5152_v27  ;;  %v2156_v54 = vmul.f32 %v4645_v15, %v5328_v13 }
 0x128   :  { %7943 = vst [vmem:[#allocation105_spill] sm:$0xff] %v5376_v41  ;;  %3883 = vmatmul.msk.f32.gmra.mxu0 %vm1114_vm0, %v5409_v44  ;;  %v5432_v56 = vmul.f32 %v2375_v2, %v2246_v40  ;;  %v815_v45 = vmax.f32 %v755_v5, 0.0  ;;  %v1030_v28 = vmul.f32 %v4649_v17, %v5396_v32  ;;  %v816_v46 = vmax.f32 %v756_v51, 0.0 }
 0x129   :  { %7944 = vst [vmem:[#allocation106_spill] sm:$0xff] %v5378_v30  ;;  %v2405_v40 = vmul.f32 %v4661_v37, %v5076_v33  ;;  %v341_v30 = vld [vmem:[%s7768_s3 + $0xc8] sm:$0xff] }
 0x12a   :  { %7945 = vst [vmem:[#allocation107_spill] sm:$0xff] %v5380_v57  ;;  %347 = vperm.xlu2 %4188, %v316_v20   ;;  %v2276_v57 = vmax.f32 %v2156_v54, 0.0  ;;  %v5444_v2 = vmul.f32 %v1030_v28, %v815_v45  ;;  %v1034_v45 = vmul.f32 %v4649_v17, %v5236_v60 }
 0x12b   :  { %7946 = vst [vmem:[#allocation108_spill] sm:$0xff] %v5382_v6 }
 0x12c   :  { %7947 = vst [vmem:[#allocation109_spill] sm:$0xff] %v5394_v16  ;;  %416 = vperm.xlu1 %4187, %v339_v35   ;;  %350 = vperm.xlu0 %4186, %v317_v39   ;;  %v5448_v51 = vpop.permute.xlu2 %691  ;;  %v5450_v6 = vmul.f32 %v2405_v40, %v2276_v57  ;;  %v817_v35 = vmax.f32 %v757_v8, 0.0 }
 0x12d   :  { %7948 = vst [vmem:[#allocation110_spill] sm:$0xff] %v5398_v42  ;;  %v758_v42 = vmul.f32 %v4630_v53, %v5152_v27  ;;  %v5457_v20 = vpop.f32.mrf.mxu0  ;;  %v5461_v39 = vpop.permute.xlu0 %936 }
 0x12e   :  { %7949 = vst [vmem:[#allocation111_spill] sm:$0xff] %v5409_v44  ;;  %v5459_v54 = vpop.permute.xlu1 %666  ;;  %3898 = vmatmul.msk.f32.gmra.mxu1 %vm1312_vm2, %v5457_v20  ;;  %v1032_v8 = vmul.f32 %v4649_v17, %v5461_v39  ;;  %v1033_v40 = vmul.f32 %v4651_v22, %v5461_v39  ;;  %v531_v44 = vld [vmem:[%s7767_s7 + $0x8] sm:$0xff] }
 0x12f   :  { %7950 = vst [vmem:[#allocation112_spill] sm:$0xff] %v5418_v63  ;;  %v1031_v63 = vmul.f32 %v4651_v22, %v5396_v32  ;;  %v759_v57 = vmul.f32 %v4628_v7, %v5459_v54  ;;  %v760_v28 = vmul.f32 %v4630_v53, %v5459_v54  ;;  %1525 = vmatpush.msra.mxu0 %v531_v44 }
 0x130   :  { %7951 = vst [vmem:[#allocation113_spill] sm:$0xff] %v5432_v56  ;;  %3884 = vmatmul.msk.f32.gmra.mxu0 %vm1114_vm0, %v5453_v18  ;;  %v340_v56 = vld [vmem:[%s7768_s3 + $0xc0] sm:$0xff]  ;;  %v2165_v18 = vmul.f32 %v4637_v10, %v5152_v27  ;;  %4106 = vmatpush.msra.mxu2 %v531_v44  ;;  %v5497_v4 = vmul.f32 %v1032_v8, %v817_v35 }
 0x131   :  { %7952 = vst [vmem:[#allocation114_spill] sm:$0xff] %v5444_v2  ;;  %v5446_v5 = vmul.f32 %v1031_v63, %v816_v46  ;;  %v818_v63 = vmax.f32 %v758_v42, 0.0  ;;  %v342_v46 = vld [vmem:[%s7768_s3 + $0xd0] sm:$0xff]  ;;  %v1035_v42 = vmul.f32 %v4651_v22, %v5236_v60  ;;  %v820_v41 = vmax.f32 %v760_v28, 0.0 }
 0x132   :  { %7954 = vst [vmem:[#allocation116_spill] sm:$0xff] %v5450_v6  ;;  %v2163_v6 = vmul.f32 %v4635_v9, %v5152_v27  ;;  %v2161_v2 = vmul.f32 %v4637_v10, %v5402_v11  ;;  %425 = vperm.xlu2 %4188, %v342_v46   ;;  %v2279_v28 = vmax.f32 %v2159_v43, 0.0  ;;  %v2410_v44 = vmul.f32 %v4655_v24, %v5396_v32 }
 0x133   :  { %7953 = vst [vmem:[#allocation115_spill] sm:$0xff] %v5446_v5  ;;  %v819_v5 = vmax.f32 %v759_v57, 0.0  ;;  %v5499_v50 = vmul.f32 %v1033_v40, %v818_v63  ;;  %v5505_v57 = vmul.f32 %v1035_v42, %v820_v41  ;;  %v2160_v35 = vmul.f32 %v4645_v15, %v5402_v11 }
 0x134   :  { %7956 = vst [vmem:[#allocation118_spill] sm:$0xff] %v5457_v20  ;;  %v2408_v20 = vmul.f32 %v4653_v23, %v5396_v32  ;;  %422 = vperm.xlu1 %4187, %v341_v30   ;;  %419 = vperm.xlu0 %4186, %v340_v56   ;;  %v2281_v16 = vmax.f32 %v2161_v2, 0.0  ;;  %v2138_v63 = vmul.f32 %v4663_v38, %v5095_v1  ;;  %v5517_v41 = vpop.permute.xlu2 %971  ;;  %v5527_v56 = vsel %vm250_vm11, 1.0, %v7869_v31 }
 0x135   :  { %7957 = vst [vmem:[#allocation119_spill] sm:$0xff] %v5497_v4  ;;  %v5503_v34 = vmul.f32 %v1034_v45, %v819_v5  ;;  %v2142_v30 = vmul.f32 %v4663_v38, %v4947_v61  ;;  %v5529_v2 = vpop.f32.mrf.mxu0  ;;  %v2280_v45 = vmax.f32 %v2160_v35, 0.0  ;;  %v5537_v46 = vpop.permute.xlu0 %671  ;;  %v2283_v61 = vmax.f32 %v2163_v6, 0.0  ;;  %v343_v6 = vld [vmem:[%s7768_s3 + $0xd8] sm:$0xff] }
 0x136   :  { %7958 = vst [vmem:[#allocation120_spill] sm:$0xff] %v5499_v50  ;;  %v5519_v43 = vmul.f32 %v2408_v20, %v2279_v28  ;;  %v5531_v5 = vpop.permute.xlu1 %946  ;;  %v5533_v1 = vmul.f32 %v2410_v44, %v2281_v16  ;;  %v2409_v20 = vmul.f32 %v4661_v37, %v5396_v32  ;;  %3899 = vmatmul.msk.f32.gmra.mxu1 %vm1312_vm2, %v5529_v2  ;;  %v2285_v8 = vmax.f32 %v2165_v18, 0.0  ;;  %v345_v16 = vld [vmem:[%s7768_s3 + $0xe8] sm:$0xff] }
 0x137   :  { %7959 = vst [vmem:[#allocation121_spill] sm:$0xff] %v5503_v34  ;;  %v2258_v49 = vmax.f32 %v2138_v63, 0.0  ;;  %v2387_v40 = vmul.f32 %v4705_v0, %v5085_v62  ;;  %v761_v42 = vmul.f32 %v4628_v7, %v5537_v46  ;;  %v762_v28 = vmul.f32 %v4630_v53, %v5537_v46  ;;  %v344_v62 = vld [vmem:[%s7768_s3 + $0xe0] sm:$0xff] }
 0x138   :  { %7960 = vst [vmem:[#allocation122_spill] sm:$0xff] %v5505_v57  ;;  %v763_v44 = vmul.f32 %v4628_v7, %v5312_v21  ;;  %v5552_v35 = vmul.f32 %v2409_v20, %v2280_v45  ;;  %3885 = vmatmul.msk.f32.gmra.mxu0 %vm1114_vm0, %v5527_v56  ;;  %v2412_v18 = vmul.f32 %v4653_v23, %v5461_v39  ;;  %v2262_v45 = vmax.f32 %v2142_v30, 0.0 }
 0x139   :  { %7961 = vst [vmem:[#allocation123_spill] sm:$0xff] %v5519_v43  ;;  %v2414_v63 = vmul.f32 %v4655_v24, %v5461_v39  ;;  %v821_v20 = vmax.f32 %v761_v42, 0.0  ;;  %v822_v43 = vmax.f32 %v762_v28, 0.0  ;;  %v2391_v34 = vmul.f32 %v4705_v0, %v5171_v19 }
 0x13a   :  { %7962 = vst [vmem:[#allocation124_spill] sm:$0xff] %v5527_v56  ;;  %v1037_v56 = vmul.f32 %v4651_v22, %v5531_v5  ;;  %434 = vperm.xlu2 %4188, %v345_v16   ;;  %v5572_v57 = vmul.f32 %v2412_v18, %v2283_v61  ;;  %v764_v42 = vmul.f32 %v4630_v53, %v5312_v21  ;;  %v5594_v19 = vsel %vm251_vm12, 1.0, %v7869_v31 }
 0x13b   :  { %7963 = vst [vmem:[#allocation125_spill] sm:$0xff] %v5529_v2  ;;  %v5574_v50 = vmul.f32 %v2414_v63, %v2285_v8  ;;  %v5588_v61 = vmul.f32 %v2391_v34, %v2262_v45  ;;  %v1040_v63 = vmul.f32 %v4649_v17, %v5390_v14 }
 0x13c   :  { %7964 = vst [vmem:[#allocation126_spill] sm:$0xff] %v5533_v1  ;;  %v5566_v1 = vmul.f32 %v2387_v40, %v2258_v49  ;;  %v2146_v49 = vmul.f32 %v4663_v38, %v5163_v29  ;;  %431 = vperm.xlu1 %4187, %v344_v62   ;;  %428 = vperm.xlu0 %4186, %v343_v6   ;;  %v5586_v16 = vpop.permute.xlu2 %706  ;;  %v824_v6 = vmax.f32 %v764_v42, 0.0 }
 0x13d   :  { %7965 = vst [vmem:[#allocation127_spill] sm:$0xff] %v5552_v35  ;;  %v1036_v35 = vmul.f32 %v4649_v17, %v5531_v5  ;;  %v5582_v40 = vmul.f32 %v1037_v56, %v822_v43  ;;  %v5596_v29 = vpop.f32.mrf.mxu0  ;;  %v5600_v43 = vpop.permute.xlu0 %951  ;;  %v823_v56 = vmax.f32 %v763_v44, 0.0 }
 0x13e   :  { %7966 = vst [vmem:[#allocation128_spill] sm:$0xff] %v5566_v1  ;;  %v5598_v8 = vpop.permute.xlu1 %681  ;;  %v2266_v28 = vmax.f32 %v2146_v49, 0.0  ;;  %3900 = vmatmul.msk.f32.gmra.mxu1 %vm1312_vm2, %v5596_v29  ;;  %v1038_v62 = vmul.f32 %v4649_v17, %v5600_v43  ;;  %v1039_v18 = vmul.f32 %v4651_v22, %v5600_v43 }
 0x13f   :  { %7967 = vst [vmem:[#allocation129_spill] sm:$0xff] %v5572_v57  ;;  %v5580_v30 = vmul.f32 %v1036_v35, %v821_v20  ;;  %v765_v34 = vmul.f32 %v4628_v7, %v5598_v8  ;;  %v766_v35 = vmul.f32 %v4630_v53, %v5598_v8  ;;  %v1041_v20 = vmul.f32 %v4651_v22, %v5390_v14 }
 0x140   :  { %7968 = vst [vmem:[#allocation130_spill] sm:$0xff] %v5574_v50  ;;  %3886 = vmatmul.msk.f32.gmra.mxu0 %vm1114_vm0, %v5594_v19  ;;  %v5620_v49 = vmul.f32 %v2395_v48, %v2266_v28  ;;  %v5622_v3 = vmul.f32 %v1038_v62, %v823_v56  ;;  %v5624_v50 = vmul.f32 %v1039_v18, %v824_v6 }
 0x141   :  { %7969 = vst [vmem:[#allocation131_spill] sm:$0xff] %v5580_v30  ;;  %v825_v44 = vmax.f32 %v765_v34, 0.0  ;;  %v826_v45 = vmax.f32 %v766_v35, 0.0  ;;  %v2399_v28 = vmul.f32 %v4705_v0, %v5246_v12 }
 0x142   :  { %7970 = vst [vmem:[#allocation132_spill] sm:$0xff] %v5582_v40 }
 0x143   :  { %7971 = vst [vmem:[#allocation133_spill] sm:$0xff] %v5588_v61  ;;  %v5626_v42 = vmul.f32 %v1040_v63, %v825_v44  ;;  %v5628_v57 = vmul.f32 %v1041_v20, %v826_v45  ;;  %v2150_v61 = vmul.f32 %v4663_v38, %v5258_v36  ;;  %v5651_v36 = vsel %vm252_vm13, 1.0, %v7869_v31 }
 0x144   :  { %7972 = vst [vmem:[#allocation134_spill] sm:$0xff] %v5594_v19  ;;  %v5634_v34 = vpop.permute.xlu2 %986  ;;  %v769_v45 = vmul.f32 %v4628_v7, %v5448_v51  ;;  %v770_v20 = vmul.f32 %v4630_v53, %v5448_v51  ;;  %v7986_v19 = vld [vmem:[#allocation12_spill] sm:$0xff] }
 0x145   :  { %7973 = vst [vmem:[#allocation135_spill] sm:$0xff] %v5596_v29  ;;  %v2270_v35 = vmax.f32 %v2150_v61, 0.0  ;;  %v5638_v56 = vpop.f32.mrf.mxu0  ;;  %v5642_v62 = vpop.permute.xlu0 %686  ;;  %vm254_vm1 = vcmp.eq.s32.totalorder %v4411_v52, %v7986_v19  ;;  %v2413_v19 = vmul.f32 %v4661_v37, %v5461_v39 }
 0x146   :  { %7974 = vst [vmem:[#allocation136_spill] sm:$0xff] %v5620_v49  ;;  %v5640_v48 = vpop.permute.xlu1 %961  ;;  %3901 = vmatmul.msk.f32.gmra.mxu1 %vm1312_vm2, %v5638_v56  ;;  %v767_v12 = vmul.f32 %v4628_v7, %v5642_v62  ;;  %v768_v61 = vmul.f32 %v4630_v53, %v5642_v62  ;;  %v7984_v49 = vld [vmem:[#allocation8_spill] sm:$0xff] }
 0x147   :  { %7975 = vst [vmem:[#allocation137_spill] sm:$0xff] %v5622_v3  ;;  %v5646_v6 = vmul.f32 %v2399_v28, %v2270_v35  ;;  %v1042_v63 = vmul.f32 %v4649_v17, %v5640_v48  ;;  %v1043_v44 = vmul.f32 %v4651_v22, %v5640_v48  ;;  %v2274_v35 = vmax.f32 %v2154_v25, 0.0 }
 0x148   :  { %7976 = vst [vmem:[#allocation138_spill] sm:$0xff] %v5624_v50  ;;  %3887 = vmatmul.msk.f32.gmra.mxu0 %vm1114_vm0, %v5651_v36  ;;  %v827_v18 = vmax.f32 %v767_v12, 0.0  ;;  %v828_v26 = vmax.f32 %v768_v61, 0.0  ;;  %v2403_v28 = vmul.f32 %v4705_v0, %v5333_v58  ;;  %v2158_v61 = vmul.f32 %v4663_v38, %v5328_v13 }
 0x149   :  { %7977 = vst [vmem:[#allocation139_spill] sm:$0xff] %v5626_v42  ;;  %vm255_vm15 = vcmp.eq.s32.totalorder %v4411_v52, %v7984_v49  ;;  %v5689_v58 = vsel %vm253_vm14, 1.0, %v7869_v31  ;;  %v1047_v50 = vmul.f32 %v4651_v22, %v5517_v41  ;;  %v2166_v49 = vmul.f32 %v4663_v38, %v5152_v27 }
 0x14a   :  { %7978 = vst [vmem:[#allocation140_spill] sm:$0xff] %v5628_v57  ;;  %v5673_v12 = vmul.f32 %v1043_v44, %v828_v26  ;;  %v2278_v13 = vmax.f32 %v2158_v61, 0.0  ;;  %v829_v44 = vmax.f32 %v769_v45, 0.0 }
 0x14b   :  { %7979 = vst [vmem:[#allocation141_spill] sm:$0xff] %v5638_v56 }
 0x14c   :  { %7980 = vst [vmem:[#allocation142_spill] sm:$0xff] %v5646_v6  ;;  %v5671_v6 = vmul.f32 %v1042_v63, %v827_v18  ;;  %v5679_v1 = vpop.permute.xlu2 %386  ;;  %v2407_v63 = vmul.f32 %v4705_v0, %v5076_v33  ;;  %v2164_v33 = vmul.f32 %v4645_v15, %v5152_v27  ;;  %v775_v27 = vmul.f32 %v4628_v7, %v5586_v16 }
 0x14d   :  { %7981 = vst [vmem:[#allocation143_spill] sm:$0xff] %v5651_v36  ;;  %v5681_v36 = vmul.f32 %v2403_v28, %v2274_v35  ;;  %v5691_v25 = vpop.f32.mrf.mxu0  ;;  %v5697_v26 = vpop.permute.xlu0 %966  ;;  %v830_v35 = vmax.f32 %v770_v20, 0.0  ;;  %v1046_v20 = vmul.f32 %v4649_v17, %v5517_v41  ;;  %vm449_vm5 = vcmp.eq.s32.totalorder %v4411_v52, %v5679_v1 }
 0x14e   :  { %7982 = vst [vmem:[#allocation144_spill] sm:$0xff] %v5671_v6  ;;  %v5693_v18 = vpop.permute.xlu1 %696  ;;  %3902 = vmatmul.msk.f32.gmra.mxu1 %vm1312_vm2, %v5691_v25  ;;  %v1045_v61 = vmul.f32 %v4651_v22, %v5697_v26  ;;  %v2178_v1 = vmul.f32 %v4663_v38, %v5312_v21 }
 0x14f   :  { %7983 = vst [vmem:[#allocation145_spill] sm:$0xff] %v5673_v12  ;;  %v771_v59 = vmul.f32 %v4628_v7, %v5693_v18  ;;  %v772_v28 = vmul.f32 %v4630_v53, %v5693_v18  ;;  %v5711_v12 = vmul.f32 %v2407_v63, %v2278_v13  ;;  %v5727_v13 = vsel %vm255_vm15, 1.0, %v7869_v31 }
 0x150   :  { %7985 = vst [vmem:[#allocation8_spill] sm:$0xff] %v5681_v36  ;;  %v1044_v36 = vmul.f32 %v4649_v17, %v5697_v26  ;;  %3888 = vmatmul.msk.f32.gmra.mxu0 %vm1114_vm0, %v5689_v58  ;;  %v5721_v6 = vmul.f32 %v1045_v61, %v830_v35  ;;  %v5733_v63 = vsel %vm254_vm1, 1.0, %v7869_v31  ;;  %v2162_v35 = vmul.f32 %v4663_v38, %v5402_v11 }
 0x151   :  { %7987 = vst [vmem:[#allocation12_spill] sm:$0xff] %v5689_v58  ;;  %v831_v45 = vmax.f32 %v771_v59, 0.0  ;;  %v832_v57 = vmax.f32 %v772_v28, 0.0  ;;  %v2418_v11 = vmul.f32 %v4655_v24, %v5236_v60 }
 0x152   :  { %7988 = vst [vmem:[#allocation146_spill] sm:$0xff] %v5691_v25  ;;  %v5719_v40 = vmul.f32 %v1044_v36, %v829_v44  ;;  %v2284_v36 = vmax.f32 %v2164_v33, 0.0  ;;  %v2416_v44 = vmul.f32 %v4653_v23, %v5236_v60  ;;  %v2282_v58 = vmax.f32 %v2162_v35, 0.0 }
 0x153   :  { %7989 = vst [vmem:[#allocation147_spill] sm:$0xff] %v5711_v12  ;;  %v5735_v59 = vmul.f32 %v1046_v20, %v831_v45  ;;  %v5737_v28 = vmul.f32 %v1047_v50, %v832_v57  ;;  %v2167_v45 = vmul.f32 %v4635_v9, %v5459_v54  ;;  %v2169_v50 = vmul.f32 %v4637_v10, %v5459_v54 }
 0x154   :  { %7990 = vst [vmem:[#allocation148_spill] sm:$0xff] %v5719_v40  ;;  %v396_v61 = vpop.permute.xlu2 %395  ;;  %v2168_v57 = vmul.f32 %v4645_v15, %v5459_v54  ;;  %v2417_v12 = vmul.f32 %v4661_v37, %v5236_v60  ;;  %v2411_v40 = vmul.f32 %v4705_v0, %v5396_v32 }
 0x155   :  { %7991 = vst [vmem:[#allocation149_spill] sm:$0xff] %v5721_v6  ;;  %v5753_v33 = vpop.f32.mrf.mxu0  ;;  %vm452_vm3 = vcmp.eq.s32.totalorder %v4411_v52, %v396_v61  ;;  %v776_v6 = vmul.f32 %v4630_v53, %v5586_v16  ;;  %v2287_v3 = vmax.f32 %v2167_v45, 0.0  ;;  %v2289_v30 = vmax.f32 %v2169_v50, 0.0 }
 0x156   :  { %7992 = vst [vmem:[#allocation150_spill] sm:$0xff] %v5733_v63  ;;  %v5755_v20 = vpop.permute.xlu1 %976  ;;  %3903 = vmatmul.msk.f32.gmra.mxu1 %vm1312_vm2, %v5753_v33  ;;  %v835_v45 = vmax.f32 %v775_v27, 0.0 }
 0x157   :  { %7993 = vst [vmem:[#allocation151_spill] sm:$0xff] %v5735_v59  ;;  %v5770_v59 = vmul.f32 %v2413_v19, %v2284_v36  ;;  %v1048_v4 = vmul.f32 %v4649_v17, %v5755_v20  ;;  %v1049_v36 = vmul.f32 %v4651_v22, %v5755_v20  ;;  %v2288_v19 = vmax.f32 %v2168_v57, 0.0 }
 0x158   :  { %7994 = vst [vmem:[#allocation152_spill] sm:$0xff] %v5737_v28  ;;  %v5764_v28 = vpop.permute.xlu0 %701  ;;  %3889 = vmatmul.msk.f32.gmra.mxu0 %vm1114_vm0, %v5733_v63  ;;  %v5786_v25 = vmul.f32 %v2416_v44, %v2287_v3  ;;  %v5788_v56 = vmul.f32 %v2418_v11, %v2289_v30  ;;  %v836_v50 = vmax.f32 %v776_v6, 0.0  ;;  %v2286_v63 = vmax.f32 %v2166_v49, 0.0 }
 0x159   :  { %7995 = vst [vmem:[#allocation153_spill] sm:$0xff] %v5753_v33  ;;  %v773_v42 = vmul.f32 %v4628_v7, %v5764_v28  ;;  %v774_v35 = vmul.f32 %v4630_v53, %v5764_v28  ;;  %v5790_v29 = vmul.f32 %v2417_v12, %v2288_v19  ;;  %v2415_v57 = vmul.f32 %v4705_v0, %v5461_v39 }
 0x15a   :  { %7996 = vst [vmem:[#allocation154_spill] sm:$0xff] %v5770_v59  ;;  %v5784_v59 = vmul.f32 %v2411_v40, %v2282_v58  ;;  %v2170_v40 = vmul.f32 %v4663_v38, %v5459_v54  ;;  %v3847_v30 = vsel %vm452_vm3, 1.0, %v7869_v31  ;;  %v2171_v3 = vmul.f32 %v4635_v9, %v5537_v46 }
 0x15b   :  { %v833_v32 = vmax.f32 %v773_v42, 0.0  ;;  %v834_v33 = vmax.f32 %v774_v35, 0.0  ;;  %7998 = vst [vmem:[#allocation156_spill] sm:$0xff] %v5786_v25  ;;  %v2173_v42 = vmul.f32 %v4637_v10, %v5537_v46  ;;  %v1052_v54 = vmul.f32 %v4649_v17, %v5634_v34 }
 0x15c   :  { %7997 = vst [vmem:[#allocation155_spill] sm:$0xff] %v5784_v59  ;;  %v1053_v39 = vmul.f32 %v4651_v22, %v5634_v34  ;;  %v2420_v58 = vmul.f32 %v4653_v23, %v5531_v5  ;;  %v2422_v44 = vmul.f32 %v4655_v24, %v5531_v5  ;;  %v2290_v19 = vmax.f32 %v2170_v40, 0.0 }
 0x15d   :  { %7999 = vst [vmem:[#allocation157_spill] sm:$0xff] %v5788_v56  ;;  %v5792_v2 = vmul.f32 %v1048_v4, %v833_v32  ;;  %v5794_v47 = vmul.f32 %v1049_v36, %v834_v33  ;;  %v2419_v4 = vmul.f32 %v4705_v0, %v5236_v60  ;;  %v5809_v6 = vpop.f32.mrf.mxu0  ;;  %v2291_v33 = vmax.f32 %v2171_v3, 0.0 }
 0x15e   :  { %8000 = vst [vmem:[#allocation158_spill] sm:$0xff] %v5790_v29  ;;  %v5811_v12 = vpop.permute.xlu1 %711  ;;  %1923 = vxpose.xlu0.b32.start [1/14] (short) (narrow) %v3847_v30, 16  ;;  %3904 = vmatmul.msk.f32.gmra.mxu1 %vm1312_vm2, %v5809_v6  ;;  %v2293_v27 = vmax.f32 %v2173_v42, 0.0  ;;  %v5833_v36 = vmul.f32 %v2415_v57, %v2286_v63  ;;  %v2172_v57 = vmul.f32 %v4645_v15, %v5537_v46 }
 0x15f   :  { %v777_v60 = vmul.f32 %v4628_v7, %v5811_v12  ;;  %v778_v61 = vmul.f32 %v4630_v53, %v5811_v12  ;;  %v5837_v56 = vmul.f32 %v2420_v58, %v2291_v33  ;;  %v5845_v25 = vmul.f32 %v2419_v4, %v2290_v19 }
 0x160   :  { %v5821_v49 = vpop.permute.xlu0 %981  ;;  %8001 = vst [vmem:[#allocation159_spill] sm:$0xff] %v5833_v36  ;;  %3890 = vmatmul.msk.f32.gmra.mxu0 %vm1114_vm0, %v5727_v13  ;;  %v5839_v29 = vmul.f32 %v2422_v44, %v2293_v27  ;;  %v2174_v40 = vmul.f32 %v4663_v38, %v5537_v46  ;;  %v2292_v58 = vmax.f32 %v2172_v57, 0.0  ;;  %v2421_v44 = vmul.f32 %v4661_v37, %v5531_v5 }
 0x161   :  { %v1050_v11 = vmul.f32 %v4649_v17, %v5821_v49  ;;  %v1051_v35 = vmul.f32 %v4651_v22, %v5821_v49  ;;  %v837_v32 = vmax.f32 %v777_v60, 0.0  ;;  %v838_v30 = vmax.f32 %v778_v61, 0.0  ;;  %8002 = vst [vmem:[#allocation160_spill] sm:$0xff] %v5837_v56 }
 0x162   :  { %8003 = vst [vmem:[#allocation161_spill] sm:$0xff] %v5839_v29  ;;  %v2423_v60 = vmul.f32 %v4705_v0, %v5531_v5  ;;  %v5867_v46 = vmul.f32 %v2421_v44, %v2292_v58  ;;  %v2176_v33 = vmul.f32 %v4645_v15, %v5312_v21  ;;  %v8007_v5 = vld [vmem:[#allocation61_spill] sm:$0xff]  ;;  %v2426_v57 = vmul.f32 %v4655_v24, %v5600_v43 }
 0x163   :  { %v5841_v3 = vmul.f32 %v1050_v11, %v835_v45  ;;  %v5843_v42 = vmul.f32 %v1051_v35, %v836_v50  ;;  %8004 = vst [vmem:[#allocation162_spill] sm:$0xff] %v5845_v25  ;;  %v5847_v59 = vmul.f32 %v1052_v54, %v837_v32  ;;  %v5849_v63 = vmul.f32 %v1053_v39, %v838_v30 }
 0x164   :  { %v2175_v45 = vmul.f32 %v4635_v9, %v5312_v21  ;;  %v2177_v54 = vmul.f32 %v4637_v10, %v5312_v21  ;;  %v2294_v39 = vmax.f32 %v2174_v40, 0.0  ;;  %8005 = vst [vmem:[#allocation163_spill] sm:$0xff] %v5867_v46  ;;  %v7828_v11 = vmov 1.0  }
 0x165   :  { %v5859_v50 = vpop.f32.mrf.mxu0  ;;  %v2428_v32 = vmul.f32 %v4653_v23, %v5390_v14  ;;  %v2424_v30 = vmul.f32 %v4653_v23, %v5600_v43  ;;  %v2296_v40 = vmax.f32 %v2176_v33, 0.0  ;;  %v2425_v58 = vmul.f32 %v4661_v37, %v5600_v43 }
 0x166   :  { %v390_v4 = vpop.permute.xlu1 %389  ;;  %3905 = vmatmul.msk.f32.gmra.mxu1 %vm1312_vm2, %v5859_v50  ;;  %v5872_v27 = vmul.f32 %v2423_v60, %v2294_v39  ;;  %v2295_v35 = vmax.f32 %v2175_v45, 0.0  ;;  %v2297_v19 = vmax.f32 %v2177_v54, 0.0  ;;  %v2179_v44 = vmul.f32 %v4635_v9, %v5598_v8  ;;  %v5899_v39 = vpop.permute.xlu2 %374 }
 0x167   :  { %vm450_vm6 = vcmp.eq.s32.totalorder %v4411_v52, %v390_v4  ;;  %v2181_v45 = vmul.f32 %v4637_v10, %v5598_v8  ;;  %v2430_v4 = vmul.f32 %v4655_v24, %v5390_v14  ;;  %v2180_v54 = vmul.f32 %v4645_v15, %v5598_v8 }
 0x168   :  { %v393_v61 = vpop.permute.xlu0 %392  ;;  %8006 = vst [vmem:[#allocation164_spill] sm:$0xff] %v5872_v27  ;;  %3921 = vmatmul.msk.f32.vlgmr.msra.gmra.mxu0 %vm1312_vm2, %v8007_v5  ;;  %v5909_v60 = vmul.f32 %v2424_v30, %v2295_v35  ;;  %v5913_v33 = vmul.f32 %v2425_v58, %v2296_v40  ;;  %v2299_v29 = vmax.f32 %v2179_v44, 0.0  ;;  %v2429_v25 = vmul.f32 %v4661_v37, %v5390_v14  ;;  %v8014_v40 = vld [vmem:[#allocation68_spill] sm:$0xff] }
 0x169   :  { %vm451_vm4 = vcmp.eq.s32.totalorder %v4411_v52, %v393_v61  ;;  %v5911_v61 = vmul.f32 %v2426_v57, %v2297_v19  ;;  %v2301_v46 = vmax.f32 %v2181_v45, 0.0  ;;  %v2300_v56 = vmax.f32 %v2180_v54, 0.0 }
 0x16a   :  { %4151 = vmatpush.lsf.msk.msk.msrb.mxu2 %vm451_vm4, %v7828_v11  ;;  %4167 = vmatpush.lsf.msk.msk.msrb.mxu0 %vm451_vm4, %v7828_v11  ;;  %8008 = vst [vmem:[#allocation61_spill] sm:$0xff] %v5909_v60  ;;  %v5922_v35 = vmul.f32 %v2428_v32, %v2299_v29  ;;  %v2182_v57 = vmul.f32 %v4663_v38, %v5598_v8 }
 0x16b   :  { %8009 = vst [vmem:[#allocation165_spill] sm:$0xff] %v5911_v61  ;;  %v5924_v19 = vmul.f32 %v2430_v4, %v2301_v46  ;;  %v5926_v30 = vmul.f32 %v2429_v25, %v2300_v56  ;;  %v2427_v21 = vmul.f32 %v4705_v0, %v5600_v43  ;;  %v2431_v29 = vmul.f32 %v4705_v0, %v5390_v14  ;;  %v2025_v61 = vld [vmem:[%s7771_s12 + $0x58] sm:$0xff] }
 0x16c   :  { %4152 = vmatpush.lsf.msk.msk.msrb.mxu2 %vm450_vm6, %v7828_v11  ;;  %4168 = vmatpush.lsf.msk.msk.msrb.mxu0 %vm450_vm6, %v7828_v11  ;;  %8010 = vst [vmem:[#allocation166_spill] sm:$0xff] %v5913_v33  ;;  %v2183_v56 = vmul.f32 %v4635_v9, %v5642_v62  ;;  %v2185_v8 = vmul.f32 %v4637_v10, %v5642_v62 }
 0x16d   :  { %v1267_v5 = vpop.f32.mrf.mxu0  ;;  %8011 = vst [vmem:[#allocation167_spill] sm:$0xff] %v5922_v35  ;;  %v2187_v25 = vmul.f32 %v4635_v9, %v5448_v51  ;;  %v2184_v43 = vmul.f32 %v4645_v15, %v5642_v62  ;;  %v2189_v14 = vmul.f32 %v4637_v10, %v5448_v51  ;;  %v2188_v46 = vmul.f32 %v4645_v15, %v5448_v51 }
 0x16e   :  { %4153 = vmatpush.lsf.msk.msk.msrb.mxu2 %vm449_vm5, %v7828_v11  ;;  %4169 = vmatpush.lsf.msk.msk.msrb.mxu0 %vm449_vm5, %v7828_v11  ;;  %v381_v27 = vpop.permute.xlu1 %380  ;;  %8012 = vst [vmem:[#allocation168_spill] sm:$0xff] %v5924_v19  ;;  %v2303_v32 = vmax.f32 %v2183_v56, 0.0  ;;  %v2432_v58 = vmul.f32 %v4653_v23, %v5640_v48  ;;  %v2305_v44 = vmax.f32 %v2185_v8, 0.0  ;;  %v2434_v45 = vmul.f32 %v4655_v24, %v5640_v48 }
 0x16f   :  { %3906 = vmatmul.msk.f32.gmra.mxu1 %vm1312_vm2, %v1267_v5  ;;  %3936 = vmatmul.msk.f32.vlgmr.msra.gmra.mxu2 %vm1312_vm2, %v1267_v5  ;;  %8013 = vst [vmem:[#allocation169_spill] sm:$0xff] %v5926_v30  ;;  %vm447_vm8 = vcmp.eq.s32.totalorder %v4411_v52, %v381_v27  ;;  %v2302_v27 = vmax.f32 %v2182_v57, 0.0  ;;  %v2304_v5 = vmax.f32 %v2184_v43, 0.0  ;;  %v5963_v57 = vpop.permute.xlu2 %368  ;;  %vm445_vm11 = vcmp.eq.s32.totalorder %v4411_v52, %v5899_v39 }
 0x170   :  { %v384_v36 = vpop.permute.xlu0 %383  ;;  %3922 = vmatmul.msk.f32.gmra.mxu0 %vm1312_vm2, %v8014_v40  ;;  %v5968_v8 = vmul.f32 %v2432_v58, %v2303_v32  ;;  %v5970_v43 = vmul.f32 %v2434_v45, %v2305_v44  ;;  %v2309_v32 = vmax.f32 %v2189_v14, 0.0  ;;  %v2186_v58 = vmul.f32 %v4663_v38, %v5642_v62  ;;  %v8021_v44 = vld [vmem:[#allocation75_spill] sm:$0xff] }
 0x171   :  { %vm448_vm7 = vcmp.eq.s32.totalorder %v4411_v52, %v384_v36  ;;  %v2298_v36 = vmax.f32 %v2178_v1, 0.0  ;;  %v2433_v1 = vmul.f32 %v4661_v37, %v5640_v48  ;;  %v2308_v45 = vmax.f32 %v2188_v46, 0.0 }
 0x172   :  { %4154 = vmatpush.lsf.msk.msk.msrb.mxu2 %vm448_vm7, %v7828_v11  ;;  %4170 = vmatpush.lsf.msk.msk.msrb.mxu0 %vm448_vm7, %v7828_v11  ;;  %8016 = vst [vmem:[#allocation170_spill] sm:$0xff] %v5968_v8  ;;  %v2442_v39 = vmul.f32 %v4655_v24, %v5517_v41  ;;  %v2438_v62 = vmul.f32 %v4655_v24, %v5697_v26  ;;  %v2306_v14 = vmax.f32 %v2186_v58, 0.0 }
 0x173   :  { %v5959_v40 = vmul.f32 %v2427_v21, %v2298_v36  ;;  %8017 = vst [vmem:[#allocation171_spill] sm:$0xff] %v5970_v43  ;;  %v5974_v21 = vmul.f32 %v2433_v1, %v2304_v5  ;;  %v8020_v36 = vmov 1.0   ;;  %v2191_v46 = vmul.f32 %v4635_v9, %v5693_v18 }
 0x174   :  { %4155 = vmatpush.lsf.msk.msk.msrb.mxu2 %vm447_vm8, %v7828_v11  ;;  %4171 = vmatpush.lsf.msk.msk.msrb.mxu0 %vm447_vm8, %v7828_v11  ;;  %v2190_v11 = vmul.f32 %v4663_v38, %v5448_v51  ;;  %v5976_v51 = vmul.f32 %v2431_v29, %v2302_v27  ;;  %v2440_v29 = vmul.f32 %v4653_v23, %v5517_v41 }
 0x175   :  { %v1270_v4 = vpop.f32.mrf.mxu0  ;;  %8015 = vst [vmem:[#allocation68_spill] sm:$0xff] %v5959_v40  ;;  %v2439_v5 = vmul.f32 %v4705_v0, %v5697_v26  ;;  %v2435_v58 = vmul.f32 %v4705_v0, %v5640_v48  ;;  %v2311_v8 = vmax.f32 %v2191_v46, 0.0  ;;  %v2441_v35 = vmul.f32 %v4661_v37, %v5517_v41  ;;  %v2059_v40 = vld [vmem:[%s7771_s12 + $0x168] sm:$0xff] }
 0x176   :  { %v399_v54 = vpop.permute.xlu1 %398  ;;  %8018 = vst [vmem:[#allocation172_spill] sm:$0xff] %v5974_v21  ;;  %v2310_v27 = vmax.f32 %v2190_v11, 0.0  ;;  %v2193_v11 = vmul.f32 %v4637_v10, %v5693_v18  ;;  %vm443_vm14 = vcmp.eq.s32.totalorder %v4411_v52, %v5963_v57 }
 0x177   :  { %vm453_vm9 = vcmp.eq.s32.totalorder %v4411_v52, %v399_v54  ;;  %3907 = vmatmul.msk.f32.gmra.mxu1 %vm1312_vm2, %v1270_v4  ;;  %3937 = vmatmul.msk.f32.gmra.mxu2 %vm1312_vm2, %v1270_v4  ;;  %8019 = vst [vmem:[#allocation173_spill] sm:$0xff] %v5976_v51  ;;  %v2307_v4 = vmax.f32 %v2187_v25, 0.0  ;;  %v2436_v25 = vmul.f32 %v4653_v23, %v5697_v26 }
 0x178   :  { %v378_v56 = vpop.permute.xlu0 %377  ;;  %v3848_v19 = vsel %vm453_vm9, 1.0, %v7869_v31  ;;  %3923 = vmatmul.msk.f32.gmra.mxu0 %vm1312_vm2, %v8021_v44  ;;  %v2192_v54 = vmul.f32 %v4645_v15, %v5693_v18  ;;  %v2313_v51 = vmax.f32 %v2193_v11, 0.0  ;;  %v2446_v11 = vmul.f32 %v4655_v24, %v5755_v20 }
 0x179   :  { %vm446_vm10 = vcmp.eq.s32.totalorder %v4411_v52, %v378_v56  ;;  %1924 = vxpose.xlu0.b32.cont [2/14] (short) (narrow) %v3848_v19, 16  ;;  %v2437_v19 = vmul.f32 %v4661_v37, %v5697_v26  ;;  %v6006_v1 = vmul.f32 %v2436_v25, %v2307_v4  ;;  %v6008_v56 = vmul.f32 %v2438_v62, %v2309_v32  ;;  %v363_v62 = vpop.permute.xlu2 %362 }
 0x17a   :  { %4156 = vmatpush.lsf.msk.msk.msrb.mxu2 %vm446_vm10, %v8020_v36  ;;  %4172 = vmatpush.lsf.msk.msk.msrb.mxu0 %vm446_vm10, %v8020_v36  ;;  %v2312_v30 = vmax.f32 %v2192_v54, 0.0  ;;  %v6019_v4 = vmul.f32 %v2435_v58, %v2306_v14  ;;  %v6021_v32 = vmul.f32 %v2439_v5, %v2310_v27  ;;  %v6027_v25 = vmul.f32 %v2442_v39, %v2313_v51  ;;  %v8030_v27 = vld [vmem:[#allocation82_spill] sm:$0xff] }
 0x17b   :  { %8022 = vst [vmem:[#allocation75_spill] sm:$0xff] %v6006_v1  ;;  %v6010_v44 = vmul.f32 %v2437_v19, %v2308_v45  ;;  %v6025_v45 = vmul.f32 %v2440_v29, %v2311_v8  ;;  %v2199_v8 = vmul.f32 %v4635_v9, %v5586_v16  ;;  %v2443_v51 = vmul.f32 %v4705_v0, %v5517_v41  ;;  %v2060_v1 = vld [vmem:[%s7771_s12 + $0x170] sm:$0xff] }
 0x17c   :  { %4157 = vmatpush.lsf.msk.msk.msrb.mxu2 %vm445_vm11, %v8020_v36  ;;  %4173 = vmatpush.lsf.msk.msk.msrb.mxu0 %vm445_vm11, %v8020_v36  ;;  %8023 = vst [vmem:[#allocation174_spill] sm:$0xff] %v6008_v56  ;;  %v2444_v29 = vmul.f32 %v4653_v23, %v5755_v20  ;;  %v2196_v41 = vmul.f32 %v4645_v15, %v5764_v28 }
 0x17d   :  { %8024 = vst [vmem:[#allocation175_spill] sm:$0xff] %v6010_v44  ;;  %v1273_v43 = vpop.f32.mrf.mxu0  ;;  %v2200_v39 = vmul.f32 %v4645_v15, %v5586_v16  ;;  %v2198_v19 = vmul.f32 %v4663_v38, %v5764_v28  ;;  %vm441_vm3 = vcmp.eq.s32.totalorder %v4411_v52, %v363_v62 }
 0x17e   :  { %v402_v21 = vpop.permute.xlu1 %401  ;;  %3908 = vmatmul.msk.f32.vlgmr.msra.gmra.mxu3 %vm1312_vm2, %v1273_v43  ;;  %8025 = vst [vmem:[#allocation176_spill] sm:$0xff] %v6019_v4  ;;  %v2043_v4 = vld [vmem:[%s7771_s12 + $0xe8] sm:$0xff] }
 0x17f   :  { %vm454_vm12 = vcmp.eq.s32.totalorder %v4411_v52, %v402_v21  ;;  %3938 = vmatmul.msk.f32.gmra.mxu2 %vm1312_vm2, %v1273_v43  ;;  %8026 = vst [vmem:[#allocation177_spill] sm:$0xff] %v6021_v32  ;;  %v6031_v21 = vmul.f32 %v2441_v35, %v2312_v30  ;;  %v2194_v43 = vmul.f32 %v4663_v38, %v5693_v18  ;;  %v2320_v62 = vmax.f32 %v2200_v39, 0.0 }
 0x180   :  { %v372_v26 = vpop.permute.xlu0 %371  ;;  %v3849_v48 = vsel %vm454_vm12, 1.0, %v7869_v31  ;;  %8027 = vst [vmem:[#allocation178_spill] sm:$0xff] %v6025_v45  ;;  %3924 = vmatmul.msk.f32.gmra.mxu0 %vm1312_vm2, %v8030_v27  ;;  %v2195_v18 = vmul.f32 %v4635_v9, %v5764_v28  ;;  %v2197_v35 = vmul.f32 %v4637_v10, %v5764_v28  ;;  %v2201_v30 = vmul.f32 %v4637_v10, %v5586_v16 }
 0x181   :  { %vm444_vm13 = vcmp.eq.s32.totalorder %v4411_v52, %v372_v26  ;;  %8028 = vst [vmem:[#allocation179_spill] sm:$0xff] %v6027_v25  ;;  %1925 = vxpose.xlu0.b32.cont [3/14] (short) (narrow) %v3849_v48, 16  ;;  %v2314_v57 = vmax.f32 %v2194_v43, 0.0  ;;  %v2316_v26 = vmax.f32 %v2196_v41, 0.0  ;;  %v2445_v48 = vmul.f32 %v4661_v37, %v5755_v20 }
 0x182   :  { %4158 = vmatpush.lsf.msk.msk.msrb.mxu2 %vm444_vm13, %v8020_v36  ;;  %4174 = vmatpush.lsf.msk.msk.msrb.mxu0 %vm444_vm13, %v8020_v36  ;;  %8029 = vst [vmem:[#allocation180_spill] sm:$0xff] %v6031_v21  ;;  %v2315_v14 = vmax.f32 %v2195_v18, 0.0  ;;  %v2317_v46 = vmax.f32 %v2197_v35, 0.0  ;;  %v2318_v43 = vmax.f32 %v2198_v19, 0.0  ;;  %v2447_v27 = vmul.f32 %v4705_v0, %v5755_v20  ;;  %v8082_v21 = vld [vmem:[#allocation49_spill] sm:$0xff] }
 0x183   :  { %v6061_v54 = vmul.f32 %v2443_v51, %v2314_v57  ;;  %v6077_v35 = vmul.f32 %v2445_v48, %v2316_v26  ;;  %v2319_v41 = vmax.f32 %v2199_v8, 0.0  ;;  %v2321_v19 = vmax.f32 %v2201_v30, 0.0 }
 0x184   :  { %4159 = vmatpush.lsf.msk.msk.msrb.mxu2 %vm443_vm14, %v8020_v36  ;;  %4175 = vmatpush.lsf.msk.msk.msrb.mxu0 %vm443_vm14, %v8020_v36  ;;  %v6070_v18 = vmul.f32 %v2444_v29, %v2315_v14  ;;  %v6072_v51 = vmul.f32 %v2446_v11, %v2317_v46  ;;  %v6079_v20 = vmul.f32 %v2447_v27, %v2318_v43  ;;  %v411_v11 = vpop.permute.xlu2 %410 }
 0x185   :  { %8031 = vst [vmem:[#allocation82_spill] sm:$0xff] %v6061_v54  ;;  %v1276_v5 = vpop.f32.mrf.mxu0  ;;  %v2202_v29 = vmul.f32 %v4663_v38, %v5586_v16  ;;  %v2452_v14 = vmul.f32 %v4653_v23, %v5634_v34  ;;  %v2454_v46 = vmul.f32 %v4655_v24, %v5634_v34  ;;  %v2448_v16 = vmul.f32 %v4653_v23, %v5821_v49 }
 0x186   :  { %v366_v58 = vpop.permute.xlu1 %365  ;;  %3909 = vmatmul.msk.f32.gmra.mxu3 %vm1312_vm2, %v1276_v5  ;;  %8032 = vst [vmem:[#allocation181_spill] sm:$0xff] %v6070_v18  ;;  %v2449_v8 = vmul.f32 %v4661_v37, %v5821_v49  ;;  %v2203_v30 = vmul.f32 %v4635_v9, %v5811_v12  ;;  %v2451_v26 = vmul.f32 %v4705_v0, %v5821_v49 }
 0x187   :  { %vm442_vm15 = vcmp.eq.s32.totalorder %v4411_v52, %v366_v58  ;;  %3939 = vmatmul.msk.f32.gmra.mxu2 %vm1312_vm2, %v1276_v5  ;;  %8033 = vst [vmem:[#allocation182_spill] sm:$0xff] %v6072_v51  ;;  %v2205_v5 = vmul.f32 %v4637_v10, %v5811_v12  ;;  %v2204_v58 = vmul.f32 %v4645_v15, %v5811_v12  ;;  %v2322_v27 = vmax.f32 %v2202_v29, 0.0 }
 0x188   :  { %v405_v28 = vpop.permute.xlu0 %404  ;;  %4160 = vmatpush.lsf.msk.msk.msrb.mxu2 %vm442_vm15, %v8020_v36  ;;  %4176 = vmatpush.lsf.msk.msk.msrb.mxu0 %vm442_vm15, %v8020_v36  ;;  %8034 = vst [vmem:[#allocation183_spill] sm:$0xff] %v6077_v35  ;;  %v6107_v48 = vmul.f32 %v2448_v16, %v2319_v41  ;;  %v6111_v39 = vmul.f32 %v2449_v8, %v2320_v62 }
 0x189   :  { %vm455_vm1 = vcmp.eq.s32.totalorder %v4411_v52, %v405_v28  ;;  %8035 = vst [vmem:[#allocation184_spill] sm:$0xff] %v6079_v20  ;;  %3925 = vmatmul.msk.f32.gmra.mxu0 %vm1312_vm2, %v5244_v55  ;;  %v2450_v55 = vmul.f32 %v4655_v24, %v5821_v49  ;;  %v2323_v20 = vmax.f32 %v2203_v30, 0.0  ;;  %v2325_v51 = vmax.f32 %v2205_v5, 0.0  ;;  %v8043_v30 = vld [vmem:[#allocation101_spill] sm:$0xff] }
 0x18a   :  { %v3850_v57 = vsel %vm455_vm1, 1.0, %v7869_v31  ;;  %4161 = vmatpush.lsf.msk.msk.msrb.mxu2 %vm441_vm3, %v8020_v36  ;;  %4177 = vmatpush.lsf.msk.msk.msrb.mxu0 %vm441_vm3, %v8020_v36  ;;  %8036 = vst [vmem:[#allocation185_spill] sm:$0xff] %v6107_v48  ;;  %v2324_v35 = vmax.f32 %v2204_v58, 0.0  ;;  %v2453_v18 = vmul.f32 %v4661_v37, %v5634_v34  ;;  %v6118_v49 = vmul.f32 %v2451_v26, %v2322_v27  ;;  %v8046_v58 = vld [vmem:[#allocation118_spill] sm:$0xff] }
 0x18b   :  { %1926 = vxpose.xlu0.b32.cont [4/14] (short) (narrow) %v3850_v57, 16  ;;  %v6109_v43 = vmul.f32 %v2450_v55, %v2321_v19  ;;  %8038 = vst [vmem:[#allocation187_spill] sm:$0xff] %v6111_v39  ;;  %v2206_v29 = vmul.f32 %v4663_v38, %v5811_v12  ;;  %v6125_v41 = vmul.f32 %v2452_v14, %v2323_v20  ;;  %v8077_v39 = vld [vmem:[#allocation39_spill] sm:$0xff] }
 0x18c   :  { %8039 = vst [vmem:[#allocation188_spill] sm:$0xff] %v6118_v49  ;;  %v6127_v19 = vmul.f32 %v2454_v46, %v2325_v51  ;;  %v6130_v55 = vmul.f32 %v2453_v18, %v2324_v35  ;;  %v2455_v8 = vmul.f32 %v4705_v0, %v5634_v34  ;;  %vm457_vm6 = vcmp.eq.s32.totalorder %v4411_v52, %v411_v11  ;;  %v8045_v18 = vld [vmem:[#allocation109_spill] sm:$0xff] }
 0x18d   :  { %8037 = vst [vmem:[#allocation186_spill] sm:$0xff] %v6109_v43  ;;  %v1279_v28 = vpop.f32.mrf.mxu0  ;;  %v2326_v62 = vmax.f32 %v2206_v29, 0.0  ;;  %v3852_v34 = vsel %vm457_vm6, 1.0, %v7869_v31  ;;  %v8047_v29 = vld [vmem:[#allocation125_spill] sm:$0xff]  ;;  %v1016_v45 = vmul.f32 %v4649_v17, %v8082_v21 }
 0x18e   :  { %v360_v57 = vpop.permute.xlu1 %359  ;;  %3910 = vmatmul.msk.f32.gmra.mxu3 %vm1312_vm2, %v1279_v28  ;;  %8040 = vst [vmem:[#allocation189_spill] sm:$0xff] %v6125_v41 }
 0x18f   :  { %vm440_vm4 = vcmp.eq.s32.totalorder %v4411_v52, %v360_v57  ;;  %3940 = vmatmul.msk.f32.gmra.mxu2 %vm1312_vm2, %v1279_v28  ;;  %8041 = vst [vmem:[#allocation190_spill] sm:$0xff] %v6127_v19  ;;  %v6136_v12 = vmul.f32 %v2455_v8, %v2326_v62  ;;  %v547_v28 = vld [vmem:[%s7769_s8 + $0x78] sm:$0xff]  ;;  %v545_v8 = vld [vmem:[%s7769_s8 + $0x68] sm:$0xff] }
 0x190   :  { %v408_v54 = vpop.permute.xlu0 %407  ;;  %4162 = vmatpush.lsf.msk.msk.msrb.mxu2 %vm440_vm4, %v8020_v36  ;;  %4178 = vmatpush.lsf.msk.msk.msrb.mxu0 %vm440_vm4, %v8020_v36  ;;  %8042 = vst [vmem:[#allocation191_spill] sm:$0xff] %v6130_v55  ;;  %v8073_v55 = vld [vmem:[#allocation30_spill] sm:$0xff] }
 0x191   :  { %vm456_vm5 = vcmp.eq.s32.totalorder %v4411_v52, %v408_v54  ;;  %3926 = vmatmul.msk.f32.gmra.mxu0 %vm1312_vm2, %v8043_v30  ;;  %8044 = vst [vmem:[#allocation101_spill] sm:$0xff] %v6136_v12  ;;  %v414_v54 = vpop.permute.xlu2 %413  ;;  %1677 = vmatpush.msrb.mxu3 %v547_v28  ;;  %v562_v30 = vld [vmem:[%s7769_s8 + $0xf0] sm:$0xff]  ;;  %v540_v28 = vld [vmem:[%s7769_s8 + $0x40] sm:$0xff]  ;;  %v1010_v41 = vmul.f32 %v4649_v17, %v8073_v55 }
 0x192   :  { %v3851_v16 = vsel %vm456_vm5, 1.0, %v7869_v31  ;;  %vm458_vm9 = vcmp.eq.s32.totalorder %v4411_v52, %v414_v54  ;;  %vm1955_vm5 = vcmask 916480  }
 0x193   :  { %1927 = vxpose.xlu0.b32.cont [5/14] (short) (narrow) %v3851_v16, 16  ;;  %v3853_v5 = vsel %vm458_vm9, 1.0, %v7869_v31  ;;  %v563_v16 = vld [vmem:[%s7769_s8 + $0xf8] sm:$0xff] }
 0x194   :  { %1784 = vmatpush.msrb.mxu1 %v563_v16  ;;  %v539_v16 = vld [vmem:[%s7769_s8 + $0x38] sm:$0xff] }
 0x195   :  { %v1282_v20 = vpop.f32.mrf.mxu0 }
 0x196   :  { %v354_v51 = vpop.permute.xlu1 %353  ;;  %3911 = vmatmul.msk.f32.gmra.mxu3 %vm1312_vm2, %v1282_v20  ;;  %1785 = vmatpush.msrb.mxu1 %v562_v30  ;;  %v538_v30 = vld [vmem:[%s7769_s8 + $0x30] sm:$0xff] }
 0x197   :  { %3941 = vmatmul.msk.f32.gmra.mxu2 %vm1312_vm2, %v1282_v20  ;;  %vm438_vm8 = vcmp.eq.s32.totalorder %v4411_v52, %v354_v51  ;;  %v544_v20 = vld [vmem:[%s7769_s8 + $0x60] sm:$0xff]  ;;  %v561_v51 = vld [vmem:[%s7769_s8 + $0xe8] sm:$0xff] }
 0x198   :  { %v357_v14 = vpop.permute.xlu0 %356  ;;  %1786 = vmatpush.msrb.mxu1 %v561_v51  ;;  %v6238_v51 = vpop.f32.mrf.mxu1 }
 0x199   :  { %vm439_vm7 = vcmp.eq.s32.totalorder %v4411_v52, %v357_v14  ;;  %3927 = vmatmul.msk.f32.gmra.mxu0 %vm1312_vm2, %v8045_v18  ;;  %v348_v46 = vpop.permute.xlu2 %347  ;;  %v543_v14 = vld [vmem:[%s7769_s8 + $0x58] sm:$0xff] }
 0x19a   :  { %4163 = vmatpush.lsf.msk.msk.msrb.mxu2 %vm439_vm7, %v8020_v36  ;;  %4179 = vmatpush.lsf.msk.msk.msrb.mxu0 %vm439_vm7, %v8020_v36  ;;  %vm436_vm11 = vcmp.eq.s32.totalorder %v4411_v52, %v348_v46  ;;  %v542_v46 = vld [vmem:[%s7769_s8 + $0x50] sm:$0xff] }
 0x19b   :  { %1928 = vxpose.xlu0.b32.cont [6/14] (short) (narrow) %v3852_v34, 16  ;;  %v560_v34 = vld [vmem:[%s7769_s8 + $0xe0] sm:$0xff] }
 0x19c   :  { %4164 = vmatpush.lsf.msk.msk.msrb.mxu2 %vm438_vm8, %v8020_v36  ;;  %4180 = vmatpush.lsf.msk.msk.msrb.mxu0 %vm438_vm8, %v8020_v36 }
 0x19d   :  { %v1285_v35 = vpop.f32.mrf.mxu0  ;;  %1787 = vmatpush.msrb.mxu1 %v560_v34  ;;  %v554_v34 = vld [vmem:[%s7769_s8 + $0xb0] sm:$0xff] }
 0x19e   :  { %3912 = vmatmul.msk.f32.gmra.mxu3 %vm1312_vm2, %v1285_v35  ;;  %v417_v26 = vpop.permute.xlu1 %416 }
 0x19f   :  { %3942 = vmatmul.msk.f32.gmra.mxu2 %vm1312_vm2, %v1285_v35  ;;  %vm459_vm12 = vcmp.eq.s32.totalorder %v4411_v52, %v417_v26  ;;  %v8048_v35 = vld [vmem:[#allocation135_spill] sm:$0xff]  ;;  %v558_v26 = vld [vmem:[%s7769_s8 + $0xd0] sm:$0xff] }
 0x1a0   :  { %v351_v11 = vpop.permute.xlu0 %350  ;;  %v3854_v57 = vsel %vm459_vm12, 1.0, %v7869_v31 }
 0x1a1   :  { %vm437_vm10 = vcmp.eq.s32.totalorder %v4411_v52, %v351_v11  ;;  %3928 = vmatmul.msk.f32.gmra.mxu0 %vm1312_vm2, %v8046_v58  ;;  %v559_v11 = vld [vmem:[%s7769_s8 + $0xd8] sm:$0xff]  ;;  %v541_v58 = vld [vmem:[%s7769_s8 + $0x48] sm:$0xff] }
 0x1a2   :  { %4165 = vmatpush.lsf.msk.msk.msrb.mxu2 %vm437_vm10, %v8020_v36  ;;  %4181 = vmatpush.lsf.msk.msk.msrb.mxu0 %vm437_vm10, %v8020_v36 }
 0x1a3   :  { %1929 = vxpose.xlu0.b32.cont [7/14] (short) (narrow) %v3853_v5, 16  ;;  %1788 = vmatpush.msrb.mxu1 %v559_v11  ;;  %v553_v11 = vld [vmem:[%s7769_s8 + $0xa8] sm:$0xff] }
 0x1a4   :  { %4166 = vmatpush.lsf.msk.msk.msrb.mxu2 %vm436_vm11, %v8020_v36  ;;  %4182 = vmatpush.lsf.msk.msk.msrb.mxu0 %vm436_vm11, %v8020_v36  ;;  %v546_v36 = vld [vmem:[%s7769_s8 + $0x70] sm:$0xff] }
 0x1a5   :  { %v1288_v27 = vpop.f32.mrf.mxu0  ;;  %1678 = vmatpush.msrb.mxu3 %v546_v36  ;;  %1789 = vmatpush.msrb.mxu1 %v558_v26  ;;  %v8049_v36 = vld [vmem:[#allocation141_spill] sm:$0xff]  ;;  %v552_v26 = vld [vmem:[%s7769_s8 + $0xa0] sm:$0xff] }
 0x1a6   :  { %4148 = vllmr.2.mxu2  ;;  %3913 = vmatmul.msk.f32.gmra.mxu3 %vm1312_vm2, %v1288_v27  ;;  %v423_v5 = vpop.permute.xlu1 %422 }
 0x1a7   :  { %3943 = vmatmul.msk.f32.gmra.mxu2 %vm1312_vm2, %v1288_v27  ;;  %1679 = vmatpush.msrb.mxu3 %v545_v8  ;;  %vm461_vm14 = vcmp.eq.s32.totalorder %v4411_v52, %v423_v5  ;;  %v426_v8 = vpop.permute.xlu2 %425 }
 0x1a8   :  { %4126 = vllmr.2.mxu0  ;;  %v420_v62 = vpop.permute.xlu0 %419  ;;  %vm462_vm15 = vcmp.eq.s32.totalorder %v4411_v52, %v426_v8  ;;  %v550_v8 = vld [vmem:[%s7769_s8 + $0x90] sm:$0xff] }
 0x1a9   :  { %3929 = vmatmul.msk.f32.gmra.mxu0 %vm1312_vm2, %v8047_v29  ;;  %vm460_vm13 = vcmp.eq.s32.totalorder %v4411_v52, %v420_v62  ;;  %1680 = vmatpush.msrb.mxu3 %v544_v20  ;;  %v3856_v29 = vsel %vm461_vm14, 1.0, %v7869_v31  ;;  %v556_v62 = vld [vmem:[%s7769_s8 + $0xc0] sm:$0xff] }
 0x1aa   :  { %v3855_v18 = vsel %vm460_vm13, 1.0, %v7869_v31 }
 0x1ab   :  { %1930 = vxpose.xlu0.b32.cont [8/14] (short) (narrow) %v3854_v57, 16  ;;  %1681 = vmatpush.msrb.mxu3 %v543_v14  ;;  %v557_v57 = vld [vmem:[%s7769_s8 + $0xc8] sm:$0xff] }
 0x1ac   :  { %1790 = vmatpush.msrb.mxu1 %v557_v57  ;;  %v537_v14 = vld [vmem:[%s7769_s8 + $0x28] sm:$0xff]  ;;  %v551_v57 = vld [vmem:[%s7769_s8 + $0x98] sm:$0xff] }
 0x1ad   :  { %v1291_v54 = vpop.f32.mrf.mxu0  ;;  %1682 = vmatpush.msrb.mxu3 %v542_v46  ;;  %v536_v46 = vld [vmem:[%s7769_s8 + $0x20] sm:$0xff] }
 0x1ae   :  { %3914 = vmatmul.msk.f32.gmra.mxu3 %vm1312_vm2, %v1291_v54  ;;  %1791 = vmatpush.msrb.mxu1 %v556_v62  ;;  %v533_v62 = vld [vmem:[%s7769_s8 + $0x8] sm:$0xff] }
 0x1af   :  { %3944 = vmatmul.msk.f32.gmra.mxu2 %vm1312_vm2, %v1291_v54  ;;  %1683 = vmatpush.msrb.mxu3 %v541_v58  ;;  %v555_v54 = vld [vmem:[%s7769_s8 + $0xb8] sm:$0xff] }
 0x1b0   :  { %1792 = vmatpush.msrb.mxu1 %v555_v54  ;;  %v429_v5 = vpop.permute.xlu0 %428  ;;  %v535_v58 = vld [vmem:[%s7769_s8 + $0x18] sm:$0xff]  ;;  %v532_v54 = vld [vmem:[%s7769_s8] sm:$0xff] }
 0x1b1   :  { %3930 = vmatmul.msk.f32.gmra.mxu0 %vm1312_vm2, %v8048_v35  ;;  %1684 = vmatpush.msrb.mxu3 %v540_v28  ;;  %v8050_v35 = vld [vmem:[#allocation146_spill] sm:$0xff]  ;;  %vm463_vm1 = vcmp.eq.s32.totalorder %v4411_v52, %v429_v5  ;;  %v534_v28 = vld [vmem:[%s7769_s8 + $0x10] sm:$0xff] }
 0x1b2   :  { %1793 = vmatpush.msrb.mxu1 %v554_v34  ;;  %v548_v34 = vld [vmem:[%s7769_s8 + $0x80] sm:$0xff] }
 0x1b3   :  { %1931 = vxpose.xlu0.b32.cont [9/14] (short) (narrow) %v3855_v18, 16  ;;  %1685 = vmatpush.msrb.mxu3 %v539_v16  ;;  %v3857_v18 = vsel %vm462_vm15, 1.0, %v7869_v31  ;;  %v8051_v16 = vld [vmem:[#allocation153_spill] sm:$0xff] }
 0x1b4   :  { %1794 = vmatpush.msrb.mxu1 %v553_v11 }
 0x1b5   :  { %v1294_v27 = vpop.f32.mrf.mxu0  ;;  %1686 = vmatpush.msrb.mxu3 %v538_v30  ;;  %v432_v30 = vpop.permute.xlu1 %431 }
 0x1b6   :  { %3915 = vmatmul.msk.f32.gmra.mxu3 %vm1312_vm2, %v1294_v27  ;;  %1795 = vmatpush.msrb.mxu1 %v552_v26  ;;  %vm464_vm3 = vcmp.eq.s32.totalorder %v4411_v52, %v432_v30 }
 0x1b7   :  { %3945 = vmatmul.msk.f32.gmra.mxu2 %vm1312_vm2, %v1294_v27  ;;  %1687 = vmatpush.msrb.mxu3 %v537_v14 }
 0x1b8   :  { %1796 = vmatpush.msrb.mxu1 %v551_v57  ;;  %v8053_v57 = vld [vmem:[#allocation18_spill] sm:$0xff] }
 0x1b9   :  { %3931 = vmatmul.msk.f32.gmra.mxu0 %vm1312_vm2, %v8049_v36  ;;  %1688 = vmatpush.msrb.mxu3 %v536_v46  ;;  %v3858_v36 = vsel %vm463_vm1, 1.0, %v7869_v31  ;;  %v435_v46 = vpop.permute.xlu2 %434 }
 0x1ba   :  { %1797 = vmatpush.msrb.mxu1 %v550_v8  ;;  %vm465_vm4 = vcmp.eq.s32.totalorder %v4411_v52, %v435_v46  ;;  %v8058_v46 = vld [vmem:[#allocation36_spill] sm:$0xff] }
 0x1bb   :  { %1932 = vxpose.xlu0.b32.cont [10/14] (short) (narrow) %v3856_v29, 16  ;;  %1689 = vmatpush.msrb.mxu3 %v535_v58  ;;  %v1423_v29 = vpop.f32.mrf.mxu1  ;;  %v3860_v5 = vsel %vm465_vm4, 1.0, %v7869_v31 }
 0x1bd   :  { %v1297_v20 = vpop.f32.mrf.mxu0  ;;  %1690 = vmatpush.msrb.mxu3 %v534_v28 }
 0x1be   :  { %3916 = vmatmul.msk.f32.gmra.mxu3 %vm1312_vm2, %v1297_v20 }
 0x1bf   :  { %3946 = vmatmul.msk.f32.gmra.mxu2 %vm1312_vm2, %v1297_v20  ;;  %1691 = vmatpush.msrb.mxu3 %v533_v62  ;;  %v549_v20 = vld [vmem:[%s7769_s8 + $0x88] sm:$0xff] }
 0x1c0   :  { %1798 = vmatpush.msrb.mxu1 %v549_v20 }
 0x1c1   :  { %3932 = vmatmul.msk.f32.gmra.mxu0 %vm1312_vm2, %v8050_v35  ;;  %1692 = vmatpush.msrb.mxu3 %v532_v54  ;;  %v8056_v54 = vld [vmem:[#allocation27_spill] sm:$0xff] }
 0x1c2   :  { %1799 = vmatpush.msrb.mxu1 %v548_v34  ;;  %v8057_v34 = vld [vmem:[#allocation28_spill] sm:$0xff] }
 0x1c3   :  { %1933 = vxpose.xlu0.b32.cont [11/14] (short) (narrow) %v3857_v18, 16  ;;  %v3859_v18 = vsel %vm464_vm3, 1.0, %v7869_v31  ;;  %v1426_v35 = vpop.f32.mrf.mxu1  ;;  %v8054_v31 = vld [vmem:[#allocation23_spill] sm:$0xff] }
 0x1c4   :  { %v1621_v20 = vmul.f32 %v1426_v35, %v8056_v54 }
 0x1c5   :  { %v1300_v27 = vpop.f32.mrf.mxu0 }
 0x1c6   :  { %3917 = vmatmul.msk.f32.gmra.mxu3 %vm1312_vm2, %v1300_v27 }
 0x1c7   :  { %3947 = vmatmul.msk.f32.gmra.mxu2 %vm1312_vm2, %v1300_v27 }
 0x1c9   :  { %3933 = vmatmul.msk.f32.gmra.mxu0 %vm1312_vm2, %v8051_v16  ;;  %v1619_v16 = vmul.f32 %v1423_v29, %v8054_v31  ;;  %v8062_v31 = vld [vmem:[#allocation44_spill] sm:$0xff] }
 0x1cb   :  { %1934 = vxpose.xlu0.b32.cont [12/14] (short) (narrow) %v3858_v36, 16  ;;  %v1429_v58 = vpop.f32.mrf.mxu1 }
 0x1cd   :  { %v1303_v14 = vpop.f32.mrf.mxu0 }
 0x1ce   :  { %3918 = vmatmul.msk.f32.gmra.mxu3 %vm1312_vm2, %v1303_v14 }
 0x1cf   :  { %3948 = vmatmul.msk.f32.gmra.mxu2 %vm1312_vm2, %v1303_v14 }
 0x1d1   :  { %3934 = vmatmul.msk.f32.gmra.mxu0 %vm1312_vm2, %v5809_v6  ;;  %v8052_v6 = vld [vmem:[#allocation17_spill] sm:$0xff] }
 0x1d2   :  { %v1617_v52 = vmul.f32 %v6238_v51, %v8052_v6 }
 0x1d3   :  { %1935 = vxpose.xlu0.b32.cont [13/14] (short) (narrow) %v3859_v18, 16  ;;  %v1432_v27 = vpop.f32.mrf.mxu1 }
 0x1d5   :  { %v1306_v11 = vpop.f32.mrf.mxu0 }
 0x1d6   :  { %3919 = vmatmul.msk.f32.gmra.mxu3 %vm1312_vm2, %v1306_v11 }
 0x1d7   :  { %3949 = vmatmul.msk.f32.gmra.mxu2 %vm1312_vm2, %v1306_v11  ;;  %v1623_v11 = vmul.f32 %v1429_v58, %v8058_v46  ;;  %v8065_v46 = vld [vmem:[#allocation114_spill] sm:$0xff] }
 0x1d9   :  { %3935 = vmatmul.msk.f32.gmra.mxu0 %vm1312_vm2, %v5859_v50  ;;  %v8055_v50 = vld [vmem:[#allocation24_spill] sm:$0xff] }
 0x1db   :  { %1936 = vxpose.xlu0.b32.end [14/14] (short) (narrow) %v3860_v5, 16  ;;  %v1435_v30 = vpop.f32.mrf.mxu1 }
 0x1dd   :  { %v1309_v26 = vpop.f32.mrf.mxu0 }
 0x1de   :  { %3920 = vmatmul.msk.f32.gmra.mxu3 %vm1312_vm2, %v1309_v26 }
 0x1df   :  { %3950 = vmatmul.msk.f32.gmra.mxu2 %vm1312_vm2, %v1309_v26  ;;  %v8059_v26 = vld [vmem:[#allocation37_spill] sm:$0xff] }
 0x1e3   :  { %v1438_v18 = vpop.f32.mrf.mxu1 }
 0x1e5   :  { %v1527_v28 = vpop.f32.mrf.mxu0 }
 0x1e6   :  { %1693 = vmatmul.f32.vlgmr.msrb.gmra.mxu3 %v1617_v52  ;;  %v1618_v36 = vmul.f32 %v1527_v28, %v8053_v57  ;;  %v8060_v52 = vld [vmem:[#allocation104_spill] sm:$0xff]  ;;  %v8061_v57 = vld [vmem:[#allocation42_spill] sm:$0xff] }
 0x1e7   :  { %v729_v35 = vmul.f32 %v4628_v7, %v8061_v57 }
 0x1e8   :  { %1800 = vmatmul.f32.vlgmr.msrb.gmra.mxu1 %v1618_v36 }
 0x1e9   :  { %v789_v58 = vmax.f32 %v729_v35, 0.0 }
 0x1eb   :  { %v1441_v36 = vpop.f32.mrf.mxu1 }
 0x1ed   :  { %v1530_v62 = vpop.f32.mrf.mxu0 }
 0x1ee   :  { %1696 = vmatmul.f32.gmra.mxu3 %v1619_v16  ;;  %v1620_v8 = vmul.f32 %v1530_v62, %v8055_v50  ;;  %v1625_v16 = vmul.f32 %v1432_v27, %v8062_v31  ;;  %v730_v62 = vmul.f32 %v4630_v53, %v8061_v57 }
 0x1f0   :  { %1803 = vmatmul.f32.gmra.mxu1 %v1620_v8  ;;  %v8063_v8 = vld [vmem:[#allocation45_spill] sm:$0xff] }
 0x1f5   :  { %v1533_v14 = vpop.f32.mrf.mxu0 }
 0x1f6   :  { %1699 = vmatmul.f32.gmra.mxu3 %v1621_v20  ;;  %v1622_v51 = vmul.f32 %v1533_v14, %v8057_v34  ;;  %v8064_v20 = vld [vmem:[#allocation16_spill] sm:$0xff] }
 0x1f7   :  { %v1004_v14 = vmul.f32 %v4649_v17, %v8064_v20  ;;  %v1005_v27 = vmul.f32 %v4651_v22, %v8064_v20 }
 0x1f8   :  { %1806 = vmatmul.f32.gmra.mxu1 %v1622_v51  ;;  %v790_v51 = vmax.f32 %v730_v62, 0.0 }
 0x1fd   :  { %v1536_v5 = vpop.f32.mrf.mxu0 }
 0x1fe   :  { %1702 = vmatmul.f32.gmra.mxu3 %v1623_v11  ;;  %v1624_v29 = vmul.f32 %v1536_v5, %v8059_v26  ;;  %v1064_v5 = vmul.f32 %v1004_v14, %v789_v58  ;;  %v8069_v14 = vld [vmem:[#allocation57_spill] sm:$0xff] }
 0x200   :  { %1809 = vmatmul.f32.gmra.mxu1 %v1624_v29  ;;  %v1627_v26 = vmul.f32 %v1435_v30, %v1064_v5  ;;  %v1065_v29 = vmul.f32 %v1005_v27, %v790_v51  ;;  %v1008_v30 = vmul.f32 %v4649_v17, %v8069_v14  ;;  %v8070_v51 = vld [vmem:[#allocation53_spill] sm:$0xff] }
 0x201   :  { %v1471_v6 = vpop.f32.mrf.mxu3 }
 0x202   :  { %v6314_v28 = vmul.f32 %v1471_v6, %v8060_v52  ;;  %v1444_v6 = vpop.f32.mrf.mxu1 }
 0x206   :  { %v1539_v50 = vpop.f32.mrf.mxu0  ;;  %1705 = vmatmul.f32.gmra.mxu3 %v1625_v16  ;;  %v8066_v16 = vld [vmem:[#allocation119_spill] sm:$0xff] }
 0x207   :  { %v1626_v54 = vmul.f32 %v1539_v50, %v8063_v8  ;;  %v8067_v8 = vld [vmem:[#allocation52_spill] sm:$0xff] }
 0x208   :  { %v1629_v62 = vmul.f32 %v1438_v18, %v8067_v8  ;;  %v1009_v18 = vmul.f32 %v4651_v22, %v8069_v14 }
 0x209   :  { %1812 = vmatmul.f32.gmra.mxu1 %v1626_v54  ;;  %v1474_v34 = vpop.f32.mrf.mxu3  ;;  %v8068_v54 = vld [vmem:[#allocation21_spill] sm:$0xff] }
 0x20a   :  { %v6325_v11 = vmul.f32 %v1474_v34, %v8065_v46  ;;  %v733_v34 = vmul.f32 %v4628_v7, %v8068_v54  ;;  %v734_v5 = vmul.f32 %v4630_v53, %v8068_v54  ;;  %v1447_v27 = vpop.f32.mrf.mxu1 }
 0x20e   :  { %v1542_v52 = vpop.f32.mrf.mxu0  ;;  %1708 = vmatmul.f32.gmra.mxu3 %v1627_v26  ;;  %v793_v26 = vmax.f32 %v733_v34, 0.0 }
 0x20f   :  { %v1628_v35 = vmul.f32 %v1542_v52, %v1065_v29  ;;  %v8071_v52 = vld [vmem:[#allocation121_spill] sm:$0xff] }
 0x211   :  { %1815 = vmatmul.f32.gmra.mxu1 %v1628_v35  ;;  %v1477_v31 = vpop.f32.mrf.mxu3 }
 0x212   :  { %v6330_v50 = vmul.f32 %v1477_v31, %v8066_v16  ;;  %v1068_v31 = vmul.f32 %v1008_v30, %v793_v26  ;;  %v8072_v16 = vld [vmem:[#allocation56_spill] sm:$0xff]  ;;  %v1450_v30 = vpop.f32.mrf.mxu1  ;;  %v8074_v26 = vld [vmem:[#allocation131_spill] sm:$0xff] }
 0x213   :  { %v735_v8 = vmul.f32 %v4628_v7, %v8072_v16 }
 0x214   :  { %v1631_v12 = vmul.f32 %v1441_v36, %v1068_v31  ;;  %v1011_v36 = vmul.f32 %v4651_v22, %v8073_v55 }
 0x215   :  { %v795_v34 = vmax.f32 %v735_v8, 0.0  ;;  %v8075_v8 = vld [vmem:[#allocation137_spill] sm:$0xff] }
 0x216   :  { %v1545_v58 = vpop.f32.mrf.mxu0  ;;  %1711 = vmatmul.f32.gmra.mxu3 %v1629_v62  ;;  %v794_v62 = vmax.f32 %v734_v5, 0.0 }
 0x217   :  { %v1630_v46 = vmul.f32 %v1545_v58, %v8070_v51  ;;  %v736_v51 = vmul.f32 %v4630_v53, %v8072_v16  ;;  %v1070_v5 = vmul.f32 %v1010_v41, %v795_v34  ;;  %v8078_v34 = vld [vmem:[#allocation70_spill] sm:$0xff] }
 0x218   :  { %v1069_v58 = vmul.f32 %v1009_v18, %v794_v62 }
 0x219   :  { %1818 = vmatmul.f32.gmra.mxu1 %v1630_v46  ;;  %v1480_v29 = vpop.f32.mrf.mxu3  ;;  %v1633_v18 = vmul.f32 %v1444_v6, %v1070_v5  ;;  %v1014_v6 = vmul.f32 %v4649_v17, %v8078_v34  ;;  %v740_v5 = vmul.f32 %v4630_v53, %v8077_v39  ;;  %v8084_v17 = vld [vmem:[#allocation148_spill] sm:$0xff] }
 0x21a   :  { %v6343_v35 = vmul.f32 %v1480_v29, %v8071_v52  ;;  %v796_v52 = vmax.f32 %v736_v51, 0.0  ;;  %v8076_v51 = vld [vmem:[#allocation64_spill] sm:$0xff] }
 0x21b   :  { %v1635_v43 = vmul.f32 %v1447_v27, %v8076_v51  ;;  %v8080_v27 = vld [vmem:[#allocation69_spill] sm:$0xff] }
 0x21c   :  { %v1071_v31 = vmul.f32 %v1011_v36, %v796_v52  ;;  %v8079_v52 = vld [vmem:[#allocation63_spill] sm:$0xff] }
 0x21e   :  { %v1548_v19 = vpop.f32.mrf.mxu0  ;;  %1714 = vmatmul.f32.gmra.mxu3 %v1631_v12 }
 0x21f   :  { %v1632_v46 = vmul.f32 %v1548_v19, %v1069_v58 }
 0x221   :  { %1821 = vmatmul.f32.gmra.mxu1 %v1632_v46  ;;  %v1483_v29 = vpop.f32.mrf.mxu3  ;;  %v1453_v46 = vpop.f32.mrf.mxu1 }
 0x222   :  { %v6352_v49 = vmul.f32 %v1483_v29, %v8074_v26  ;;  %v739_v29 = vmul.f32 %v4628_v7, %v8077_v39  ;;  %v2053_v39 = vld [vmem:[%s7771_s12 + $0x138] sm:$0xff] }
 0x224   :  { %v799_v36 = vmax.f32 %v739_v29, 0.0 }
 0x226   :  { %v1551_v62 = vpop.f32.mrf.mxu0  ;;  %1717 = vmatmul.f32.gmra.mxu3 %v1633_v18 }
 0x227   :  { %v1634_v12 = vmul.f32 %v1551_v62, %v1071_v31  ;;  %v1015_v31 = vmul.f32 %v4651_v22, %v8078_v34  ;;  %v741_v62 = vmul.f32 %v4628_v7, %v8080_v27 }
 0x229   :  { %1824 = vmatmul.f32.gmra.mxu1 %v1634_v12  ;;  %v1486_v19 = vpop.f32.mrf.mxu3  ;;  %v8081_v12 = vld [vmem:[#allocation139_spill] sm:$0xff]  ;;  %v1456_v29 = vpop.f32.mrf.mxu1 }
 0x22a   :  { %v6357_v58 = vmul.f32 %v1486_v19, %v8075_v8  ;;  %v800_v8 = vmax.f32 %v740_v5, 0.0 }
 0x22c   :  { %v1075_v48 = vmul.f32 %v1015_v31, %v800_v8  ;;  %v8085_v8 = vld [vmem:[#allocation77_spill] sm:$0xff] }
 0x22e   :  { %v1554_v41 = vpop.f32.mrf.mxu0  ;;  %1720 = vmatmul.f32.gmra.mxu3 %v1635_v43  ;;  %v1074_v43 = vmul.f32 %v1014_v6, %v799_v36 }
 0x22f   :  { %v1636_v26 = vmul.f32 %v1554_v41, %v8079_v52  ;;  %v742_v41 = vmul.f32 %v4630_v53, %v8080_v27  ;;  %v801_v52 = vmax.f32 %v741_v62, 0.0 }
 0x230   :  { %v1637_v51 = vmul.f32 %v1450_v30, %v1074_v43  ;;  %v1017_v30 = vmul.f32 %v4651_v22, %v8082_v21  ;;  %v2056_v21 = vld [vmem:[%s7771_s12 + $0x150] sm:$0xff] }
 0x231   :  { %1827 = vmatmul.f32.gmra.mxu1 %v1636_v26  ;;  %v1489_v18 = vpop.f32.mrf.mxu3  ;;  %v802_v32 = vmax.f32 %v742_v41, 0.0  ;;  %v1459_v62 = vpop.f32.mrf.mxu1  ;;  %v8086_v41 = vld [vmem:[#allocation78_spill] sm:$0xff] }
 0x232   :  { %v6372_v19 = vmul.f32 %v1489_v18, %v8081_v12  ;;  %v1076_v18 = vmul.f32 %v1016_v45, %v801_v52  ;;  %v8083_v12 = vld [vmem:[#allocation144_spill] sm:$0xff]  ;;  %v1641_v45 = vmul.f32 %v1456_v29, %v8085_v8 }
 0x233   :  { %v1077_v53 = vmul.f32 %v1017_v30, %v802_v32 }
 0x234   :  { %v1639_v5 = vmul.f32 %v1453_v46, %v1076_v18  ;;  %v8088_v18 = vld [vmem:[#allocation83_spill] sm:$0xff] }
 0x236   :  { %v1557_v26 = vpop.f32.mrf.mxu0  ;;  %1723 = vmatmul.f32.gmra.mxu3 %v1637_v51 }
 0x237   :  { %v1638_v25 = vmul.f32 %v1557_v26, %v1075_v48  ;;  %v1572_v48 = vpop.f32.mrf.mxu2  ;;  %v8087_v26 = vld [vmem:[#allocation151_spill] sm:$0xff] }
 0x239   :  { %1830 = vmatmul.f32.gmra.mxu1 %v1638_v25  ;;  %v1492_v7 = vpop.f32.mrf.mxu3  ;;  %v1462_v46 = vpop.f32.mrf.mxu1 }
 0x23a   :  { %v6379_v6 = vmul.f32 %v1492_v7, %v8083_v12  ;;  %v1643_v12 = vmul.f32 %v1459_v62, %v8088_v18 }
 0x23e   :  { %v1560_v36 = vpop.f32.mrf.mxu0  ;;  %1726 = vmatmul.f32.gmra.mxu3 %v1639_v5  ;;  %v8089_v5 = vld [vmem:[#allocation84_spill] sm:$0xff] }
 0x23f   :  { %v1640_v31 = vmul.f32 %v1560_v36, %v1077_v53  ;;  %v1575_v32 = vpop.f32.mrf.mxu2 }
 0x241   :  { %1833 = vmatmul.f32.gmra.mxu1 %v1640_v31  ;;  %v1495_v43 = vpop.f32.mrf.mxu3  ;;  %v8090_v31 = vld [vmem:[#allocation85_spill] sm:$0xff] }
 0x242   :  { %v6384_v25 = vmul.f32 %v1495_v43, %v8084_v17  ;;  %v1645_v43 = vmul.f32 %v1462_v46, %v8090_v31  ;;  %v1465_v17 = vpop.f32.mrf.mxu1 }
 0x246   :  { %v1563_v51 = vpop.f32.mrf.mxu0  ;;  %1729 = vmatmul.f32.gmra.mxu3 %v1641_v45 }
 0x247   :  { %v1642_v52 = vmul.f32 %v1563_v51, %v8086_v41  ;;  %v1578_v8 = vpop.f32.mrf.mxu2  ;;  %v8091_v51 = vld [vmem:[#allocation86_spill] sm:$0xff] }
 0x249   :  { %1836 = vmatmul.f32.gmra.mxu1 %v1642_v52  ;;  %v1498_v22 = vpop.f32.mrf.mxu3 }
 0x24a   :  { %v6389_v7 = vmul.f32 %v1498_v22, %v8087_v26  ;;  %v8092_v22 = vld [vmem:[#allocation94_spill] sm:$0xff]  ;;  %v1468_v18 = vpop.f32.mrf.mxu1 }
 0x24b   :  { %v1647_v26 = vmul.f32 %v1465_v17, %v8092_v22 }
 0x24e   :  { %v1566_v30 = vpop.f32.mrf.mxu0  ;;  %1732 = vmatmul.f32.gmra.mxu3 %v1643_v12 }
 0x24f   :  { %v1644_v53 = vmul.f32 %v1566_v30, %v8089_v5  ;;  %v1581_v12 = vpop.f32.mrf.mxu2 }
 0x251   :  { %1839 = vmatmul.f32.gmra.mxu1 %v1644_v53  ;;  %v1501_v36 = vpop.f32.mrf.mxu3  ;;  %v8094_v53 = vld [vmem:[#allocation102_spill] sm:$0xff] }
 0x252   :  { %v6394_v29 = vmul.f32 %v1501_v36, %v5792_v2  ;;  %v8093_v2 = vld [vmem:[#allocation95_spill] sm:$0xff]  ;;  %v1649_v36 = vmul.f32 %v1468_v18, %v8094_v53 }
 0x253   :  { %v1648_v30 = vmul.f32 %v1572_v48, %v8093_v2  ;;  %v8096_v48 = vld [vmem:[#allocation105_spill] sm:$0xff]  ;;  %v8097_v2 = vld [vmem:[#allocation115_spill] sm:$0xff] }
 0x256   :  { %v1569_v45 = vpop.f32.mrf.mxu0  ;;  %1735 = vmatmul.f32.gmra.mxu3 %v1645_v43  ;;  %v8095_v43 = vld [vmem:[#allocation103_spill] sm:$0xff] }
 0x257   :  { %v1646_v41 = vmul.f32 %v1569_v45, %v8091_v51  ;;  %v1650_v45 = vmul.f32 %v1575_v32, %v8095_v43  ;;  %v1654_v32 = vmul.f32 %v1581_v12, %v8097_v2 }
 0x259   :  { %1842 = vmatmul.f32.gmra.mxu1 %v1646_v41  ;;  %v1504_v52 = vpop.f32.mrf.mxu3 }
 0x25a   :  { %v6399_v62 = vmul.f32 %v1504_v52, %v5841_v3  ;;  %v1584_v3 = vpop.f32.mrf.mxu2  ;;  %v1652_v52 = vmul.f32 %v1578_v8, %v8096_v48 }
 0x25e   :  { %1738 = vmatmul.f32.gmra.mxu3 %v1647_v26 }
 0x261   :  { %1845 = vmatmul.f32.gmra.mxu1 %v1648_v30  ;;  %v1507_v46 = vpop.f32.mrf.mxu3 }
 0x262   :  { %v6404_v5 = vmul.f32 %v1507_v46, %v5847_v59  ;;  %v1587_v59 = vpop.f32.mrf.mxu2 }
 0x265   :  { %v1801_v31 = vpop.f32.mrf.mxu1 }
 0x266   :  { %1741 = vmatmul.f32.gmra.mxu3 %v1649_v36 }
 0x269   :  { %1848 = vmatmul.f32.gmra.mxu1 %v1650_v45  ;;  %v1694_v51 = vpop.f32.mrf.mxu3 }
 0x26a   :  { %v6408_v17 = vadd.f32 %v1801_v31, %v1694_v51  ;;  %v1590_v53 = vpop.f32.mrf.mxu2 }
 0x26d   :  { %v1804_v41 = vpop.f32.mrf.mxu1 }
 0x26e   :  { %1744 = vmatmul.f32.gmra.mxu3 %v6314_v28  ;;  %v8098_v28 = vld [vmem:[#allocation120_spill] sm:$0xff] }
 0x26f   :  { %v1656_v8 = vmul.f32 %v1584_v3, %v8098_v28 }
 0x271   :  { %1851 = vmatmul.f32.gmra.mxu1 %v1652_v52  ;;  %v1697_v22 = vpop.f32.mrf.mxu3 }
 0x272   :  { %v6412_v26 = vadd.f32 %v1804_v41, %v1697_v22  ;;  %v1593_v45 = vpop.f32.mrf.mxu2 }
 0x275   :  { %v1807_v18 = vpop.f32.mrf.mxu1 }
 0x276   :  { %1747 = vmatmul.f32.gmra.mxu3 %v6325_v11  ;;  %v8099_v11 = vld [vmem:[#allocation122_spill] sm:$0xff] }
 0x277   :  { %v1658_v12 = vmul.f32 %v1587_v59, %v8099_v11  ;;  %v8103_v11 = vld [vmem:[#allocation145_spill] sm:$0xff] }
 0x279   :  { %1854 = vmatmul.f32.gmra.mxu1 %v1654_v32  ;;  %v1700_v30 = vpop.f32.mrf.mxu3 }
 0x27a   :  { %v6416_v46 = vadd.f32 %v1807_v18, %v1700_v30  ;;  %v1596_v3 = vpop.f32.mrf.mxu2 }
 0x27d   :  { %v1810_v36 = vpop.f32.mrf.mxu1 }
 0x27e   :  { %1750 = vmatmul.f32.gmra.mxu3 %v6330_v50  ;;  %v8100_v50 = vld [vmem:[#allocation132_spill] sm:$0xff] }
 0x27f   :  { %v1660_v22 = vmul.f32 %v1590_v53, %v8100_v50 }
 0x281   :  { %1857 = vmatmul.f32.gmra.mxu1 %v1656_v8  ;;  %v1703_v31 = vpop.f32.mrf.mxu3 }
 0x282   :  { %v6420_v43 = vadd.f32 %v1810_v36, %v1703_v31  ;;  %v1599_v36 = vpop.f32.mrf.mxu2 }
 0x286   :  { %v1813_v51 = vpop.f32.mrf.mxu1  ;;  %1753 = vmatmul.f32.gmra.mxu3 %v6343_v35  ;;  %v8101_v35 = vld [vmem:[#allocation138_spill] sm:$0xff] }
 0x287   :  { %v1662_v59 = vmul.f32 %v1593_v45, %v8101_v35 }
 0x289   :  { %1860 = vmatmul.f32.gmra.mxu1 %v1658_v12  ;;  %v1706_v41 = vpop.f32.mrf.mxu3 }
 0x28a   :  { %v6424_v48 = vadd.f32 %v1813_v51, %v1706_v41  ;;  %v1602_v31 = vpop.f32.mrf.mxu2 }
 0x28e   :  { %v1816_v52 = vpop.f32.mrf.mxu1  ;;  %1756 = vmatmul.f32.gmra.mxu3 %v6352_v49  ;;  %v8102_v49 = vld [vmem:[#allocation140_spill] sm:$0xff] }
 0x28f   :  { %v1664_v53 = vmul.f32 %v1596_v3, %v8102_v49  ;;  %v8105_v3 = vld [vmem:[#allocation152_spill] sm:$0xff] }
 0x291   :  { %1863 = vmatmul.f32.gmra.mxu1 %v1660_v22  ;;  %v1709_v18 = vpop.f32.mrf.mxu3 }
 0x292   :  { %v6428_v2 = vadd.f32 %v1816_v52, %v1709_v18  ;;  %v1605_v12 = vpop.f32.mrf.mxu2  ;;  %v8104_v52 = vld [vmem:[#allocation149_spill] sm:$0xff] }
 0x293   :  { %v1668_v50 = vmul.f32 %v1602_v31, %v8104_v52  ;;  %v1670_v18 = vmul.f32 %v1605_v12, %v8105_v3 }
 0x296   :  { %v6430_v32 = vpop.f32.mrf.mxu1  ;;  %1759 = vmatmul.f32.gmra.mxu3 %v6357_v58  ;;  %v1666_v58 = vmul.f32 %v1599_v36, %v8103_v11 }
 0x299   :  { %1866 = vmatmul.f32.gmra.mxu1 %v1662_v59  ;;  %v6434_v30 = vpop.f32.mrf.mxu3 }
 0x29a   :  { %v1608_v35 = vpop.f32.mrf.mxu2 }
 0x29b   :  { %v1672_v36 = vmul.f32 %v1608_v35, %v5794_v47 }
 0x29e   :  { %v6436_v28 = vpop.f32.mrf.mxu1  ;;  %1762 = vmatmul.f32.gmra.mxu3 %v6372_v19 }
 0x2a1   :  { %1869 = vmatmul.f32.gmra.mxu1 %v1664_v53  ;;  %v1715_v8 = vpop.f32.mrf.mxu3 }
 0x2a6   :  { %v1825_v51 = vpop.f32.mrf.mxu1  ;;  %1765 = vmatmul.f32.gmra.mxu3 %v6379_v6 }
 0x2a9   :  { %1872 = vmatmul.f32.gmra.mxu1 %v1666_v58  ;;  %v1718_v45 = vpop.f32.mrf.mxu3 }
 0x2ae   :  { %v1828_v41 = vpop.f32.mrf.mxu1  ;;  %1768 = vmatmul.f32.gmra.mxu3 %v6384_v25  ;;  %v1611_v25 = vpop.f32.mrf.mxu2 }
 0x2af   :  { %v1674_v31 = vmul.f32 %v1611_v25, %v5843_v42 }
 0x2b1   :  { %1875 = vmatmul.f32.gmra.mxu1 %v1668_v50  ;;  %v1721_v19 = vpop.f32.mrf.mxu3 }
 0x2b6   :  { %v1831_v22 = vpop.f32.mrf.mxu1  ;;  %1771 = vmatmul.f32.gmra.mxu3 %v6389_v7  ;;  %v1614_v11 = vpop.f32.mrf.mxu2 }
 0x2b7   :  { %v1676_v12 = vmul.f32 %v1614_v11, %v5849_v63 }
 0x2b9   :  { %1878 = vmatmul.f32.gmra.mxu1 %v1670_v18  ;;  %v1724_v6 = vpop.f32.mrf.mxu3 }
 0x2ba   :  { %v1832_v63 = vadd.f32 %v1831_v22, %v1724_v6 }
 0x2be   :  { %v1834_v59 = vpop.f32.mrf.mxu1  ;;  %1774 = vmatmul.f32.gmra.mxu3 %v6394_v29 }
 0x2c1   :  { %1881 = vmatmul.f32.gmra.mxu1 %v1672_v36  ;;  %v1727_v49 = vpop.f32.mrf.mxu3 }
 0x2c6   :  { %v1837_v53 = vpop.f32.mrf.mxu1  ;;  %1777 = vmatmul.f32.gmra.mxu3 %v6399_v62 }
 0x2c9   :  { %1884 = vmatmul.f32.gmra.mxu1 %v1674_v31  ;;  %v1730_v7 = vpop.f32.mrf.mxu3  ;;  %v1829_v31 = vadd.f32 %v1828_v41, %v1721_v19 }
 0x2ca   :  { %v1838_v42 = vadd.f32 %v1837_v53, %v1730_v7  ;;  %v1820_v53 = vadd.f32 %v6430_v32, %v6434_v30 }
 0x2ce   :  { %v1840_v58 = vpop.f32.mrf.mxu1  ;;  %1780 = vmatmul.f32.gmra.mxu3 %v6404_v5  ;;  %v1835_v5 = vadd.f32 %v1834_v59, %v1727_v49 }
 0x2d1   :  { %1887 = vmatmul.f32.gmra.mxu1 %v1676_v12  ;;  %v1733_v29 = vpop.f32.mrf.mxu3  ;;  %v1826_v12 = vadd.f32 %v1825_v51, %v1718_v45 }
 0x2d2   :  { %v1841_v62 = vadd.f32 %v1840_v58, %v1733_v29  ;;  %v1823_v58 = vadd.f32 %v6436_v28, %v1715_v8 }
 0x2d6   :  { %v1843_v52 = vpop.f32.mrf.mxu1 }
 0x2d9   :  { %v1736_v47 = vpop.f32.mrf.mxu3 }
 0x2da   :  { %v1844_v35 = vadd.f32 %v1843_v52, %v1736_v47 }
 0x2de   :  { %v1846_v50 = vpop.f32.mrf.mxu1 }
 0x2e1   :  { %v1739_v3 = vpop.f32.mrf.mxu3 }
 0x2e2   :  { %v1847_v18 = vadd.f32 %v1846_v50, %v1739_v3 }
 0x2e4   :  { %1962 = vmatpush.msra.mxu2 %v1847_v18 }
 0x2e6   :  { %v6452_v36 = vpop.f32.mrf.mxu1  ;;  %1963 = vmatpush.msra.mxu2 %v1844_v35 }
 0x2e8   :  { %1964 = vmatpush.msra.mxu2 %v1841_v62 }
 0x2e9   :  { %v6454_v25 = vpop.f32.mrf.mxu3 }
 0x2ea   :  { %1965 = vmatpush.msra.mxu2 %v1838_v42 }
 0x2ec   :  { %1966 = vmatpush.msra.mxu2 %v1835_v5 }
 0x2ee   :  { %v6456_v11 = vpop.f32.mrf.mxu1  ;;  %1967 = vmatpush.msra.mxu2 %v1832_v63 }
 0x2f0   :  { %1968 = vmatpush.msra.mxu2 %v1829_v31 }
 0x2f1   :  { %v1745_v52 = vpop.f32.mrf.mxu3 }
 0x2f2   :  { %1969 = vmatpush.msra.mxu2 %v1826_v12 }
 0x2f4   :  { %1970 = vmatpush.msra.mxu2 %v1823_v58 }
 0x2f6   :  { %v1855_v7 = vpop.f32.mrf.mxu1  ;;  %1971 = vmatpush.msra.mxu2 %v1820_v53 }
 0x2f8   :  { %1972 = vmatpush.msra.mxu2 %v6428_v2 }
 0x2f9   :  { %v1748_v22 = vpop.f32.mrf.mxu3 }
 0x2fa   :  { %1973 = vmatpush.msra.mxu2 %v6424_v48 }
 0x2fc   :  { %1974 = vmatpush.msra.mxu2 %v6420_v43 }
 0x2fe   :  { %v1858_v41 = vpop.f32.mrf.mxu1  ;;  %1975 = vmatpush.msra.mxu2 %v6416_v46 }
 0x300   :  { %1976 = vmatpush.msra.mxu2 %v6412_v26 }
 0x301   :  { %v1751_v28 = vpop.f32.mrf.mxu3 }
 0x302   :  { %1977 = vmatpush.msra.mxu2 %v6408_v17  ;;  %v1859_v44 = vadd.f32 %v1858_v41, %v1751_v28  ;;  %v8110_v41 = vld [vmem:[#allocation4_spill] sm:$0xff]  ;;  %v8111_v28 = vld [vmem:[#allocation5_spill] sm:$0xff] }
 0x303   :  { %4149 = vmatmul.lmr.bf16.vlgmr.msra.gmra.2.mxu2 }
 0x306   :  { %v1861_v32 = vpop.f32.mrf.mxu1 }
 0x309   :  { %v1754_v30 = vpop.f32.mrf.mxu3 }
 0x30a   :  { %v1862_v56 = vadd.f32 %v1861_v32, %v1754_v30  ;;  %v8112_v30 = vld [vmem:[#allocation6_spill] sm:$0xff] }
 0x30b   :  { %4150 = vmatmul.lmr.bf16.gmra.2.mxu2 }
 0x30e   :  { %v1864_v8 = vpop.f32.mrf.mxu1 }
 0x311   :  { %v1757_v51 = vpop.f32.mrf.mxu3 }
 0x312   :  { %v1865_v53 = vadd.f32 %v1864_v8, %v1757_v51  ;;  %v8113_v8 = vld [vmem:[#allocation7_spill] sm:$0xff]  ;;  %v8114_v51 = vld [vmem:[#allocation9_spill] sm:$0xff] }
 0x316   :  { %v1867_v2 = vpop.f32.mrf.mxu1 }
 0x319   :  { %v1760_v45 = vpop.f32.mrf.mxu3 }
 0x31a   :  { %v1868_v58 = vadd.f32 %v1867_v2, %v1760_v45  ;;  %v8115_v2 = vld [vmem:[#allocation10_spill] sm:$0xff]  ;;  %v8116_v45 = vld [vmem:[#allocation11_spill] sm:$0xff] }
 0x31e   :  { %v1870_v19 = vpop.f32.mrf.mxu1 }
 0x321   :  { %v1763_v48 = vpop.f32.mrf.mxu3 }
 0x322   :  { %v1871_v12 = vadd.f32 %v1870_v19, %v1763_v48  ;;  %v8117_v19 = vld [vmem:[#allocation13_spill] sm:$0xff]  ;;  %v8118_v48 = vld [vmem:[#allocation15_spill] sm:$0xff] }
 0x326   :  { %v1873_v6 = vpop.f32.mrf.mxu1 }
 0x329   :  { %v1766_v43 = vpop.f32.mrf.mxu3 }
 0x32a   :  { %v1874_v31 = vadd.f32 %v1873_v6, %v1766_v43  ;;  %v1850_v6 = vadd.f32 %v6452_v36, %v6454_v25  ;;  %v8108_v36 = vld [vmem:[#allocation2_spill] sm:$0xff]  ;;  %v8109_v25 = vld [vmem:[#allocation3_spill] sm:$0xff] }
 0x32b   :  { %v8119_v43 = vld [vmem:[#allocation14_spill] sm:$0xff] }
 0x32e   :  { %v1876_v59 = vpop.f32.mrf.mxu1 }
 0x331   :  { %v1769_v49 = vpop.f32.mrf.mxu3 }
 0x332   :  { %v1877_v63 = vadd.f32 %v1876_v59, %v1769_v49  ;;  %v8120_v59 = vld [vmem:[#allocation32_spill] sm:$0xff]  ;;  %v2010_v49 = vld [vmem:[%s7770_s11] sm:$0xff] }
 0x333   :  { %2788 = vmatpush.msra.mxu0 %v2010_v49 }
 0x336   :  { %v1879_v46 = vpop.f32.mrf.mxu1 }
 0x339   :  { %v1772_v29 = vpop.f32.mrf.mxu3 }
 0x33a   :  { %v1880_v5 = vadd.f32 %v1879_v46, %v1772_v29  ;;  %v6468_v46 = vpop.trf.xlu0  ;;  %v2011_v29 = vld [vmem:[%s7770_s11 + $0x8] sm:$0xff] }
 0x33b   :  { %8106 = vst [vmem:[#allocation109_spill] sm:$0xff] %v6468_v46 }
 0x33e   :  { %v1882_v26 = vpop.f32.mrf.mxu1 }
 0x341   :  { %v1775_v47 = vpop.f32.mrf.mxu3 }
 0x342   :  { %v1883_v42 = vadd.f32 %v1882_v26, %v1775_v47  ;;  %v1853_v26 = vadd.f32 %v6456_v11, %v1745_v52  ;;  %v6474_v32 = vpop.trf.xlu0  ;;  %v2012_v47 = vld [vmem:[%s7770_s11 + $0x10] sm:$0xff] }
 0x343   :  { %8107 = vst [vmem:[#allocation118_spill] sm:$0xff] %v6474_v32  ;;  %3002 = vmatpush.msra.mxu1 %v2012_v47 }
 0x346   :  { %v1885_v50 = vpop.f32.mrf.mxu1 }
 0x349   :  { %v1778_v17 = vpop.f32.mrf.mxu3 }
 0x34a   :  { %v1886_v62 = vadd.f32 %v1885_v50, %v1778_v17  ;;  %v1856_v50 = vadd.f32 %v1855_v7, %v1748_v22  ;;  %v8121_v17 = vld [vmem:[#allocation41_spill] sm:$0xff] }
 0x34e   :  { %v1888_v3 = vpop.f32.mrf.mxu1 }
 0x351   :  { %v1781_v18 = vpop.f32.mrf.mxu3 }
 0x352   :  { %v1889_v35 = vadd.f32 %v1888_v3, %v1781_v18  ;;  %v8122_v3 = vld [vmem:[#allocation51_spill] sm:$0xff] }
 0x353   :  { %v8123_v18 = vld [vmem:[#allocation59_spill] sm:$0xff] }
 0x354   :  { %1987 = vmatpush.msra.mxu3 %v1889_v35  ;;  %v8124_v35 = vld [vmem:[#allocation62_spill] sm:$0xff] }
 0x356   :  { %1988 = vmatpush.msra.mxu3 %v1886_v62 }
 0x358   :  { %1989 = vmatpush.msra.mxu3 %v1883_v42  ;;  %v8125_v42 = vld [vmem:[#allocation71_spill] sm:$0xff] }
 0x35a   :  { %1990 = vmatpush.msra.mxu3 %v1880_v5 }
 0x35c   :  { %1991 = vmatpush.msra.mxu3 %v1877_v63  ;;  %v8126_v63 = vld [vmem:[#allocation74_spill] sm:$0xff] }
 0x35e   :  { %1992 = vmatpush.msra.mxu3 %v1874_v31 }
 0x360   :  { %1993 = vmatpush.msra.mxu3 %v1871_v12  ;;  %v8127_v12 = vld [vmem:[#allocation72_spill] sm:$0xff] }
 0x362   :  { %1994 = vmatpush.msra.mxu3 %v1868_v58 }
 0x364   :  { %1995 = vmatpush.msra.mxu3 %v1865_v53  ;;  %v8128_v53 = vld [vmem:[#allocation91_spill] sm:$0xff] }
 0x366   :  { %1996 = vmatpush.msra.mxu3 %v1862_v56 }
 0x368   :  { %1997 = vmatpush.msra.mxu3 %v1859_v44 }
 0x36a   :  { %1998 = vmatpush.msra.mxu3 %v1856_v50 }
 0x36c   :  { %1999 = vmatpush.msra.mxu3 %v1853_v26  ;;  %v8129_v26 = vld [vmem:[#allocation100_spill] sm:$0xff] }
 0x36e   :  { %2000 = vmatpush.msra.mxu3 %v1850_v6 }
 0x36f   :  { %3951 = vmatmul.msk.f32.vlgmr.msra.gmra.mxu3 %vm1955_vm5, %v6468_v46  ;;  %v2044_v46 = vld [vmem:[%s7771_s12 + $0xf0] sm:$0xff] }
 0x370   :  { %2895 = vmatpush.msrb.mxu3 %v2011_v29 }
 0x377   :  { %3952 = vmatmul.msk.f32.gmra.mxu3 %vm1955_vm5, %v6474_v32  ;;  %v2028_v32 = vld [vmem:[%s7771_s12 + $0x70] sm:$0xff] }
 0x386   :  { %v1979_v56 = vpop.f32.mrf.mxu2 }
 0x38e   :  { %v1982_v11 = vpop.f32.mrf.mxu2 }
 0x3f2   :  { %v2002_v44 = vpop.f32.mrf.mxu3 }
 0x3f3   :  { %v2003_v22 = vadd.f32 %v2002_v44, %v1979_v56  ;;  %v8130_v56 = vld [vmem:[#allocation111_spill] sm:$0xff] }
 0x3fa   :  { %v2005_v52 = vpop.f32.mrf.mxu3 }
 0x3fb   :  { %v2006_v7 = vadd.f32 %v2005_v52, %v1982_v11  ;;  %v2013_v11 = vld [vmem:[%s7770_s11 + $0x18] sm:$0xff] }
 0x3fc   :  { %v8131_v52 = vld [vmem:[#allocation117_spill] sm:$0xff] }
 0x3fd   :  { %2590 = vmatpush.msra.mxu2 %v2006_v7 }
 0x3ff   :  { %2591 = vmatpush.msra.mxu2 %v2003_v22  ;;  %v8132_v22 = vld [vmem:[#allocation124_spill] sm:$0xff] }
 0x400   :  { %3953 = vmatmul.msk.f32.vlgmr.msra.gmra.mxu2 %vm1114_vm0, %v8108_v36 }
 0x401   :  { %3109 = vmatpush.msra.mxu2 %v2013_v11 }
 0x408   :  { %3954 = vmatmul.msk.f32.gmra.mxu2 %vm1114_vm0, %v8109_v25  ;;  %v8133_v25 = vld [vmem:[#allocation134_spill] sm:$0xff] }
 0x410   :  { %3955 = vmatmul.msk.f32.gmra.mxu2 %vm1114_vm0, %v8110_v41 }
 0x418   :  { %3956 = vmatmul.msk.f32.gmra.mxu2 %vm1114_vm0, %v8111_v28  ;;  %v8134_v28 = vld [vmem:[#allocation143_spill] sm:$0xff] }
 0x420   :  { %3957 = vmatmul.msk.f32.gmra.mxu2 %vm1114_vm0, %v8112_v30 }
 0x428   :  { %3958 = vmatmul.msk.f32.gmra.mxu2 %vm1114_vm0, %v8113_v8  ;;  %v8135_v8 = vld [vmem:[#allocation12_spill] sm:$0xff] }
 0x430   :  { %3959 = vmatmul.msk.f32.gmra.mxu2 %vm1114_vm0, %v8114_v51 }
 0x438   :  { %3960 = vmatmul.msk.f32.gmra.mxu2 %vm1114_vm0, %v8115_v2  ;;  %v8136_v2 = vld [vmem:[#allocation150_spill] sm:$0xff] }
 0x440   :  { %3961 = vmatmul.msk.f32.gmra.mxu2 %vm1114_vm0, %v8116_v45 }
 0x448   :  { %3962 = vmatmul.msk.f32.gmra.mxu2 %vm1114_vm0, %v8117_v19 }
 0x450   :  { %3963 = vmatmul.msk.f32.gmra.mxu2 %vm1114_vm0, %v8118_v48 }
 0x458   :  { %3964 = vmatmul.msk.f32.gmra.mxu2 %vm1114_vm0, %v8119_v43 }
 0x460   :  { %3965 = vmatmul.msk.f32.gmra.mxu2 %vm1114_vm0, %v8120_v59 }
 0x468   :  { %3966 = vmatmul.msk.f32.gmra.mxu2 %vm1114_vm0, %v8121_v17 }
 0x470   :  { %3967 = vmatmul.msk.f32.gmra.mxu2 %vm1114_vm0, %v8122_v3 }
 0x478   :  { %3968 = vmatmul.msk.f32.gmra.mxu2 %vm1114_vm0, %v8123_v18 }
 0x480   :  { %3969 = vmatmul.msk.f32.gmra.mxu2 %vm1114_vm0, %v8124_v35 }
 0x483   :  { %v6521_v62 = vpop.f32.mrf.mxu2 }
 0x484   :  { %3983 = vmatmul.msk.f32.vlgmr.msra.gmra.mxu0 %vm1312_vm2, %v6521_v62  ;;  %4013 = vmatmul.msk.f32.vlgmr.msrb.gmra.mxu3 %vm1312_vm2, %v6521_v62 }
 0x485   :  { %4043 = vmatmul.msk.f32.vlgmr.msra.gmra.mxu1 %vm1312_vm2, %v6521_v62 }
 0x488   :  { %3970 = vmatmul.msk.f32.gmra.mxu2 %vm1114_vm0, %v8125_v42 }
 0x48b   :  { %v6531_v5 = vpop.f32.mrf.mxu2 }
 0x48c   :  { %3984 = vmatmul.msk.f32.gmra.mxu0 %vm1312_vm2, %v6531_v5  ;;  %4014 = vmatmul.msk.f32.gmra.mxu3 %vm1312_vm2, %v6531_v5 }
 0x48d   :  { %4044 = vmatmul.msk.f32.gmra.mxu1 %vm1312_vm2, %v6531_v5 }
 0x490   :  { %3971 = vmatmul.msk.f32.gmra.mxu2 %vm1114_vm0, %v8126_v63 }
 0x493   :  { %v6541_v31 = vpop.f32.mrf.mxu2 }
 0x494   :  { %3985 = vmatmul.msk.f32.gmra.mxu0 %vm1312_vm2, %v6541_v31  ;;  %4015 = vmatmul.msk.f32.gmra.mxu3 %vm1312_vm2, %v6541_v31 }
 0x495   :  { %4045 = vmatmul.msk.f32.gmra.mxu1 %vm1312_vm2, %v6541_v31 }
 0x498   :  { %3972 = vmatmul.msk.f32.gmra.mxu2 %vm1114_vm0, %v8127_v12 }
 0x49b   :  { %v6551_v58 = vpop.f32.mrf.mxu2 }
 0x49c   :  { %3986 = vmatmul.msk.f32.gmra.mxu0 %vm1312_vm2, %v6551_v58  ;;  %4016 = vmatmul.msk.f32.gmra.mxu3 %vm1312_vm2, %v6551_v58 }
 0x49d   :  { %4046 = vmatmul.msk.f32.gmra.mxu1 %vm1312_vm2, %v6551_v58 }
 0x4a0   :  { %3973 = vmatmul.msk.f32.gmra.mxu2 %vm1114_vm0, %v8128_v53 }
 0x4a3   :  { %v6561_v50 = vpop.f32.mrf.mxu2 }
 0x4a4   :  { %3987 = vmatmul.msk.f32.gmra.mxu0 %vm1312_vm2, %v6561_v50  ;;  %4017 = vmatmul.msk.f32.gmra.mxu3 %vm1312_vm2, %v6561_v50 }
 0x4a5   :  { %4047 = vmatmul.msk.f32.gmra.mxu1 %vm1312_vm2, %v6561_v50 }
 0x4a8   :  { %3974 = vmatmul.msk.f32.gmra.mxu2 %vm1114_vm0, %v8129_v26 }
 0x4ab   :  { %v6571_v6 = vpop.f32.mrf.mxu2 }
 0x4ac   :  { %3988 = vmatmul.msk.f32.gmra.mxu0 %vm1312_vm2, %v6571_v6  ;;  %4018 = vmatmul.msk.f32.gmra.mxu3 %vm1312_vm2, %v6571_v6 }
 0x4ad   :  { %4048 = vmatmul.msk.f32.gmra.mxu1 %vm1312_vm2, %v6571_v6 }
 0x4b0   :  { %3975 = vmatmul.msk.f32.gmra.mxu2 %vm1114_vm0, %v8130_v56 }
 0x4b3   :  { %v6581_v44 = vpop.f32.mrf.mxu2 }
 0x4b4   :  { %3989 = vmatmul.msk.f32.gmra.mxu0 %vm1312_vm2, %v6581_v44  ;;  %4019 = vmatmul.msk.f32.gmra.mxu3 %vm1312_vm2, %v6581_v44 }
 0x4b5   :  { %4049 = vmatmul.msk.f32.gmra.mxu1 %vm1312_vm2, %v6581_v44 }
 0x4b8   :  { %3976 = vmatmul.msk.f32.gmra.mxu2 %vm1114_vm0, %v8131_v52 }
 0x4bb   :  { %v6594_v7 = vpop.f32.mrf.mxu2 }
 0x4bc   :  { %3990 = vmatmul.msk.f32.gmra.mxu0 %vm1312_vm2, %v6594_v7  ;;  %4020 = vmatmul.msk.f32.gmra.mxu3 %vm1312_vm2, %v6594_v7 }
 0x4bd   :  { %4050 = vmatmul.msk.f32.gmra.mxu1 %vm1312_vm2, %v6594_v7 }
 0x4c0   :  { %3977 = vmatmul.msk.f32.gmra.mxu2 %vm1114_vm0, %v8132_v22 }
 0x4c3   :  { %v6604_v36 = vpop.f32.mrf.mxu2 }
 0x4c4   :  { %3991 = vmatmul.msk.f32.gmra.mxu0 %vm1312_vm2, %v6604_v36  ;;  %4021 = vmatmul.msk.f32.gmra.mxu3 %vm1312_vm2, %v6604_v36 }
 0x4c5   :  { %4051 = vmatmul.msk.f32.gmra.mxu1 %vm1312_vm2, %v6604_v36 }
 0x4c8   :  { %3978 = vmatmul.msk.f32.gmra.mxu2 %vm1114_vm0, %v8133_v25 }
 0x4cb   :  { %v6614_v41 = vpop.f32.mrf.mxu2 }
 0x4cc   :  { %3992 = vmatmul.msk.f32.gmra.mxu0 %vm1312_vm2, %v6614_v41  ;;  %4022 = vmatmul.msk.f32.gmra.mxu3 %vm1312_vm2, %v6614_v41 }
 0x4cd   :  { %4052 = vmatmul.msk.f32.gmra.mxu1 %vm1312_vm2, %v6614_v41 }
 0x4d0   :  { %3979 = vmatmul.msk.f32.gmra.mxu2 %vm1114_vm0, %v8134_v28  ;;  %v2029_v28 = vld [vmem:[%s7771_s12 + $0x78] sm:$0xff] }
 0x4d1   :  { %3321 = vmatpush.msra.mxu0 %v2029_v28 }
 0x4d3   :  { %v6624_v30 = vpop.f32.mrf.mxu2  ;;  %3322 = vmatpush.msra.mxu0 %v2028_v32  ;;  %v2058_v32 = vld [vmem:[%s7771_s12 + $0x160] sm:$0xff] }
 0x4d4   :  { %3993 = vmatmul.msk.f32.gmra.mxu0 %vm1312_vm2, %v6624_v30  ;;  %4023 = vmatmul.msk.f32.gmra.mxu3 %vm1312_vm2, %v6624_v30 }
 0x4d5   :  { %4053 = vmatmul.msk.f32.gmra.mxu1 %vm1312_vm2, %v6624_v30 }
 0x4d8   :  { %3980 = vmatmul.msk.f32.gmra.mxu2 %vm1114_vm0, %v8135_v8  ;;  %v2061_v8 = vld [vmem:[%s7771_s12 + $0x178] sm:$0xff] }
 0x4d9   :  { %3535 = vmatpush.msrb.mxu1 %v2061_v8  ;;  %v2027_v8 = vld [vmem:[%s7771_s12 + $0x68] sm:$0xff] }
 0x4da   :  { %3323 = vmatpush.msra.mxu0 %v2027_v8  ;;  %v2041_v8 = vld [vmem:[%s7771_s12 + $0xd8] sm:$0xff] }
 0x4db   :  { %v6634_v51 = vpop.f32.mrf.mxu2  ;;  %3536 = vmatpush.msrb.mxu1 %v2060_v1  ;;  %v2026_v1 = vld [vmem:[%s7771_s12 + $0x60] sm:$0xff] }
 0x4dc   :  { %3994 = vmatmul.msk.f32.gmra.mxu0 %vm1312_vm2, %v6634_v51  ;;  %4024 = vmatmul.msk.f32.gmra.mxu3 %vm1312_vm2, %v6634_v51 }
 0x4dd   :  { %4054 = vmatmul.msk.f32.gmra.mxu1 %vm1312_vm2, %v6634_v51  ;;  %3324 = vmatpush.msra.mxu0 %v2026_v1 }
 0x4de   :  { %3537 = vmatpush.msrb.mxu1 %v2059_v40  ;;  %v2057_v40 = vld [vmem:[%s7771_s12 + $0x158] sm:$0xff] }
 0x4df   :  { %3325 = vmatpush.msra.mxu0 %v2025_v61  ;;  %v2039_v61 = vld [vmem:[%s7771_s12 + $0xc8] sm:$0xff] }
 0x4e0   :  { %3981 = vmatmul.msk.f32.gmra.mxu2 %vm1114_vm0, %v8136_v2  ;;  %3538 = vmatpush.msrb.mxu1 %v2058_v32  ;;  %v2023_v32 = vld [vmem:[%s7771_s12 + $0x48] sm:$0xff] }
 0x4e2   :  { %3539 = vmatpush.msrb.mxu1 %v2057_v40  ;;  %v2022_v40 = vld [vmem:[%s7771_s12 + $0x40] sm:$0xff] }
 0x4e3   :  { %v6644_v45 = vpop.f32.mrf.mxu2 }
 0x4e4   :  { %3995 = vmatmul.msk.f32.gmra.mxu0 %vm1312_vm2, %v6644_v45  ;;  %4025 = vmatmul.msk.f32.gmra.mxu3 %vm1312_vm2, %v6644_v45 }
 0x4e5   :  { %4055 = vmatmul.msk.f32.gmra.mxu1 %vm1312_vm2, %v6644_v45 }
 0x4e6   :  { %3540 = vmatpush.msrb.mxu1 %v2056_v21  ;;  %v2021_v21 = vld [vmem:[%s7771_s12 + $0x38] sm:$0xff] }
 0x4e8   :  { %3982 = vmatmul.msk.f32.gmra.mxu2 %vm1114_vm0, %v5727_v13 }
 0x4eb   :  { %v6654_v19 = vpop.f32.mrf.mxu2 }
 0x4ec   :  { %3996 = vmatmul.msk.f32.gmra.mxu0 %vm1312_vm2, %v6654_v19  ;;  %4026 = vmatmul.msk.f32.gmra.mxu3 %vm1312_vm2, %v6654_v19 }
 0x4ed   :  { %4056 = vmatmul.msk.f32.gmra.mxu1 %vm1312_vm2, %v6654_v19 }
 0x4f0   :  { %4073 = vmatmul.msk.f32.vlgmr.msra.gmra.mxu2 %vm1312_vm2, %v6521_v62 }
 0x4f3   :  { %v6664_v48 = vpop.f32.mrf.mxu2 }
 0x4f4   :  { %3997 = vmatmul.msk.f32.gmra.mxu0 %vm1312_vm2, %v6664_v48  ;;  %4027 = vmatmul.msk.f32.gmra.mxu3 %vm1312_vm2, %v6664_v48 }
 0x4f5   :  { %4057 = vmatmul.msk.f32.gmra.mxu1 %vm1312_vm2, %v6664_v48 }
 0x4f8   :  { %4074 = vmatmul.msk.f32.gmra.mxu2 %vm1312_vm2, %v6531_v5 }
 0x4fb   :  { %v6674_v13 = vpop.f32.mrf.mxu2 }
 0x4fc   :  { %3998 = vmatmul.msk.f32.gmra.mxu0 %vm1312_vm2, %v6674_v13  ;;  %4028 = vmatmul.msk.f32.gmra.mxu3 %vm1312_vm2, %v6674_v13 }
 0x4fd   :  { %4058 = vmatmul.msk.f32.gmra.mxu1 %vm1312_vm2, %v6674_v13 }
 0x500   :  { %4075 = vmatmul.msk.f32.gmra.mxu2 %vm1312_vm2, %v6541_v31 }
 0x501   :  { %v6684_v43 = vpop.f32.mrf.mxu0 }
 0x502   :  { %v6686_v59 = vpop.f32.mrf.mxu1 }
 0x503   :  { %v6688_v49 = vpop.f32.mrf.mxu2 }
 0x504   :  { %3999 = vmatmul.msk.f32.gmra.mxu0 %vm1312_vm2, %v6688_v49  ;;  %4029 = vmatmul.msk.f32.gmra.mxu3 %vm1312_vm2, %v6688_v49 }
 0x505   :  { %4059 = vmatmul.msk.f32.gmra.mxu1 %vm1312_vm2, %v6688_v49 }
 0x507   :  { %v6696_v29 = vpop.f32.mrf.mxu3 }
 0x508   :  { %4076 = vmatmul.msk.f32.gmra.mxu2 %vm1312_vm2, %v6551_v58 }
 0x509   :  { %v6700_v47 = vpop.f32.mrf.mxu0 }
 0x50a   :  { %v6702_v17 = vpop.f32.mrf.mxu1 }
 0x50b   :  { %v6704_v3 = vpop.f32.mrf.mxu2 }
 0x50c   :  { %4000 = vmatmul.msk.f32.gmra.mxu0 %vm1312_vm2, %v6704_v3  ;;  %4030 = vmatmul.msk.f32.gmra.mxu3 %vm1312_vm2, %v6704_v3 }
 0x50d   :  { %4060 = vmatmul.msk.f32.gmra.mxu1 %vm1312_vm2, %v6704_v3 }
 0x50f   :  { %v6712_v18 = vpop.f32.mrf.mxu3 }
 0x510   :  { %4077 = vmatmul.msk.f32.gmra.mxu2 %vm1312_vm2, %v6561_v50 }
 0x511   :  { %v6716_v35 = vpop.f32.mrf.mxu0 }
 0x512   :  { %v6718_v62 = vpop.f32.mrf.mxu1 }
 0x513   :  { %v6720_v42 = vpop.f32.mrf.mxu2 }
 0x514   :  { %4001 = vmatmul.msk.f32.gmra.mxu0 %vm1312_vm2, %v6720_v42  ;;  %4031 = vmatmul.msk.f32.gmra.mxu3 %vm1312_vm2, %v6720_v42 }
 0x515   :  { %4061 = vmatmul.msk.f32.gmra.mxu1 %vm1312_vm2, %v6720_v42 }
 0x517   :  { %v6728_v5 = vpop.f32.mrf.mxu3 }
 0x518   :  { %4078 = vmatmul.msk.f32.gmra.mxu2 %vm1312_vm2, %v6571_v6 }
 0x519   :  { %v6732_v63 = vpop.f32.mrf.mxu0 }
 0x51a   :  { %v6734_v31 = vpop.f32.mrf.mxu1 }
 0x51b   :  { %v6736_v12 = vpop.f32.mrf.mxu2 }
 0x51c   :  { %4002 = vmatmul.msk.f32.gmra.mxu0 %vm1312_vm2, %v6736_v12  ;;  %4032 = vmatmul.msk.f32.gmra.mxu3 %vm1312_vm2, %v6736_v12 }
 0x51d   :  { %4062 = vmatmul.msk.f32.gmra.mxu1 %vm1312_vm2, %v6736_v12 }
 0x51f   :  { %v6744_v58 = vpop.f32.mrf.mxu3 }
 0x520   :  { %4079 = vmatmul.msk.f32.gmra.mxu2 %vm1312_vm2, %v6581_v44 }
 0x521   :  { %v6748_v53 = vpop.f32.mrf.mxu0 }
 0x522   :  { %v6750_v50 = vpop.f32.mrf.mxu1 }
 0x523   :  { %v6752_v26 = vpop.f32.mrf.mxu2 }
 0x524   :  { %4003 = vmatmul.msk.f32.gmra.mxu0 %vm1312_vm2, %v6752_v26  ;;  %4033 = vmatmul.msk.f32.gmra.mxu3 %vm1312_vm2, %v6752_v26 }
 0x525   :  { %4063 = vmatmul.msk.f32.gmra.mxu1 %vm1312_vm2, %v6752_v26 }
 0x527   :  { %v6760_v6 = vpop.f32.mrf.mxu3 }
 0x528   :  { %4080 = vmatmul.msk.f32.gmra.mxu2 %vm1312_vm2, %v6594_v7 }
 0x529   :  { %v6764_v56 = vpop.f32.mrf.mxu0 }
 0x52a   :  { %v6766_v44 = vpop.f32.mrf.mxu1 }
 0x52b   :  { %v6768_v11 = vpop.f32.mrf.mxu2 }
 0x52c   :  { %4004 = vmatmul.msk.f32.gmra.mxu0 %vm1312_vm2, %v6768_v11  ;;  %4034 = vmatmul.msk.f32.gmra.mxu3 %vm1312_vm2, %v6768_v11 }
 0x52d   :  { %4064 = vmatmul.msk.f32.gmra.mxu1 %vm1312_vm2, %v6768_v11 }
 0x52f   :  { %v6776_v52 = vpop.f32.mrf.mxu3 }
 0x530   :  { %4081 = vmatmul.msk.f32.gmra.mxu2 %vm1312_vm2, %v6604_v36  ;;  %v2045_v36 = vld [vmem:[%s7771_s12 + $0xf8] sm:$0xff] }
 0x531   :  { %v6780_v7 = vpop.f32.mrf.mxu0  ;;  %3428 = vmatpush.msra.mxu3 %v2045_v36 }
 0x532   :  { %v6782_v22 = vpop.f32.mrf.mxu1 }
 0x533   :  { %v6784_v25 = vpop.f32.mrf.mxu2  ;;  %3429 = vmatpush.msra.mxu3 %v2044_v46  ;;  %v2042_v46 = vld [vmem:[%s7771_s12 + $0xe0] sm:$0xff] }
 0x534   :  { %4005 = vmatmul.msk.f32.gmra.mxu0 %vm1312_vm2, %v6784_v25  ;;  %4035 = vmatmul.msk.f32.gmra.mxu3 %vm1312_vm2, %v6784_v25 }
 0x535   :  { %4065 = vmatmul.msk.f32.gmra.mxu1 %vm1312_vm2, %v6784_v25  ;;  %3430 = vmatpush.msra.mxu3 %v2043_v4  ;;  %v2024_v4 = vld [vmem:[%s7771_s12 + $0x50] sm:$0xff] }
 0x536   :  { %3326 = vmatpush.msra.mxu0 %v2024_v4  ;;  %v2038_v4 = vld [vmem:[%s7771_s12 + $0xc0] sm:$0xff] }
 0x537   :  { %v6801_v2 = vpop.f32.mrf.mxu3  ;;  %3431 = vmatpush.msra.mxu3 %v2042_v46 }
 0x538   :  { %4082 = vmatmul.msk.f32.gmra.mxu2 %vm1312_vm2, %v6614_v41  ;;  %3327 = vmatpush.msra.mxu0 %v2023_v32  ;;  %v2037_v32 = vld [vmem:[%s7771_s12 + $0xb8] sm:$0xff] }
 0x539   :  { %v6814_v28 = vpop.f32.mrf.mxu0  ;;  %3432 = vmatpush.msra.mxu3 %v2041_v8  ;;  %v2055_v8 = vld [vmem:[%s7771_s12 + $0x148] sm:$0xff] }
 0x53a   :  { %v6816_v36 = vpop.f32.mrf.mxu1  ;;  %3541 = vmatpush.msrb.mxu1 %v2055_v8  ;;  %3328 = vmatpush.msra.mxu0 %v2022_v40  ;;  %v2036_v40 = vld [vmem:[%s7771_s12 + $0xb0] sm:$0xff] }
 0x53b   :  { %v6818_v41 = vpop.f32.mrf.mxu2 }
 0x53c   :  { %4006 = vmatmul.msk.f32.gmra.mxu0 %vm1312_vm2, %v6818_v41  ;;  %4036 = vmatmul.msk.f32.gmra.mxu3 %vm1312_vm2, %v6818_v41 }
 0x53d   :  { %4066 = vmatmul.msk.f32.gmra.mxu1 %vm1312_vm2, %v6818_v41  ;;  %3329 = vmatpush.msra.mxu0 %v2021_v21  ;;  %v2035_v21 = vld [vmem:[%s7771_s12 + $0xa8] sm:$0xff] }
 0x53f   :  { %v6847_v33 = vpop.f32.mrf.mxu3 }
 0x540   :  { %4083 = vmatmul.msk.f32.gmra.mxu2 %vm1312_vm2, %v6624_v30  ;;  %v2040_v30 = vld [vmem:[%s7771_s12 + $0xd0] sm:$0xff] }
 0x541   :  { %v6860_v60 = vpop.f32.mrf.mxu0  ;;  %3433 = vmatpush.msra.mxu3 %v2040_v30  ;;  %v2054_v30 = vld [vmem:[%s7771_s12 + $0x140] sm:$0xff] }
 0x542   :  { %v6862_v1 = vpop.f32.mrf.mxu1  ;;  %3542 = vmatpush.msrb.mxu1 %v2054_v30  ;;  %v2052_v30 = vld [vmem:[%s7771_s12 + $0x130] sm:$0xff] }
 0x543   :  { %v6867_v46 = vpop.f32.mrf.mxu2  ;;  %3434 = vmatpush.msra.mxu3 %v2039_v61 }
 0x544   :  { %4007 = vmatmul.msk.f32.gmra.mxu0 %vm1312_vm2, %v6867_v46  ;;  %4037 = vmatmul.msk.f32.gmra.mxu3 %vm1312_vm2, %v6867_v46 }
 0x545   :  { %4067 = vmatmul.msk.f32.gmra.mxu1 %vm1312_vm2, %v6867_v46  ;;  %3435 = vmatpush.msra.mxu3 %v2038_v4  ;;  %v2019_v4 = vld [vmem:[%s7771_s12 + $0x28] sm:$0xff] }
 0x546   :  { %3543 = vmatpush.msrb.mxu1 %v2053_v39  ;;  %v2034_v39 = vld [vmem:[%s7771_s12 + $0xa0] sm:$0xff] }
 0x547   :  { %v6893_v27 = vpop.f32.mrf.mxu3  ;;  %3436 = vmatpush.msra.mxu3 %v2037_v32  ;;  %v2018_v32 = vld [vmem:[%s7771_s12 + $0x20] sm:$0xff] }
 0x548   :  { %4084 = vmatmul.msk.f32.gmra.mxu2 %vm1312_vm2, %v6634_v51  ;;  %v2020_v51 = vld [vmem:[%s7771_s12 + $0x30] sm:$0xff]  ;;  %3544 = vmatpush.msrb.mxu1 %v2052_v30 }
 0x549   :  { %v6906_v34 = vpop.f32.mrf.mxu0  ;;  %3330 = vmatpush.msra.mxu0 %v2020_v51  ;;  %3437 = vmatpush.msra.mxu3 %v2036_v40  ;;  %v2051_v51 = vld [vmem:[%s7771_s12 + $0x128] sm:$0xff]  ;;  %v2017_v40 = vld [vmem:[%s7771_s12 + $0x18] sm:$0xff] }
 0x54a   :  { %8137 = vst [vmem:[#allocation125_spill] sm:$0xff] %v6906_v34  ;;  %v6908_v61 = vpop.f32.mrf.mxu1  ;;  %3545 = vmatpush.msrb.mxu1 %v2051_v51  ;;  %v2049_v51 = vld [vmem:[%s7771_s12 + $0x118] sm:$0xff] }
 0x54b   :  { %8138 = vst [vmem:[#allocation135_spill] sm:$0xff] %v6908_v61  ;;  %v6913_v8 = vpop.f32.mrf.mxu2  ;;  %3331 = vmatpush.msra.mxu0 %v2019_v4  ;;  %3438 = vmatpush.msra.mxu3 %v2035_v21  ;;  %v2016_v21 = vld [vmem:[%s7771_s12 + $0x10] sm:$0xff] }
 0x54c   :  { %4008 = vmatmul.msk.f32.gmra.mxu0 %vm1312_vm2, %v6913_v8  ;;  %4038 = vmatmul.msk.f32.gmra.mxu3 %vm1312_vm2, %v6913_v8 }
 0x54d   :  { %4068 = vmatmul.msk.f32.gmra.mxu1 %vm1312_vm2, %v6913_v8  ;;  %3332 = vmatpush.msra.mxu0 %v2018_v32  ;;  %v2032_v32 = vld [vmem:[%s7771_s12 + $0x90] sm:$0xff] }
 0x54e   :  { %3439 = vmatpush.msra.mxu3 %v2034_v39  ;;  %v2015_v39 = vld [vmem:[%s7771_s12 + $0x8] sm:$0xff] }
 0x54f   :  { %v6939_v61 = vpop.f32.mrf.mxu3  ;;  %3333 = vmatpush.msra.mxu0 %v2017_v40  ;;  %v2031_v40 = vld [vmem:[%s7771_s12 + $0x88] sm:$0xff] }
 0x550   :  { %8139 = vst [vmem:[#allocation141_spill] sm:$0xff] %v6939_v61  ;;  %4085 = vmatmul.msk.f32.gmra.mxu2 %vm1312_vm2, %v6644_v45  ;;  %v2033_v45 = vld [vmem:[%s7771_s12 + $0x98] sm:$0xff]  ;;  %v2050_v61 = vld [vmem:[%s7771_s12 + $0x120] sm:$0xff] }
 0x551   :  { %v6952_v34 = vpop.f32.mrf.mxu0  ;;  %3440 = vmatpush.msra.mxu3 %v2033_v45  ;;  %3546 = vmatpush.msrb.mxu1 %v2050_v61  ;;  %v2048_v45 = vld [vmem:[%s7771_s12 + $0x110] sm:$0xff]  ;;  %v2014_v61 = vld [vmem:[%s7771_s12] sm:$0xff] }
 0x552   :  { %8140 = vst [vmem:[#allocation146_spill] sm:$0xff] %v6952_v34  ;;  %v6954_v4 = vpop.f32.mrf.mxu1  ;;  %3334 = vmatpush.msra.mxu0 %v2016_v21  ;;  %v2030_v21 = vld [vmem:[%s7771_s12 + $0x80] sm:$0xff] }
 0x553   :  { %8141 = vst [vmem:[#allocation153_spill] sm:$0xff] %v6954_v4  ;;  %v6959_v30 = vpop.f32.mrf.mxu2  ;;  %3441 = vmatpush.msra.mxu3 %v2032_v32  ;;  %3547 = vmatpush.msrb.mxu1 %v2049_v51  ;;  %v2046_v51 = vld [vmem:[%s7771_s12 + $0x100] sm:$0xff] }
 0x554   :  { %4009 = vmatmul.msk.f32.gmra.mxu0 %vm1312_vm2, %v6959_v30  ;;  %4039 = vmatmul.msk.f32.gmra.mxu3 %vm1312_vm2, %v6959_v30 }
 0x555   :  { %4069 = vmatmul.msk.f32.gmra.mxu1 %vm1312_vm2, %v6959_v30  ;;  %3335 = vmatpush.msra.mxu0 %v2015_v39 }
 0x556   :  { %3442 = vmatpush.msra.mxu3 %v2031_v40  ;;  %3548 = vmatpush.msrb.mxu1 %v2048_v45 }
 0x557   :  { %v6985_v4 = vpop.f32.mrf.mxu3  ;;  %3336 = vmatpush.msra.mxu0 %v2014_v61 }
 0x558   :  { %8142 = vst [vmem:[#allocation17_spill] sm:$0xff] %v6985_v4  ;;  %4086 = vmatmul.msk.f32.gmra.mxu2 %vm1312_vm2, %v6654_v19  ;;  %v2047_v19 = vld [vmem:[%s7771_s12 + $0x108] sm:$0xff]  ;;  %3443 = vmatpush.msra.mxu3 %v2030_v21 }
 0x559   :  { %v6998_v34 = vpop.f32.mrf.mxu0  ;;  %3549 = vmatpush.msrb.mxu1 %v2047_v19 }
 0x55a   :  { %8143 = vst [vmem:[#allocation18_spill] sm:$0xff] %v6998_v34  ;;  %v7000_v32 = vpop.f32.mrf.mxu1 }
 0x55b   :  { %8144 = vst [vmem:[#allocation23_spill] sm:$0xff] %v7000_v32  ;;  %v7002_v4 = vpop.f32.mrf.mxu2  ;;  %3550 = vmatpush.msrb.mxu1 %v2046_v51  ;;  %v8156_v32 = vld [vmem:[#allocation20_spill] sm:$0xff] }
 0x55c   :  { %8145 = vst [vmem:[#allocation24_spill] sm:$0xff] %v7002_v4  ;;  %4010 = vmatmul.msk.f32.gmra.mxu0 %vm1312_vm2, %v7002_v4  ;;  %4040 = vmatmul.msk.f32.gmra.mxu3 %vm1312_vm2, %v7002_v4 }
 0x55d   :  { %4070 = vmatmul.msk.f32.gmra.mxu1 %vm1312_vm2, %v7002_v4 }
 0x55f   :  { %v7016_v39 = vpop.f32.mrf.mxu3 }
 0x560   :  { %8146 = vst [vmem:[#allocation27_spill] sm:$0xff] %v7016_v39  ;;  %4087 = vmatmul.msk.f32.gmra.mxu2 %vm1312_vm2, %v6664_v48  ;;  %v3203_v39 = vmul.f32 %v6686_v59, %v8156_v32 }
 0x561   :  { %v7020_v40 = vpop.f32.mrf.mxu0 }
 0x562   :  { %8147 = vst [vmem:[#allocation28_spill] sm:$0xff] %v7020_v40  ;;  %v7022_v45 = vpop.f32.mrf.mxu1 }
 0x563   :  { %8148 = vst [vmem:[#allocation36_spill] sm:$0xff] %v7022_v45  ;;  %v7024_v61 = vpop.f32.mrf.mxu2 }
 0x564   :  { %8149 = vst [vmem:[#allocation37_spill] sm:$0xff] %v7024_v61  ;;  %4011 = vmatmul.msk.f32.gmra.mxu0 %vm1312_vm2, %v7024_v61  ;;  %4041 = vmatmul.msk.f32.gmra.mxu3 %vm1312_vm2, %v7024_v61 }
 0x565   :  { %4071 = vmatmul.msk.f32.gmra.mxu1 %vm1312_vm2, %v7024_v61 }
 0x567   :  { %v7032_v21 = vpop.f32.mrf.mxu3 }
 0x568   :  { %8150 = vst [vmem:[#allocation104_spill] sm:$0xff] %v7032_v21  ;;  %4088 = vmatmul.msk.f32.gmra.mxu2 %vm1312_vm2, %v6674_v13  ;;  %v8155_v21 = vld [vmem:[#allocation22_spill] sm:$0xff] }
 0x569   :  { %v7036_v48 = vpop.f32.mrf.mxu0  ;;  %v3202_v40 = vmul.f32 %v6696_v29, %v8155_v21  ;;  %v8158_v29 = vld [vmem:[#allocation25_spill] sm:$0xff] }
 0x56a   :  { %8151 = vst [vmem:[#allocation42_spill] sm:$0xff] %v7036_v48  ;;  %v7038_v19 = vpop.f32.mrf.mxu1  ;;  %v8154_v48 = vld [vmem:[#allocation19_spill] sm:$0xff]  ;;  %v3205_v21 = vmul.f32 %v6700_v47, %v8158_v29 }
 0x56b   :  { %8152 = vst [vmem:[#allocation44_spill] sm:$0xff] %v7038_v19  ;;  %v7040_v51 = vpop.f32.mrf.mxu2  ;;  %v3201_v19 = vmul.f32 %v6684_v43, %v8154_v48  ;;  %v8159_v48 = vld [vmem:[#allocation29_spill] sm:$0xff] }
 0x56c   :  { %8153 = vst [vmem:[#allocation45_spill] sm:$0xff] %v7040_v51  ;;  %4012 = vmatmul.msk.f32.gmra.mxu0 %vm1312_vm2, %v7040_v51  ;;  %4042 = vmatmul.msk.f32.gmra.mxu3 %vm1312_vm2, %v7040_v51  ;;  %v3206_v59 = vmul.f32 %v6712_v18, %v8159_v48  ;;  %v8162_v18 = vld [vmem:[#allocation33_spill] sm:$0xff]  ;;  %v8163_v48 = vld [vmem:[#allocation35_spill] sm:$0xff] }
 0x56d   :  { %4072 = vmatmul.msk.f32.gmra.mxu1 %vm1312_vm2, %v7040_v51  ;;  %v8157_v51 = vld [vmem:[#allocation31_spill] sm:$0xff]  ;;  %v3209_v29 = vmul.f32 %v6716_v35, %v8162_v18 }
 0x56f   :  { %v7048_v45 = vpop.f32.mrf.mxu3 }
 0x570   :  { %4089 = vmatmul.msk.f32.gmra.mxu2 %vm1312_vm2, %v6688_v49 }
 0x571   :  { %v7052_v13 = vpop.f32.mrf.mxu0 }
 0x572   :  { %v7058_v61 = vpop.f32.mrf.mxu1 }
 0x573   :  { %v3111_v34 = vpop.f32.mrf.mxu2 }
 0x574   :  { %v7063_v4 = vmul.f32 %v3111_v34, %v8157_v51  ;;  %3337 = vmatmul.f32.vlgmr.msra.gmra.mxu0 %v3201_v19  ;;  %3444 = vmatmul.f32.vlgmr.msra.gmra.mxu3 %v3202_v40  ;;  %v8160_v34 = vld [vmem:[#allocation26_spill] sm:$0xff] }
 0x575   :  { %3551 = vmatmul.f32.vlgmr.msrb.gmra.mxu1 %v3203_v39  ;;  %v3207_v19 = vmul.f32 %v6702_v17, %v8160_v34  ;;  %v8161_v39 = vld [vmem:[#allocation50_spill] sm:$0xff]  ;;  %v3210_v17 = vmul.f32 %v6728_v5, %v8163_v48  ;;  %v8169_v48 = vld [vmem:[#allocation43_spill] sm:$0xff] }
 0x576   :  { %v8168_v5 = vld [vmem:[#allocation38_spill] sm:$0xff] }
 0x577   :  { %v7065_v49 = vpop.f32.mrf.mxu3  ;;  %v3213_v18 = vmul.f32 %v6732_v63, %v8168_v5  ;;  %v2107_v63 = vmul.f32 %v4635_v9, %v8061_v57 }
 0x578   :  { %4090 = vmatmul.msk.f32.gmra.mxu2 %vm1312_vm2, %v6704_v3 }
 0x579   :  { %v7069_v43 = vpop.f32.mrf.mxu0 }
 0x57a   :  { %v7075_v32 = vpop.f32.mrf.mxu1 }
 0x57b   :  { %v3114_v40 = vpop.f32.mrf.mxu2 }
 0x57c   :  { %v7080_v51 = vmul.f32 %v3114_v40, %v8161_v39  ;;  %3340 = vmatmul.f32.gmra.mxu0 %v3205_v21  ;;  %3447 = vmatmul.f32.gmra.mxu3 %v3206_v59  ;;  %v8165_v40 = vld [vmem:[#allocation34_spill] sm:$0xff] }
 0x57d   :  { %3554 = vmatmul.f32.gmra.mxu1 %v3207_v19  ;;  %v3211_v21 = vmul.f32 %v6718_v62, %v8165_v40  ;;  %v8166_v19 = vld [vmem:[#allocation60_spill] sm:$0xff]  ;;  %v3214_v62 = vmul.f32 %v6744_v58, %v8169_v48  ;;  %v2108_v58 = vmul.f32 %v4645_v15, %v8061_v57  ;;  %v8175_v48 = vld [vmem:[#allocation46_spill] sm:$0xff] }
 0x57f   :  { %v7082_v3 = vpop.f32.mrf.mxu3 }
 0x580   :  { %4091 = vmatmul.msk.f32.gmra.mxu2 %vm1312_vm2, %v6720_v42 }
 0x581   :  { %v7086_v47 = vpop.f32.mrf.mxu0 }
 0x582   :  { %v7092_v34 = vpop.f32.mrf.mxu1 }
 0x583   :  { %8164 = vst [vmem:[#allocation16_spill] sm:$0xff] %v7092_v34  ;;  %v3117_v59 = vpop.f32.mrf.mxu2 }
 0x584   :  { %v7097_v39 = vmul.f32 %v3117_v59, %v8166_v19  ;;  %3343 = vmatmul.f32.gmra.mxu0 %v3209_v29  ;;  %3450 = vmatmul.f32.gmra.mxu3 %v3210_v17  ;;  %v8171_v59 = vld [vmem:[#allocation40_spill] sm:$0xff] }
 0x585   :  { %3557 = vmatmul.f32.gmra.mxu1 %v3211_v21  ;;  %v3215_v29 = vmul.f32 %v6734_v31, %v8171_v59  ;;  %v8172_v21 = vld [vmem:[#allocation73_spill] sm:$0xff]  ;;  %v2109_v31 = vmul.f32 %v4637_v10, %v8061_v57 }
 0x587   :  { %v7099_v42 = vpop.f32.mrf.mxu3 }
 0x588   :  { %4092 = vmatmul.msk.f32.gmra.mxu2 %vm1312_vm2, %v6736_v12 }
 0x589   :  { %v7103_v35 = vpop.f32.mrf.mxu0 }
 0x58a   :  { %8167 = vst [vmem:[#allocation114_spill] sm:$0xff] %v7103_v35  ;;  %v7109_v40 = vpop.f32.mrf.mxu1  ;;  %v2228_v35 = vmax.f32 %v2108_v58, 0.0 }
 0x58b   :  { %8170 = vst [vmem:[#allocation119_spill] sm:$0xff] %v7109_v40  ;;  %v3120_v17 = vpop.f32.mrf.mxu2 }
 0x58c   :  { %v7114_v19 = vmul.f32 %v3120_v17, %v8172_v21  ;;  %3346 = vmatmul.f32.gmra.mxu0 %v3213_v18  ;;  %3453 = vmatmul.f32.gmra.mxu3 %v3214_v62  ;;  %v3217_v18 = vmul.f32 %v6748_v53, %v8175_v48  ;;  %v8176_v62 = vld [vmem:[#allocation48_spill] sm:$0xff]  ;;  %v2110_v17 = vmul.f32 %v4663_v38, %v8061_v57  ;;  %v8177_v21 = vld [vmem:[#allocation47_spill] sm:$0xff]  ;;  %v2229_v53 = vmax.f32 %v2109_v31, 0.0 }
 0x58d   :  { %3560 = vmatmul.f32.gmra.mxu1 %v3215_v29  ;;  %v3218_v59 = vmul.f32 %v6760_v6, %v8176_v62  ;;  %v3219_v40 = vmul.f32 %v6750_v50, %v8177_v21  ;;  %v2356_v6 = vmul.f32 %v4653_v23, %v8064_v20  ;;  %v2357_v48 = vmul.f32 %v4661_v37, %v8064_v20 }
 0x58e   :  { %8173 = vst [vmem:[#allocation52_spill] sm:$0xff] %v7114_v19  ;;  %v8178_v19 = vld [vmem:[#allocation76_spill] sm:$0xff]  ;;  %v2230_v57 = vmax.f32 %v2110_v17, 0.0  ;;  %v2358_v50 = vmul.f32 %v4655_v24, %v8064_v20 }
 0x58f   :  { %v7116_v12 = vpop.f32.mrf.mxu3  ;;  %v2477_v58 = vmul.f32 %v2357_v48, %v2228_v35  ;;  %v2116_v48 = vmul.f32 %v4645_v15, %v8068_v54 }
 0x590   :  { %8174 = vst [vmem:[#allocation21_spill] sm:$0xff] %v7116_v12  ;;  %4093 = vmatmul.msk.f32.gmra.mxu2 %vm1312_vm2, %v6752_v26  ;;  %v2227_v12 = vmax.f32 %v2107_v63, 0.0 }
 0x591   :  { %v7126_v5 = vpop.f32.mrf.mxu0 }
 0x592   :  { %v7132_v29 = vpop.f32.mrf.mxu1  ;;  %v2476_v63 = vmul.f32 %v2356_v6, %v2227_v12 }
 0x593   :  { %v3123_v26 = vpop.f32.mrf.mxu2 }
 0x594   :  { %v7139_v34 = vmul.f32 %v3123_v26, %v8178_v19  ;;  %3349 = vmatmul.f32.gmra.mxu0 %v3217_v18  ;;  %3456 = vmatmul.f32.gmra.mxu3 %v3218_v59  ;;  %v2478_v19 = vmul.f32 %v2358_v50, %v2229_v53  ;;  %v3221_v18 = vmul.f32 %v6764_v56, %v2476_v63  ;;  %v8181_v50 = vld [vmem:[#allocation55_spill] sm:$0xff] }
 0x595   :  { %3563 = vmatmul.f32.gmra.mxu1 %v3219_v40  ;;  %v2359_v40 = vmul.f32 %v4705_v0, %v8064_v20  ;;  %v3222_v59 = vmul.f32 %v6776_v52, %v2477_v58  ;;  %v2115_v20 = vmul.f32 %v4635_v9, %v8068_v54  ;;  %v8179_v52 = vld [vmem:[#allocation54_spill] sm:$0xff]  ;;  %v3227_v63 = vmul.f32 %v6782_v22, %v8181_v50 }
 0x596   :  { %v3223_v26 = vmul.f32 %v6766_v44, %v2478_v19  ;;  %v3225_v53 = vmul.f32 %v6780_v7, %v8179_v52  ;;  %v8180_v44 = vld [vmem:[#allocation58_spill] sm:$0xff]  ;;  %v2117_v58 = vmul.f32 %v4637_v10, %v8068_v54  ;;  %v2077_v7 = vld [vmem:[%s7771_s12 + $0x1f8] sm:$0xff]  ;;  %v8182_v19 = vld [vmem:[#allocation99_spill] sm:$0xff]  ;;  %v2118_v22 = vmul.f32 %v4663_v38, %v8068_v54 }
 0x597   :  { %v7147_v62 = vpop.f32.mrf.mxu3  ;;  %v2479_v21 = vmul.f32 %v2359_v40, %v2230_v57  ;;  %v3226_v6 = vmul.f32 %v6801_v2, %v8180_v44  ;;  %v2365_v2 = vmul.f32 %v4661_v37, %v8069_v14  ;;  %3642 = vmatpush.msra.mxu2 %v2077_v7  ;;  %v2367_v52 = vmul.f32 %v4705_v0, %v8069_v14 }
 0x598   :  { %4094 = vmatmul.msk.f32.gmra.mxu2 %vm1312_vm2, %v6768_v11  ;;  %v2237_v54 = vmax.f32 %v2117_v58, 0.0  ;;  %v2121_v58 = vmul.f32 %v4637_v10, %v8072_v16 }
 0x599   :  { %v7153_v31 = vpop.f32.mrf.mxu0 }
 0x59a   :  { %v7157_v17 = vpop.f32.mrf.mxu1 }
 0x59b   :  { %v3126_v12 = vpop.f32.mrf.mxu2 }
 0x59c   :  { %v7160_v35 = vmul.f32 %v3126_v12, %v2479_v21  ;;  %3352 = vmatmul.f32.gmra.mxu0 %v3221_v18  ;;  %3459 = vmatmul.f32.gmra.mxu3 %v3222_v59  ;;  %v2076_v59 = vld [vmem:[%s7771_s12 + $0x1f0] sm:$0xff]  ;;  %v2235_v21 = vmax.f32 %v2115_v20, 0.0  ;;  %v2236_v12 = vmax.f32 %v2116_v48, 0.0  ;;  %v2119_v20 = vmul.f32 %v4635_v9, %v8072_v16  ;;  %v2074_v48 = vld [vmem:[%s7771_s12 + $0x1e0] sm:$0xff] }
 0x59d   :  { %3566 = vmatmul.f32.gmra.mxu1 %v3223_v26  ;;  %v2366_v26 = vmul.f32 %v4655_v24, %v8069_v14  ;;  %3643 = vmatpush.msra.mxu2 %v2076_v59 }
 0x59e   :  { %v2485_v50 = vmul.f32 %v2365_v2, %v2236_v12  ;;  %v2239_v12 = vmax.f32 %v2119_v20, 0.0 }
 0x59f   :  { %v7162_v11 = vpop.f32.mrf.mxu3 }
 0x5a0   :  { %4095 = vmatmul.msk.f32.gmra.mxu2 %vm1312_vm2, %v6784_v25  ;;  %v2364_v25 = vmul.f32 %v4653_v23, %v8069_v14  ;;  %v2238_v14 = vmax.f32 %v2118_v22, 0.0  ;;  %v3230_v2 = vmul.f32 %v6847_v33, %v2485_v50  ;;  %v2072_v33 = vld [vmem:[%s7771_s12 + $0x1d0] sm:$0xff]  ;;  %v2370_v50 = vmul.f32 %v4655_v24, %v8073_v55 }
 0x5a1   :  { %v7168_v56 = vpop.f32.mrf.mxu0 }
 0x5a2   :  { %v7176_v57 = vpop.f32.mrf.mxu1  ;;  %v2484_v44 = vmul.f32 %v2364_v25, %v2235_v21  ;;  %v2486_v25 = vmul.f32 %v2366_v26, %v2237_v54  ;;  %v2487_v59 = vmul.f32 %v2367_v52, %v2238_v14  ;;  %v2073_v26 = vld [vmem:[%s7771_s12 + $0x1d8] sm:$0xff] }
 0x5a3   :  { %v3129_v40 = vpop.f32.mrf.mxu2 }
 0x5a4   :  { %v7190_v18 = vmul.f32 %v3129_v40, %v8182_v19  ;;  %3355 = vmatmul.f32.gmra.mxu0 %v3225_v53  ;;  %3462 = vmatmul.f32.gmra.mxu3 %v3226_v6  ;;  %v2075_v53 = vld [vmem:[%s7771_s12 + $0x1e8] sm:$0xff]  ;;  %v3229_v7 = vmul.f32 %v6814_v28, %v2484_v44  ;;  %v3231_v22 = vmul.f32 %v6816_v36, %v2486_v25  ;;  %v2241_v28 = vmax.f32 %v2121_v58, 0.0  ;;  %v2070_v25 = vld [vmem:[%s7771_s12 + $0x1c0] sm:$0xff] }
 0x5a5   :  { %3569 = vmatmul.f32.gmra.mxu1 %v3227_v63  ;;  %v2120_v63 = vmul.f32 %v4645_v15, %v8072_v16  ;;  %3644 = vmatpush.msra.mxu2 %v2075_v53  ;;  %v2369_v36 = vmul.f32 %v4661_v37, %v8073_v55  ;;  %v2071_v44 = vld [vmem:[%s7771_s12 + $0x1c8] sm:$0xff] }
 0x5a6   :  { %v2490_v58 = vmul.f32 %v2370_v50, %v2241_v28  ;;  %v8184_v28 = vld [vmem:[#allocation125_spill] sm:$0xff]  ;;  %v8187_v50 = vld [vmem:[#allocation39_spill] sm:$0xff] }
 0x5a7   :  { %v7204_v6 = vpop.f32.mrf.mxu3  ;;  %3645 = vmatpush.msra.mxu2 %v2074_v48  ;;  %v2240_v53 = vmax.f32 %v2120_v63, 0.0  ;;  %v2371_v48 = vmul.f32 %v4705_v0, %v8073_v55 }
 0x5a8   :  { %4096 = vmatmul.msk.f32.gmra.mxu2 %vm1312_vm2, %v6818_v41  ;;  %v2122_v41 = vmul.f32 %v4663_v38, %v8072_v16  ;;  %v2368_v16 = vmul.f32 %v4653_v23, %v8073_v55  ;;  %v2069_v55 = vld [vmem:[%s7771_s12 + $0x1b8] sm:$0xff] }
 0x5a9   :  { %v7217_v40 = vpop.f32.mrf.mxu0  ;;  %3646 = vmatpush.msra.mxu2 %v2073_v26  ;;  %v2489_v14 = vmul.f32 %v2369_v36, %v2240_v53  ;;  %v8185_v36 = vld [vmem:[#allocation67_spill] sm:$0xff] }
 0x5aa   :  { %v7221_v19 = vpop.f32.mrf.mxu1  ;;  %v2242_v52 = vmax.f32 %v2122_v41, 0.0  ;;  %v2488_v63 = vmul.f32 %v2368_v16, %v2239_v12  ;;  %v2066_v12 = vld [vmem:[%s7771_s12 + $0x1a0] sm:$0xff] }
 0x5ab   :  { %v3132_v21 = vpop.f32.mrf.mxu2  ;;  %3647 = vmatpush.msra.mxu2 %v2072_v33  ;;  %v8183_v33 = vld [vmem:[#allocation65_spill] sm:$0xff] }
 0x5ac   :  { %v7229_v54 = vmul.f32 %v3132_v21, %v2487_v59  ;;  %3358 = vmatmul.f32.gmra.mxu0 %v3229_v7  ;;  %3465 = vmatmul.f32.gmra.mxu3 %v3230_v2  ;;  %v3233_v2 = vmul.f32 %v6860_v60, %v2488_v63  ;;  %v3234_v59 = vmul.f32 %v6893_v27, %v2489_v14  ;;  %v2068_v60 = vld [vmem:[%s7771_s12 + $0x1b0] sm:$0xff]  ;;  %v2067_v27 = vld [vmem:[%s7771_s12 + $0x1a8] sm:$0xff] }
 0x5ad   :  { %3572 = vmatmul.f32.gmra.mxu1 %v3231_v22  ;;  %3648 = vmatpush.msra.mxu2 %v2071_v44  ;;  %v2491_v22 = vmul.f32 %v2371_v48, %v2242_v52  ;;  %v3237_v16 = vmul.f32 %v8184_v28, %v8183_v33  ;;  %v8186_v52 = vld [vmem:[#allocation141_spill] sm:$0xff]  ;;  %v2127_v63 = vmul.f32 %v4635_v9, %v8187_v50  ;;  %v8189_v48 = vld [vmem:[#allocation66_spill] sm:$0xff]  ;;  %v2064_v28 = vld [vmem:[%s7771_s12 + $0x190] sm:$0xff] }
 0x5ae   :  { %v3238_v44 = vmul.f32 %v8186_v52, %v8185_v36  ;;  %v2128_v14 = vmul.f32 %v4645_v15, %v8187_v50  ;;  %v2130_v33 = vmul.f32 %v4663_v38, %v8187_v50 }
 0x5af   :  { %v7243_v20 = vpop.f32.mrf.mxu3  ;;  %3649 = vmatpush.msra.mxu2 %v2070_v25  ;;  %v8190_v25 = vld [vmem:[#allocation135_spill] sm:$0xff]  ;;  %v2247_v36 = vmax.f32 %v2127_v63, 0.0 }
 0x5b0   :  { %4097 = vmatmul.msk.f32.gmra.mxu2 %vm1312_vm2, %v6867_v46  ;;  %v3235_v46 = vmul.f32 %v6862_v1, %v2490_v58  ;;  %v3239_v58 = vmul.f32 %v8190_v25, %v8189_v48  ;;  %v2248_v52 = vmax.f32 %v2128_v14, 0.0  ;;  %v2250_v14 = vmax.f32 %v2130_v33, 0.0  ;;  %v8197_v33 = vld [vmem:[#allocation153_spill] sm:$0xff] }
 0x5b1   :  { %v7252_v7 = vpop.f32.mrf.mxu0  ;;  %3650 = vmatpush.msra.mxu2 %v2069_v55 }
 0x5b2   :  { %v7256_v41 = vpop.f32.mrf.mxu1 }
 0x5b3   :  { %v3135_v21 = vpop.f32.mrf.mxu2  ;;  %3651 = vmatpush.msra.mxu2 %v2068_v60  ;;  %v8192_v60 = vld [vmem:[#allocation113_spill] sm:$0xff] }
 0x5b4   :  { %v7262_v26 = vmul.f32 %v3135_v21, %v2491_v22  ;;  %3361 = vmatmul.f32.gmra.mxu0 %v3233_v2  ;;  %3468 = vmatmul.f32.gmra.mxu3 %v3234_v59  ;;  %v8191_v2 = vld [vmem:[#allocation70_spill] sm:$0xff]  ;;  %v2129_v22 = vmul.f32 %v4637_v10, %v8187_v50  ;;  %v2065_v21 = vld [vmem:[%s7771_s12 + $0x198] sm:$0xff] }
 0x5b5   :  { %3575 = vmatmul.f32.gmra.mxu1 %v3235_v46  ;;  %3652 = vmatpush.msra.mxu2 %v2067_v27  ;;  %v2376_v59 = vmul.f32 %v4653_v23, %v8191_v2  ;;  %v2377_v55 = vmul.f32 %v4661_v37, %v8191_v2  ;;  %v2379_v48 = vmul.f32 %v4705_v0, %v8191_v2  ;;  %v8193_v50 = vld [vmem:[#allocation69_spill] sm:$0xff] }
 0x5b6   :  { %v2131_v25 = vmul.f32 %v4635_v9, %v8193_v50  ;;  %v2132_v63 = vmul.f32 %v4645_v15, %v8193_v50  ;;  %v2133_v9 = vmul.f32 %v4637_v10, %v8193_v50 }
 0x5b7   :  { %v7270_v1 = vpop.f32.mrf.mxu3  ;;  %3653 = vmatpush.msra.mxu2 %v2066_v12  ;;  %v2378_v12 = vmul.f32 %v4655_v24, %v8191_v2 }
 0x5b8   :  { %4098 = vmatmul.msk.f32.gmra.mxu2 %vm1312_vm2, %v6913_v8 }
 0x5b9   :  { %v7277_v53 = vpop.f32.mrf.mxu0  ;;  %3654 = vmatpush.msra.mxu2 %v2065_v21 }
 0x5ba   :  { %v7287_v8 = vpop.f32.mrf.mxu1 }
 0x5bb   :  { %8188 = vst [vmem:[#allocation57_spill] sm:$0xff] %v7287_v8  ;;  %v3138_v46 = vpop.f32.mrf.mxu2  ;;  %3655 = vmatpush.msra.mxu2 %v2064_v28  ;;  %v2497_v8 = vmul.f32 %v2377_v55, %v2248_v52  ;;  %v8196_v55 = vld [vmem:[#allocation17_spill] sm:$0xff] }
 0x5bc   :  { %v7301_v27 = vmul.f32 %v3138_v46, %v8192_v60  ;;  %3364 = vmatmul.f32.gmra.mxu0 %v3237_v16  ;;  %3471 = vmatmul.f32.gmra.mxu3 %v3238_v44  ;;  %v2063_v16 = vld [vmem:[%s7771_s12 + $0x188] sm:$0xff]  ;;  %v2249_v44 = vmax.f32 %v2129_v22, 0.0  ;;  %v2496_v60 = vmul.f32 %v2376_v59, %v2247_v36  ;;  %v8195_v59 = vld [vmem:[#allocation146_spill] sm:$0xff]  ;;  %v2499_v36 = vmul.f32 %v2379_v48, %v2250_v14 }
 0x5bd   :  { %3578 = vmatmul.f32.gmra.mxu1 %v3239_v58  ;;  %v2062_v58 = vld [vmem:[%s7771_s12 + $0x180] sm:$0xff]  ;;  %3656 = vmatpush.msra.mxu2 %v2063_v16  ;;  %v3242_v28 = vmul.f32 %v8196_v55, %v2497_v8  ;;  %v2253_v16 = vmax.f32 %v2133_v9, 0.0 }
 0x5be   :  { %v2498_v2 = vmul.f32 %v2378_v12, %v2249_v44  ;;  %v3241_v21 = vmul.f32 %v8195_v59, %v2496_v60  ;;  %v2251_v12 = vmax.f32 %v2131_v25, 0.0  ;;  %v2252_v44 = vmax.f32 %v2132_v63, 0.0  ;;  %v8198_v60 = vld [vmem:[#allocation49_spill] sm:$0xff] }
 0x5bf   :  { %v7317_v46 = vpop.f32.mrf.mxu3  ;;  %3657 = vmatpush.msra.mxu2 %v2062_v58  ;;  %v2380_v8 = vmul.f32 %v4653_v23, %v8198_v60  ;;  %v2381_v48 = vmul.f32 %v4661_v37, %v8198_v60  ;;  %v2383_v58 = vmul.f32 %v4705_v0, %v8198_v60  ;;  %v8200_v23 = vld [vmem:[#allocation18_spill] sm:$0xff]  ;;  %v8201_v37 = vld [vmem:[#allocation27_spill] sm:$0xff]  ;;  %v8203_v0 = vld [vmem:[#allocation37_spill] sm:$0xff] }
 0x5c0   :  { %8194 = vst [vmem:[#allocation53_spill] sm:$0xff] %v7317_v46  ;;  %4099 = vmatmul.msk.f32.gmra.mxu2 %vm1312_vm2, %v6959_v30  ;;  %v2134_v30 = vmul.f32 %v4663_v38, %v8193_v50  ;;  %v3243_v52 = vmul.f32 %v8197_v33, %v2498_v2  ;;  %v2382_v38 = vmul.f32 %v4655_v24, %v8198_v60 }
 0x5c1   :  { %v7328_v22 = vpop.f32.mrf.mxu0  ;;  %v2500_v25 = vmul.f32 %v2380_v8, %v2251_v12  ;;  %v2501_v63 = vmul.f32 %v2381_v48, %v2252_v44  ;;  %v8204_v44 = vld [vmem:[#allocation79_spill] sm:$0xff]  ;;  %v8206_v8 = vld [vmem:[#allocation81_spill] sm:$0xff]  ;;  %v8207_v48 = vld [vmem:[#allocation104_spill] sm:$0xff] }
 0x5c2   :  { %v7332_v15 = vpop.f32.mrf.mxu1  ;;  %v2254_v14 = vmax.f32 %v2134_v30, 0.0  ;;  %v2502_v2 = vmul.f32 %v2382_v38, %v2253_v16  ;;  %v8205_v16 = vld [vmem:[#allocation28_spill] sm:$0xff] }
 0x5c3   :  { %v3141_v46 = vpop.f32.mrf.mxu2  ;;  %v3245_v59 = vmul.f32 %v8200_v23, %v2500_v25  ;;  %v3249_v60 = vmul.f32 %v8205_v16, %v8204_v44  ;;  %v8208_v25 = vld [vmem:[#allocation80_spill] sm:$0xff] }
 0x5c4   :  { %v7337_v10 = vmul.f32 %v3141_v46, %v2499_v36  ;;  %3367 = vmatmul.f32.gmra.mxu0 %v3241_v21  ;;  %3474 = vmatmul.f32.gmra.mxu3 %v3242_v28  ;;  %v8199_v46 = vld [vmem:[#allocation24_spill] sm:$0xff]  ;;  %v3246_v21 = vmul.f32 %v8201_v37, %v2501_v63  ;;  %v2503_v24 = vmul.f32 %v2383_v58, %v2254_v14  ;;  %v8202_v28 = vld [vmem:[#allocation23_spill] sm:$0xff]  ;;  %v8211_v37 = vld [vmem:[#allocation45_spill] sm:$0xff] }
 0x5c5   :  { %3581 = vmatmul.f32.gmra.mxu1 %v3243_v52  ;;  %v3247_v36 = vmul.f32 %v8202_v28, %v2502_v2  ;;  %v3250_v14 = vmul.f32 %v8207_v48, %v8206_v8  ;;  %v8209_v63 = vld [vmem:[#allocation36_spill] sm:$0xff]  ;;  %v8213_v28 = vld [vmem:[#allocation42_spill] sm:$0xff] }
 0x5c6   :  { %v8210_v2 = vld [vmem:[#allocation128_spill] sm:$0xff] }
 0x5c7   :  { %v7345_v50 = vpop.f32.mrf.mxu3  ;;  %v8215_v44 = vld [vmem:[#allocation88_spill] sm:$0xff] }
 0x5c8   :  { %4100 = vmatmul.msk.f32.gmra.mxu2 %vm1312_vm2, %v8199_v46  ;;  %v3251_v46 = vmul.f32 %v8209_v63, %v8208_v25  ;;  %v8216_v16 = vld [vmem:[#allocation44_spill] sm:$0xff] }
 0x5c9   :  { %v7351_v9 = vpop.f32.mrf.mxu0  ;;  %v3255_v8 = vmul.f32 %v8216_v16, %v8215_v44  ;;  %v8221_v44 = vld [vmem:[#allocation136_spill] sm:$0xff] }
 0x5ca   :  { %v7355_v55 = vpop.f32.mrf.mxu1  ;;  %v8222_v16 = vld [vmem:[#allocation96_spill] sm:$0xff] }
 0x5cb   :  { %v3144_v30 = vpop.f32.mrf.mxu2 }
 0x5cc   :  { %v7358_v33 = vmul.f32 %v3144_v30, %v2503_v24  ;;  %3370 = vmatmul.f32.gmra.mxu0 %v3245_v59  ;;  %3477 = vmatmul.f32.gmra.mxu3 %v3246_v21  ;;  %v8212_v24 = vld [vmem:[#allocation87_spill] sm:$0xff]  ;;  %v8214_v30 = vld [vmem:[#allocation89_spill] sm:$0xff] }
 0x5cd   :  { %3584 = vmatmul.f32.gmra.mxu1 %v3247_v36  ;;  %v3253_v36 = vmul.f32 %v8213_v28, %v8212_v24  ;;  %v8220_v24 = vld [vmem:[#allocation92_spill] sm:$0xff] }
 0x5ce   :  { %v3259_v28 = vmul.f32 %v7058_v61, %v8220_v24  ;;  %v8227_v24 = vld [vmem:[#allocation106_spill] sm:$0xff] }
 0x5cf   :  { %v7360_v52 = vpop.f32.mrf.mxu3 }
 0x5d0   :  { %4101 = vmatmul.msk.f32.gmra.mxu2 %vm1312_vm2, %v8203_v0  ;;  %v3254_v0 = vmul.f32 %v7048_v45, %v8214_v30 }
 0x5d1   :  { %v7364_v12 = vpop.f32.mrf.mxu0 }
 0x5d2   :  { %v7370_v38 = vpop.f32.mrf.mxu1 }
 0x5d3   :  { %v3147_v58 = vpop.f32.mrf.mxu2 }
 0x5d4   :  { %v7375_v23 = vmul.f32 %v3147_v58, %v8210_v2  ;;  %3373 = vmatmul.f32.gmra.mxu0 %v3249_v60  ;;  %3480 = vmatmul.f32.gmra.mxu3 %v3250_v14  ;;  %v8217_v14 = vld [vmem:[#allocation133_spill] sm:$0xff]  ;;  %v8218_v58 = vld [vmem:[#allocation90_spill] sm:$0xff] }
 0x5d5   :  { %3587 = vmatmul.f32.gmra.mxu1 %v3251_v46  ;;  %v3257_v45 = vmul.f32 %v7052_v13, %v8218_v58  ;;  %v8219_v2 = vld [vmem:[#allocation93_spill] sm:$0xff] }
 0x5d7   :  { %v7377_v59 = vpop.f32.mrf.mxu3 }
 0x5d8   :  { %4102 = vmatmul.msk.f32.gmra.mxu2 %vm1312_vm2, %v8211_v37  ;;  %v3258_v37 = vmul.f32 %v7065_v49, %v8219_v2  ;;  %v3261_v49 = vmul.f32 %v7069_v43, %v8222_v16 }
 0x5d9   :  { %v7381_v21 = vpop.f32.mrf.mxu0 }
 0x5da   :  { %v7389_v48 = vpop.f32.mrf.mxu1 }
 0x5db   :  { %v3150_v60 = vpop.f32.mrf.mxu2 }
 0x5dc   :  { %v7392_v25 = vmul.f32 %v3150_v60, %v8217_v14  ;;  %3376 = vmatmul.f32.gmra.mxu0 %v3253_v36  ;;  %3483 = vmatmul.f32.gmra.mxu3 %v3254_v0  ;;  %v8224_v60 = vld [vmem:[#allocation97_spill] sm:$0xff] }
 0x5dd   :  { %3590 = vmatmul.f32.gmra.mxu1 %v3255_v8  ;;  %v8223_v8 = vld [vmem:[#allocation98_spill] sm:$0xff]  ;;  %v3263_v14 = vmul.f32 %v7075_v32, %v8224_v60 }
 0x5de   :  { %v3262_v61 = vmul.f32 %v7082_v3, %v8223_v8  ;;  %v3265_v3 = vmul.f32 %v7086_v47, %v8227_v24 }
 0x5df   :  { %v7394_v63 = vpop.f32.mrf.mxu3 }
 0x5e0   :  { %3658 = vmatmul.f32.vlgmr.msra.gmra.mxu2 %v7063_v4 }
 0x5e1   :  { %v7397_v46 = vpop.f32.mrf.mxu0 }
 0x5e2   :  { %v7408_v0 = vpop.f32.mrf.mxu1 }
 0x5e3   :  { %v3153_v30 = vpop.f32.mrf.mxu2 }
 0x5e4   :  { %v7406_v36 = vmul.f32 %v3153_v30, %v8221_v44  ;;  %3379 = vmatmul.f32.gmra.mxu0 %v3257_v45  ;;  %3486 = vmatmul.f32.gmra.mxu3 %v3258_v37  ;;  %v8225_v45 = vld [vmem:[#allocation142_spill] sm:$0xff]  ;;  %v8229_v30 = vld [vmem:[#allocation107_spill] sm:$0xff]  ;;  %v8230_v44 = vld [vmem:[#allocation16_spill] sm:$0xff] }
 0x5e5   :  { %3593 = vmatmul.f32.gmra.mxu1 %v3259_v28  ;;  %v8228_v28 = vld [vmem:[#allocation108_spill] sm:$0xff]  ;;  %v3267_v16 = vmul.f32 %v8230_v44, %v8229_v30  ;;  %v8236_v30 = vld [vmem:[#allocation21_spill] sm:$0xff] }
 0x5e6   :  { %v3266_v32 = vmul.f32 %v7099_v42, %v8228_v28  ;;  %v8234_v42 = vld [vmem:[#allocation114_spill] sm:$0xff]  ;;  %v8235_v28 = vld [vmem:[#allocation116_spill] sm:$0xff] }
 0x5e7   :  { %v7410_v4 = vpop.f32.mrf.mxu3  ;;  %v3270_v44 = vmul.f32 %v8236_v30, %v8235_v28  ;;  %v8241_v28 = vld [vmem:[#allocation127_spill] sm:$0xff] }
 0x5e8   :  { %3661 = vmatmul.f32.gmra.mxu2 %v7080_v51  ;;  %v3274_v30 = vmul.f32 %v7147_v62, %v8241_v28 }
 0x5e9   :  { %v7413_v13 = vpop.f32.mrf.mxu0 }
 0x5ea   :  { %v7424_v37 = vpop.f32.mrf.mxu1 }
 0x5eb   :  { %v3156_v58 = vpop.f32.mrf.mxu2  ;;  %8226 = vst [vmem:[#allocation121_spill] sm:$0xff] %v7424_v37  ;;  %v8237_v37 = vld [vmem:[#allocation112_spill] sm:$0xff] }
 0x5ec   :  { %v7422_v2 = vmul.f32 %v3156_v58, %v8225_v45  ;;  %3382 = vmatmul.f32.gmra.mxu0 %v3261_v49  ;;  %3489 = vmatmul.f32.gmra.mxu3 %v3262_v61  ;;  %v8231_v49 = vld [vmem:[#allocation8_spill] sm:$0xff]  ;;  %v8233_v45 = vld [vmem:[#allocation110_spill] sm:$0xff] }
 0x5ed   :  { %3596 = vmatmul.f32.gmra.mxu1 %v3263_v14  ;;  %v3269_v24 = vmul.f32 %v8234_v42, %v8233_v45  ;;  %v8240_v45 = vld [vmem:[#allocation123_spill] sm:$0xff] }
 0x5ee   :  { %v3273_v42 = vmul.f32 %v7126_v5, %v8240_v45  ;;  %v8246_v45 = vld [vmem:[#allocation130_spill] sm:$0xff] }
 0x5ef   :  { %v7426_v51 = vpop.f32.mrf.mxu3  ;;  %v3279_v28 = vmul.f32 %v7157_v17, %v8246_v45 }
 0x5f0   :  { %3664 = vmatmul.f32.gmra.mxu2 %v7097_v39  ;;  %v8232_v39 = vld [vmem:[#allocation52_spill] sm:$0xff] }
 0x5f1   :  { %v3338_v43 = vpop.f32.mrf.mxu0 }
 0x5f2   :  { %v7441_v58 = vpop.f32.mrf.mxu1 }
 0x5f3   :  { %v3159_v8 = vpop.f32.mrf.mxu2 }
 0x5f4   :  { %v7436_v61 = vmul.f32 %v3159_v8, %v8231_v49  ;;  %3385 = vmatmul.f32.gmra.mxu0 %v3265_v3  ;;  %3492 = vmatmul.f32.gmra.mxu3 %v3266_v32  ;;  %v8238_v8 = vld [vmem:[#allocation119_spill] sm:$0xff] }
 0x5f5   :  { %3599 = vmatmul.f32.gmra.mxu1 %v3267_v16  ;;  %v3271_v49 = vmul.f32 %v8238_v8, %v8237_v37  ;;  %v8239_v32 = vld [vmem:[#allocation147_spill] sm:$0xff]  ;;  %v8242_v37 = vld [vmem:[#allocation126_spill] sm:$0xff] }
 0x5f6   :  { %v3275_v8 = vmul.f32 %v7132_v29, %v8242_v37 }
 0x5f7   :  { %v3445_v60 = vpop.f32.mrf.mxu3 }
 0x5f8   :  { %v7438_v14 = vadd.f32 %v3445_v60, %v3338_v43  ;;  %3667 = vmatmul.f32.gmra.mxu2 %v8232_v39 }
 0x5f9   :  { %v3341_v47 = vpop.f32.mrf.mxu0 }
 0x5fb   :  { %v3162_v3 = vpop.f32.mrf.mxu2 }
 0x5fc   :  { %v7450_v16 = vmul.f32 %v3162_v3, %v8239_v32  ;;  %3388 = vmatmul.f32.gmra.mxu0 %v3269_v24  ;;  %3495 = vmatmul.f32.gmra.mxu3 %v3270_v44  ;;  %v7461_v3 = vpop.f32.mrf.mxu1  ;;  %v8243_v44 = vld [vmem:[#allocation155_spill] sm:$0xff]  ;;  %v8244_v32 = vld [vmem:[#allocation129_spill] sm:$0xff] }
 0x5fd   :  { %3602 = vmatmul.f32.gmra.mxu1 %v3271_v49  ;;  %v3277_v62 = vmul.f32 %v7153_v31, %v8244_v32 }
 0x5ff   :  { %v3448_v43 = vpop.f32.mrf.mxu3 }
 0x600   :  { %v7452_v60 = vadd.f32 %v3448_v43, %v3341_v47  ;;  %3670 = vmatmul.f32.gmra.mxu2 %v7139_v34  ;;  %v8245_v43 = vld [vmem:[#allocation154_spill] sm:$0xff] }
 0x601   :  { %v3344_v39 = vpop.f32.mrf.mxu0  ;;  %v3278_v29 = vmul.f32 %v7162_v11, %v8245_v43  ;;  %v8251_v43 = vld [vmem:[#allocation162_spill] sm:$0xff] }
 0x603   :  { %v3165_v24 = vpop.f32.mrf.mxu2 }
 0x604   :  { %v7464_v49 = vmul.f32 %v3165_v24, %v8243_v44  ;;  %3391 = vmatmul.f32.gmra.mxu0 %v3273_v42  ;;  %3498 = vmatmul.f32.gmra.mxu3 %v3274_v30  ;;  %v8247_v24 = vld [vmem:[#allocation159_spill] sm:$0xff]  ;;  %v8249_v44 = vld [vmem:[#allocation158_spill] sm:$0xff] }
 0x605   :  { %3605 = vmatmul.f32.gmra.mxu1 %v3275_v8  ;;  %v8248_v8 = vld [vmem:[#allocation156_spill] sm:$0xff]  ;;  %v3282_v17 = vmul.f32 %v7204_v6, %v8249_v44 }
 0x606   :  { %v3281_v11 = vmul.f32 %v7168_v56, %v8248_v8 }
 0x607   :  { %v3451_v34 = vpop.f32.mrf.mxu3 }
 0x608   :  { %v7466_v47 = vadd.f32 %v3451_v34, %v3344_v39  ;;  %3673 = vmatmul.f32.gmra.mxu2 %v7160_v35  ;;  %v7478_v39 = vpop.f32.mrf.mxu1  ;;  %v8250_v34 = vld [vmem:[#allocation157_spill] sm:$0xff] }
 0x609   :  { %v3347_v5 = vpop.f32.mrf.mxu0  ;;  %v3283_v32 = vmul.f32 %v7176_v57, %v8250_v34  ;;  %v8256_v34 = vld [vmem:[#allocation61_spill] sm:$0xff] }
 0x60b   :  { %v3168_v37 = vpop.f32.mrf.mxu2 }
 0x60c   :  { %v7476_v42 = vmul.f32 %v3168_v37, %v8247_v24  ;;  %3394 = vmatmul.f32.gmra.mxu0 %v3277_v62  ;;  %3501 = vmatmul.f32.gmra.mxu3 %v3278_v29  ;;  %v8253_v37 = vld [vmem:[#allocation163_spill] sm:$0xff]  ;;  %v8254_v24 = vld [vmem:[#allocation161_spill] sm:$0xff] }
 0x60d   :  { %3608 = vmatmul.f32.gmra.mxu1 %v3279_v28  ;;  %v8252_v28 = vld [vmem:[#allocation160_spill] sm:$0xff]  ;;  %v3286_v57 = vmul.f32 %v7243_v20, %v8253_v37  ;;  %v3289_v20 = vmul.f32 %v7252_v7, %v8256_v34  ;;  %v8261_v37 = vld [vmem:[#allocation169_spill] sm:$0xff] }
 0x60e   :  { %v3285_v6 = vmul.f32 %v7217_v40, %v8252_v28  ;;  %v8259_v28 = vld [vmem:[#allocation68_spill] sm:$0xff] }
 0x60f   :  { %v3454_v35 = vpop.f32.mrf.mxu3 }
 0x610   :  { %v7480_v30 = vadd.f32 %v3454_v35, %v3347_v5  ;;  %3676 = vmatmul.f32.gmra.mxu2 %v7190_v18  ;;  %v7492_v5 = vpop.f32.mrf.mxu1  ;;  %v3287_v35 = vmul.f32 %v7221_v19, %v8254_v24 }
 0x611   :  { %v3350_v31 = vpop.f32.mrf.mxu0 }
 0x613   :  { %v3171_v62 = vpop.f32.mrf.mxu2 }
 0x614   :  { %v7490_v29 = vmul.f32 %v3171_v62, %v8251_v43  ;;  %3397 = vmatmul.f32.gmra.mxu0 %v3281_v11  ;;  %3504 = vmatmul.f32.gmra.mxu3 %v3282_v17  ;;  %v8255_v11 = vld [vmem:[#allocation164_spill] sm:$0xff]  ;;  %v8258_v62 = vld [vmem:[#allocation165_spill] sm:$0xff] }
 0x615   :  { %3611 = vmatmul.f32.gmra.mxu1 %v3283_v32  ;;  %v8257_v32 = vld [vmem:[#allocation166_spill] sm:$0xff]  ;;  %v3291_v43 = vmul.f32 %v7256_v41, %v8258_v62  ;;  %v8267_v62 = vld [vmem:[#allocation172_spill] sm:$0xff] }
 0x616   :  { %v3290_v19 = vmul.f32 %v7270_v1, %v8257_v32  ;;  %v8260_v1 = vld [vmem:[#allocation167_spill] sm:$0xff]  ;;  %v8266_v32 = vld [vmem:[#allocation170_spill] sm:$0xff] }
 0x617   :  { %v3457_v18 = vpop.f32.mrf.mxu3  ;;  %v3293_v41 = vmul.f32 %v7277_v53, %v8260_v1 }
 0x618   :  { %v7494_v45 = vadd.f32 %v3457_v18, %v3350_v31  ;;  %3679 = vmatmul.f32.gmra.mxu2 %v7229_v54  ;;  %v3564_v54 = vpop.f32.mrf.mxu1 }
 0x619   :  { %v3353_v56 = vpop.f32.mrf.mxu0 }
 0x61b   :  { %v3174_v8 = vpop.f32.mrf.mxu2 }
 0x61c   :  { %v7504_v44 = vmul.f32 %v3174_v8, %v8255_v11  ;;  %3400 = vmatmul.f32.gmra.mxu0 %v3285_v6  ;;  %3507 = vmatmul.f32.gmra.mxu3 %v3286_v57  ;;  %v8262_v57 = vld [vmem:[#allocation53_spill] sm:$0xff] }
 0x61d   :  { %3614 = vmatmul.f32.gmra.mxu1 %v3287_v35  ;;  %v3294_v24 = vmul.f32 %v8262_v57, %v8261_v37  ;;  %v8263_v35 = vld [vmem:[#allocation168_spill] sm:$0xff]  ;;  %v8264_v8 = vld [vmem:[#allocation57_spill] sm:$0xff] }
 0x61e   :  { %v3295_v11 = vmul.f32 %v8264_v8, %v8263_v35  ;;  %v8272_v8 = vld [vmem:[#allocation174_spill] sm:$0xff] }
 0x61f   :  { %v3460_v31 = vpop.f32.mrf.mxu3 }
 0x620   :  { %v7506_v17 = vadd.f32 %v3460_v31, %v3353_v56  ;;  %3682 = vmatmul.f32.gmra.mxu2 %v7262_v26  ;;  %v7522_v26 = vadd.f32 %v7441_v58, %v7438_v14  ;;  %v3567_v31 = vpop.f32.mrf.mxu1 }
 0x621   :  { %v7509_v40 = vpop.f32.mrf.mxu0 }
 0x623   :  { %v3177_v18 = vpop.f32.mrf.mxu2 }
 0x624   :  { %v7518_v6 = vmul.f32 %v3177_v18, %v8259_v28  ;;  %3403 = vmatmul.f32.gmra.mxu0 %v3289_v20  ;;  %3510 = vmatmul.f32.gmra.mxu3 %v3290_v19  ;;  %v8265_v20 = vld [vmem:[#allocation173_spill] sm:$0xff]  ;;  %v3297_v19 = vmul.f32 %v7328_v22, %v8266_v32  ;;  %v8268_v18 = vld [vmem:[#allocation171_spill] sm:$0xff]  ;;  %v8275_v32 = vld [vmem:[#allocation180_spill] sm:$0xff] }
 0x625   :  { %3617 = vmatmul.f32.gmra.mxu1 %v3291_v43  ;;  %v3298_v43 = vmul.f32 %v7345_v50, %v8267_v62  ;;  %v3299_v28 = vmul.f32 %v7332_v15, %v8268_v18  ;;  %v8270_v15 = vld [vmem:[#allocation75_spill] sm:$0xff] }
 0x626   :  { %v3301_v57 = vmul.f32 %v7351_v9, %v8270_v15  ;;  %v8276_v62 = vld [vmem:[#allocation179_spill] sm:$0xff]  ;;  %v8280_v15 = vld [vmem:[#allocation182_spill] sm:$0xff] }
 0x627   :  { %v7524_v56 = vpop.f32.mrf.mxu3 }
 0x628   :  { %3685 = vmatmul.f32.gmra.mxu2 %v7301_v27  ;;  %v7540_v27 = vadd.f32 %v7461_v3, %v7452_v60  ;;  %v7554_v60 = vpop.f32.mrf.mxu1 }
 0x629   :  { %v7527_v7 = vpop.f32.mrf.mxu0 }
 0x62b   :  { %v3180_v34 = vpop.f32.mrf.mxu2 }
 0x62c   :  { %v7536_v14 = vmul.f32 %v3180_v34, %v8265_v20  ;;  %3406 = vmatmul.f32.gmra.mxu0 %v3293_v41  ;;  %3513 = vmatmul.f32.gmra.mxu3 %v3294_v24  ;;  %v8269_v41 = vld [vmem:[#allocation176_spill] sm:$0xff]  ;;  %v8271_v24 = vld [vmem:[#allocation175_spill] sm:$0xff]  ;;  %v8273_v20 = vld [vmem:[#allocation177_spill] sm:$0xff] }
 0x62d   :  { %3620 = vmatmul.f32.gmra.mxu1 %v3295_v11  ;;  %v3302_v35 = vmul.f32 %v7360_v52, %v8271_v24  ;;  %v3303_v11 = vmul.f32 %v7355_v55, %v8272_v8  ;;  %v8274_v55 = vld [vmem:[#allocation178_spill] sm:$0xff]  ;;  %v8282_v8 = vld [vmem:[#allocation185_spill] sm:$0xff] }
 0x62f   :  { %v7542_v58 = vpop.f32.mrf.mxu3 }
 0x630   :  { %3688 = vmatmul.f32.gmra.mxu2 %v7337_v10  ;;  %v7558_v10 = vadd.f32 %v7478_v39, %v7466_v47  ;;  %v7578_v39 = vpop.f32.mrf.mxu1 }
 0x631   :  { %v3362_v53 = vpop.f32.mrf.mxu0 }
 0x633   :  { %v3183_v1 = vpop.f32.mrf.mxu2 }
 0x634   :  { %v7552_v37 = vmul.f32 %v3183_v1, %v8269_v41  ;;  %3409 = vmatmul.f32.gmra.mxu0 %v3297_v19  ;;  %3516 = vmatmul.f32.gmra.mxu3 %v3298_v43  ;;  %v3306_v19 = vmul.f32 %v7377_v59, %v8275_v32  ;;  %v3307_v43 = vmul.f32 %v7370_v38, %v8276_v62  ;;  %v8278_v59 = vld [vmem:[#allocation181_spill] sm:$0xff]  ;;  %v8279_v41 = vld [vmem:[#allocation183_spill] sm:$0xff]  ;;  %v8285_v32 = vld [vmem:[#allocation188_spill] sm:$0xff] }
 0x635   :  { %3623 = vmatmul.f32.gmra.mxu1 %v3299_v28  ;;  %v3309_v38 = vmul.f32 %v7381_v21, %v8278_v59  ;;  %v8288_v62 = vld [vmem:[#allocation190_spill] sm:$0xff]  ;;  %v8290_v59 = vld [vmem:[#allocation101_spill] sm:$0xff] }
 0x637   :  { %v3469_v22 = vpop.f32.mrf.mxu3 }
 0x638   :  { %v7560_v3 = vadd.f32 %v3469_v22, %v3362_v53  ;;  %3691 = vmatmul.f32.gmra.mxu2 %v7358_v33  ;;  %v7576_v33 = vadd.f32 %v7492_v5, %v7480_v30  ;;  %v3305_v53 = vmul.f32 %v7364_v12, %v8274_v55  ;;  %v8277_v30 = vld [vmem:[#allocation82_spill] sm:$0xff]  ;;  %v3576_v12 = vpop.f32.mrf.mxu1  ;;  %v3310_v22 = vmul.f32 %v7394_v63, %v8279_v41 }
 0x639   :  { %v7563_v50 = vpop.f32.mrf.mxu0  ;;  %v3313_v63 = vmul.f32 %v7397_v46, %v8282_v8 }
 0x63b   :  { %v3186_v34 = vpop.f32.mrf.mxu2 }
 0x63c   :  { %v7572_v47 = vmul.f32 %v3186_v34, %v8273_v20  ;;  %3412 = vmatmul.f32.gmra.mxu0 %v3301_v57  ;;  %3519 = vmatmul.f32.gmra.mxu3 %v3302_v35  ;;  %v3311_v57 = vmul.f32 %v7389_v48, %v8280_v15  ;;  %v8281_v35 = vld [vmem:[#allocation184_spill] sm:$0xff]  ;;  %v8284_v34 = vld [vmem:[#allocation186_spill] sm:$0xff]  ;;  %v3577_v15 = vadd.f32 %v3576_v12, %v7560_v3 }
 0x63d   :  { %3626 = vmatmul.f32.gmra.mxu1 %v3303_v11  ;;  %v8283_v11 = vld [vmem:[#allocation187_spill] sm:$0xff]  ;;  %v3315_v20 = vmul.f32 %v7408_v0, %v8284_v34 }
 0x63e   :  { %v3314_v48 = vmul.f32 %v7410_v4, %v8283_v11 }
 0x63f   :  { %v7580_v9 = vpop.f32.mrf.mxu3 }
 0x640   :  { %3694 = vmatmul.f32.gmra.mxu2 %v7375_v23  ;;  %v7595_v23 = vadd.f32 %v3564_v54, %v7494_v45  ;;  %v7623_v55 = vpop.f32.mrf.mxu1 }
 0x641   :  { %v7583_v52 = vpop.f32.mrf.mxu0 }
 0x643   :  { %v3189_v18 = vpop.f32.mrf.mxu2 }
 0x644   :  { %v7592_v5 = vmul.f32 %v3189_v18, %v8277_v30  ;;  %3415 = vmatmul.f32.gmra.mxu0 %v3305_v53  ;;  %3522 = vmatmul.f32.gmra.mxu3 %v3306_v19  ;;  %v8287_v19 = vld [vmem:[#allocation191_spill] sm:$0xff] }
 0x645   :  { %3629 = vmatmul.f32.gmra.mxu1 %v3307_v43  ;;  %v3318_v0 = vmul.f32 %v7426_v51, %v8287_v19  ;;  %v8289_v43 = vld [vmem:[#allocation121_spill] sm:$0xff] }
 0x646   :  { %v3319_v18 = vmul.f32 %v8289_v43, %v8288_v62 }
 0x647   :  { %v7597_v28 = vpop.f32.mrf.mxu3 }
 0x648   :  { %3697 = vmatmul.f32.gmra.mxu2 %v7392_v25  ;;  %v3568_v25 = vadd.f32 %v3567_v31, %v7506_v17  ;;  %v8286_v31 = vld [vmem:[#allocation189_spill] sm:$0xff]  ;;  %v7642_v41 = vpop.f32.mrf.mxu1 }
 0x649   :  { %v7600_v1 = vpop.f32.mrf.mxu0  ;;  %v3317_v4 = vmul.f32 %v7413_v13, %v8286_v31 }
 0x64b   :  { %v3192_v24 = vpop.f32.mrf.mxu2 }
 0x64c   :  { %v7609_v45 = vmul.f32 %v3192_v24, %v8281_v35  ;;  %3418 = vmatmul.f32.gmra.mxu0 %v3309_v38  ;;  %3525 = vmatmul.f32.gmra.mxu3 %v3310_v22 }
 0x64d   :  { %3632 = vmatmul.f32.gmra.mxu1 %v3311_v57 }
 0x64f   :  { %v7612_v54 = vpop.f32.mrf.mxu3 }
 0x650   :  { %3700 = vmatmul.f32.gmra.mxu2 %v7406_v36  ;;  %v7653_v57 = vpop.f32.mrf.mxu1 }
 0x651   :  { %v7615_v21 = vpop.f32.mrf.mxu0 }
 0x653   :  { %v3195_v53 = vpop.f32.mrf.mxu2 }
 0x654   :  { %v7626_v17 = vmul.f32 %v3195_v53, %v8285_v32  ;;  %3421 = vmatmul.f32.gmra.mxu0 %v3313_v63  ;;  %3528 = vmatmul.f32.gmra.mxu3 %v3314_v48 }
 0x655   :  { %3635 = vmatmul.f32.gmra.mxu1 %v3315_v20 }
 0x657   :  { %v7628_v36 = vpop.f32.mrf.mxu3 }
 0x658   :  { %3703 = vmatmul.f32.gmra.mxu2 %v7422_v2 }
 0x659   :  { %v7631_v46 = vpop.f32.mrf.mxu0 }
 0x65b   :  { %v3198_v30 = vpop.f32.mrf.mxu2 }
 0x65c   :  { %v7640_v38 = vmul.f32 %v3198_v30, %v8290_v59  ;;  %3424 = vmatmul.f32.gmra.mxu0 %v3317_v4  ;;  %3531 = vmatmul.f32.gmra.mxu3 %v3318_v0 }
 0x65d   :  { %3638 = vmatmul.f32.gmra.mxu1 %v3319_v18 }
 0x65f   :  { %v7644_v2 = vpop.f32.mrf.mxu3 }
 0x660   :  { %3706 = vmatmul.f32.gmra.mxu2 %v7436_v61 }
 0x661   :  { %v7647_v13 = vpop.f32.mrf.mxu0 }
 0x663   :  { %v3659_v22 = vpop.f32.mrf.mxu2 }
 0x664   :  { %v7650_v51 = vadd.f32 %v3659_v22, %v7522_v26  ;;  %v7666_v26 = vpop.f32.mrf.mxu1 }
 0x667   :  { %v7655_v24 = vpop.f32.mrf.mxu3 }
 0x668   :  { %3709 = vmatmul.f32.gmra.mxu2 %v7450_v16 }
 0x669   :  { %v7658_v35 = vpop.f32.mrf.mxu0 }
 0x66b   :  { %v3662_v8 = vpop.f32.mrf.mxu2 }
 0x66c   :  { %v7661_v63 = vadd.f32 %v3662_v8, %v7540_v27  ;;  %v7672_v20 = vpop.f32.mrf.mxu1 }
 0x66f   :  { %v7663_v61 = vpop.f32.mrf.mxu3 }
 0x670   :  { %3712 = vmatmul.f32.gmra.mxu2 %v7464_v49 }
 0x671   :  { %v3386_v11 = vpop.f32.mrf.mxu0 }
 0x673   :  { %v3665_v3 = vpop.f32.mrf.mxu2 }
 0x674   :  { %v7669_v12 = vadd.f32 %v3665_v3, %v7558_v10  ;;  %v7681_v19 = vpop.f32.mrf.mxu1 }
 0x677   :  { %v3493_v48 = vpop.f32.mrf.mxu3 }
 0x678   :  { %v3494_v34 = vadd.f32 %v3493_v48, %v3386_v11  ;;  %3715 = vmatmul.f32.gmra.mxu2 %v7476_v42 }
 0x679   :  { %v3389_v16 = vpop.f32.mrf.mxu0 }
 0x67b   :  { %v3668_v27 = vpop.f32.mrf.mxu2 }
 0x67c   :  { %v7675_v53 = vadd.f32 %v3668_v27, %v7576_v33  ;;  %v3464_v33 = vadd.f32 %v7524_v56, %v7509_v40  ;;  %v3597_v30 = vpop.f32.mrf.mxu1 }
 0x67f   :  { %v3496_v32 = vpop.f32.mrf.mxu3 }
 0x680   :  { %v3497_v49 = vadd.f32 %v3496_v32, %v3389_v16  ;;  %3718 = vmatmul.f32.gmra.mxu2 %v7490_v29 }
 0x681   :  { %v3392_v31 = vpop.f32.mrf.mxu0 }
 0x683   :  { %v3671_v4 = vpop.f32.mrf.mxu2 }
 0x684   :  { %v7679_v10 = vadd.f32 %v3671_v4, %v7595_v23  ;;  %v3571_v23 = vadd.f32 %v7554_v60, %v3464_v33  ;;  %v3600_v48 = vpop.f32.mrf.mxu1 }
 0x687   :  { %v3499_v0 = vpop.f32.mrf.mxu3 }
 0x688   :  { %v3500_v42 = vadd.f32 %v3499_v0, %v3392_v31  ;;  %3721 = vmatmul.f32.gmra.mxu2 %v7504_v44  ;;  %v3467_v44 = vadd.f32 %v7542_v58, %v7527_v7  ;;  %v3601_v0 = vadd.f32 %v3600_v48, %v3494_v34 }
 0x689   :  { %v3395_v62 = vpop.f32.mrf.mxu0 }
 0x68a   :  { %v3574_v40 = vadd.f32 %v7578_v39, %v3467_v44 }
 0x68b   :  { %v3674_v43 = vpop.f32.mrf.mxu2 }
 0x68c   :  { %v7684_v18 = vadd.f32 %v3674_v43, %v3568_v25  ;;  %v3603_v32 = vpop.f32.mrf.mxu1 }
 0x68d   :  { %v3604_v39 = vadd.f32 %v3603_v32, %v3497_v49 }
 0x68f   :  { %v3502_v29 = vpop.f32.mrf.mxu3 }
 0x690   :  { %v3503_v59 = vadd.f32 %v3502_v29, %v3395_v62  ;;  %3724 = vmatmul.f32.gmra.mxu2 %v7518_v6 }
 0x691   :  { %v3398_v22 = vpop.f32.mrf.mxu0 }
 0x693   :  { %v3677_v8 = vpop.f32.mrf.mxu2 }
 0x694   :  { %v7690_v11 = vadd.f32 %v3677_v8, %v3571_v23  ;;  %v3606_v43 = vpop.f32.mrf.mxu1 }
 0x695   :  { %v3607_v29 = vadd.f32 %v3606_v43, %v3500_v42 }
 0x697   :  { %v3505_v3 = vpop.f32.mrf.mxu3 }
 0x698   :  { %v3506_v25 = vadd.f32 %v3505_v3, %v3398_v22  ;;  %3727 = vmatmul.f32.gmra.mxu2 %v7536_v14 }
 0x699   :  { %v3401_v6 = vpop.f32.mrf.mxu0 }
 0x69b   :  { %v3680_v56 = vpop.f32.mrf.mxu2 }
 0x69c   :  { %v7696_v16 = vadd.f32 %v3680_v56, %v3574_v40  ;;  %v3609_v23 = vpop.f32.mrf.mxu1 }
 0x69d   :  { %v3610_v22 = vadd.f32 %v3609_v23, %v3503_v59 }
 0x69f   :  { %v3508_v27 = vpop.f32.mrf.mxu3 }
 0x6a0   :  { %v3509_v60 = vadd.f32 %v3508_v27, %v3401_v6  ;;  %3730 = vmatmul.f32.gmra.mxu2 %v7552_v37  ;;  %v3479_v6 = vadd.f32 %v7612_v54, %v7600_v1 }
 0x6a1   :  { %v3404_v7 = vpop.f32.mrf.mxu0 }
 0x6a3   :  { %v3683_v31 = vpop.f32.mrf.mxu2 }
 0x6a4   :  { %v3684_v4 = vadd.f32 %v3683_v31, %v3577_v15  ;;  %v3612_v15 = vpop.f32.mrf.mxu1 }
 0x6a5   :  { %v3613_v8 = vadd.f32 %v3612_v15, %v3506_v25 }
 0x6a7   :  { %v3511_v58 = vpop.f32.mrf.mxu3 }
 0x6a8   :  { %v3512_v62 = vadd.f32 %v3511_v58, %v3404_v7  ;;  %3733 = vmatmul.f32.gmra.mxu2 %v7572_v47 }
 0x6a9   :  { %v3407_v27 = vpop.f32.mrf.mxu0 }
 0x6ab   :  { %v3686_v14 = vpop.f32.mrf.mxu2 }
 0x6ac   :  { %v3615_v47 = vpop.f32.mrf.mxu1 }
 0x6ad   :  { %v3616_v3 = vadd.f32 %v3615_v47, %v3509_v60 }
 0x6b0   :  { %3736 = vmatmul.f32.gmra.mxu2 %v7592_v5  ;;  %v3491_v5 = vadd.f32 %v7663_v61, %v7658_v35 }
 0x6b1   :  { %v3410_v31 = vpop.f32.mrf.mxu0 }
 0x6b2   :  { %v3598_v59 = vadd.f32 %v3597_v30, %v3491_v5 }
 0x6b3   :  { %v3689_v33 = vpop.f32.mrf.mxu2 }
 0x6b4   :  { %v3618_v48 = vpop.f32.mrf.mxu1 }
 0x6b5   :  { %v3619_v42 = vadd.f32 %v3618_v48, %v3512_v62 }
 0x6b8   :  { %3739 = vmatmul.f32.gmra.mxu2 %v7609_v45  ;;  %v3488_v45 = vadd.f32 %v7655_v24, %v7647_v13  ;;  %v3476_v13 = vadd.f32 %v7597_v28, %v7583_v52 }
 0x6b9   :  { %v3413_v58 = vpop.f32.mrf.mxu0 }
 0x6ba   :  { %v3595_v25 = vadd.f32 %v7681_v19, %v3488_v45  ;;  %v3583_v1 = vadd.f32 %v7642_v41, %v3476_v13 }
 0x6bb   :  { %v3692_v37 = vpop.f32.mrf.mxu2 }
 0x6bc   :  { %v3690_v28 = vadd.f32 %v3689_v33, %v3583_v1  ;;  %v3621_v32 = vpop.f32.mrf.mxu1 }
 0x6c0   :  { %3742 = vmatmul.f32.gmra.mxu2 %v7626_v17  ;;  %v3485_v17 = vadd.f32 %v7644_v2, %v7631_v46 }
 0x6c1   :  { %v3416_v43 = vpop.f32.mrf.mxu0 }
 0x6c2   :  { %v3592_v35 = vadd.f32 %v7672_v20, %v3485_v17 }
 0x6c3   :  { %v3695_v34 = vpop.f32.mrf.mxu2 }
 0x6c8   :  { %3745 = vmatmul.f32.gmra.mxu2 %v7640_v38  ;;  %v3482_v38 = vadd.f32 %v7628_v36, %v7615_v21  ;;  %v3473_v21 = vadd.f32 %v7580_v9, %v7563_v50  ;;  %v3586_v36 = vadd.f32 %v7653_v57, %v3479_v6 }
 0x6c9   :  { %v3419_v23 = vpop.f32.mrf.mxu0 }
 0x6ca   :  { %v3589_v46 = vadd.f32 %v7666_v26, %v3482_v38  ;;  %v3693_v54 = vadd.f32 %v3692_v37, %v3586_v36  ;;  %v3580_v52 = vadd.f32 %v7623_v55, %v3473_v21 }
 0x6cb   :  { %v3698_v44 = vpop.f32.mrf.mxu2 }
 0x6cc   :  { %v3699_v2 = vadd.f32 %v3698_v44, %v3592_v35  ;;  %v3696_v24 = vadd.f32 %v3695_v34, %v3589_v46  ;;  %v3687_v26 = vadd.f32 %v3686_v14, %v3580_v52 }
 0x6d1   :  { %v3422_v34 = vpop.f32.mrf.mxu0 }
 0x6d3   :  { %v3701_v49 = vpop.f32.mrf.mxu2 }
 0x6d4   :  { %v3702_v61 = vadd.f32 %v3701_v49, %v3595_v25 }
 0x6d9   :  { %v3425_v49 = vpop.f32.mrf.mxu0 }
 0x6db   :  { %v3704_v40 = vpop.f32.mrf.mxu2 }
 0x6dc   :  { %v3705_v56 = vadd.f32 %v3704_v40, %v3598_v59 }
 0x6de   :  { %3749 = vmatpush.msra.mxu0 %v3705_v56 }
 0x6e0   :  { %3750 = vmatpush.msra.mxu0 %v3702_v61 }
 0x6e2   :  { %3751 = vmatpush.msra.mxu0 %v3699_v2 }
 0x6e3   :  { %v3707_v19 = vpop.f32.mrf.mxu2 }
 0x6e4   :  { %v7723_v20 = vadd.f32 %v3707_v19, %v3601_v0  ;;  %3752 = vmatpush.msra.mxu0 %v3696_v24 }
 0x6e6   :  { %3753 = vmatpush.msra.mxu0 %v3693_v54 }
 0x6e8   :  { %3754 = vmatpush.msra.mxu0 %v3690_v28  ;;  %v8291_v28 = vld [vmem:[#allocation109_spill] sm:$0xff] }
 0x6ea   :  { %3755 = vmatpush.msra.mxu0 %v3687_v26  ;;  %v8292_v26 = vld [vmem:[#allocation118_spill] sm:$0xff] }
 0x6eb   :  { %v3710_v30 = vpop.f32.mrf.mxu2 }
 0x6ec   :  { %v7726_v50 = vadd.f32 %v3710_v30, %v3604_v39  ;;  %3756 = vmatpush.msra.mxu0 %v3684_v4 }
 0x6ee   :  { %3757 = vmatpush.msra.mxu0 %v7696_v16 }
 0x6f0   :  { %3758 = vmatpush.msra.mxu0 %v7690_v11 }
 0x6f2   :  { %3759 = vmatpush.msra.mxu0 %v7684_v18  ;;  %v3514_v18 = vpop.f32.mrf.mxu3 }
 0x6f3   :  { %v3713_v9 = vpop.f32.mrf.mxu2  ;;  %v3515_v2 = vadd.f32 %v3514_v18, %v3407_v27 }
 0x6f4   :  { %v7731_v41 = vadd.f32 %v3713_v9, %v3607_v29  ;;  %3760 = vmatpush.msra.mxu0 %v7679_v10 }
 0x6f5   :  { %v3622_v1 = vadd.f32 %v3621_v32, %v3515_v2 }
 0x6f6   :  { %3761 = vmatpush.msra.mxu0 %v7675_v53 }
 0x6f8   :  { %3762 = vmatpush.msra.mxu0 %v7669_v12 }
 0x6fa   :  { %3763 = vmatpush.msra.mxu0 %v7661_v63  ;;  %v3517_v53 = vpop.f32.mrf.mxu3  ;;  %v3624_v63 = vpop.f32.mrf.mxu1 }
 0x6fb   :  { %v3716_v55 = vpop.f32.mrf.mxu2  ;;  %v3518_v61 = vadd.f32 %v3517_v53, %v3410_v31 }
 0x6fc   :  { %v7737_v57 = vadd.f32 %v3716_v55, %v3610_v22  ;;  %3764 = vmatpush.msra.mxu0 %v7650_v51 }
 0x6fd   :  { %4127 = vmatmul.lmr.bf16.vlgmr.msra.gmra.2.mxu0  ;;  %v3625_v24 = vadd.f32 %v3624_v63, %v3518_v61 }
 0x702   :  { %v3520_v0 = vpop.f32.mrf.mxu3  ;;  %v3627_v62 = vpop.f32.mrf.mxu1 }
 0x703   :  { %v3719_v11 = vpop.f32.mrf.mxu2  ;;  %v3521_v56 = vadd.f32 %v3520_v0, %v3413_v58 }
 0x704   :  { %v7740_v16 = vadd.f32 %v3719_v11, %v3613_v8 }
 0x705   :  { %4128 = vmatmul.lmr.bf16.gmra.2.mxu0  ;;  %v3628_v21 = vadd.f32 %v3627_v62, %v3521_v56 }
 0x70a   :  { %v3523_v14 = vpop.f32.mrf.mxu3  ;;  %v3630_v39 = vpop.f32.mrf.mxu1 }
 0x70b   :  { %v3722_v60 = vpop.f32.mrf.mxu2  ;;  %v3524_v40 = vadd.f32 %v3523_v14, %v3416_v43 }
 0x70c   :  { %v3723_v10 = vadd.f32 %v3722_v60, %v3616_v3 }
 0x70d   :  { %v3631_v13 = vadd.f32 %v3630_v39, %v3524_v40 }
 0x712   :  { %v3526_v29 = vpop.f32.mrf.mxu3  ;;  %v3633_v22 = vpop.f32.mrf.mxu1 }
 0x713   :  { %v3725_v12 = vpop.f32.mrf.mxu2  ;;  %v3527_v45 = vadd.f32 %v3526_v29, %v3419_v23 }
 0x714   :  { %v3726_v4 = vadd.f32 %v3725_v12, %v3619_v42 }
 0x715   :  { %v3634_v6 = vadd.f32 %v3633_v22, %v3527_v45 }
 0x71a   :  { %v3529_v15 = vpop.f32.mrf.mxu3  ;;  %v3636_v47 = vpop.f32.mrf.mxu1 }
 0x71b   :  { %v3728_v7 = vpop.f32.mrf.mxu2  ;;  %v3530_v5 = vadd.f32 %v3529_v15, %v3422_v34 }
 0x71c   :  { %v3729_v52 = vadd.f32 %v3728_v7, %v3622_v1 }
 0x71d   :  { %v3637_v38 = vadd.f32 %v3636_v47, %v3530_v5 }
 0x722   :  { %v3532_v44 = vpop.f32.mrf.mxu3  ;;  %v3639_v42 = vpop.f32.mrf.mxu1 }
 0x723   :  { %v3731_v51 = vpop.f32.mrf.mxu2  ;;  %v3533_v48 = vadd.f32 %v3532_v44, %v3425_v49 }
 0x724   :  { %v3732_v54 = vadd.f32 %v3731_v51, %v3625_v24 }
 0x725   :  { %v3640_v17 = vadd.f32 %v3639_v42, %v3533_v48 }
 0x72b   :  { %v3734_v33 = vpop.f32.mrf.mxu2 }
 0x72c   :  { %v3735_v19 = vadd.f32 %v3734_v33, %v3628_v21 }
 0x733   :  { %v3737_v37 = vpop.f32.mrf.mxu2 }
 0x734   :  { %v3738_v36 = vadd.f32 %v3737_v37, %v3631_v13 }
 0x73b   :  { %v3740_v8 = vpop.f32.mrf.mxu2 }
 0x73c   :  { %v3741_v46 = vadd.f32 %v3740_v8, %v3634_v6 }
 0x743   :  { %v3743_v3 = vpop.f32.mrf.mxu2 }
 0x744   :  { %v3744_v35 = vadd.f32 %v3743_v3, %v3637_v38 }
 0x74b   :  { %v3746_v59 = vpop.f32.mrf.mxu2 }
 0x74c   :  { %v3747_v25 = vadd.f32 %v3746_v59, %v3640_v17 }
 0x74e   :  { %3774 = vmatpush.msrb.mxu3 %v3747_v25 }
 0x750   :  { %3775 = vmatpush.msrb.mxu3 %v3744_v35 }
 0x752   :  { %3776 = vmatpush.msrb.mxu3 %v3741_v46 }
 0x754   :  { %3777 = vmatpush.msrb.mxu3 %v3738_v36 }
 0x756   :  { %3778 = vmatpush.msrb.mxu3 %v3735_v19 }
 0x758   :  { %3779 = vmatpush.msrb.mxu3 %v3732_v54 }
 0x75a   :  { %3780 = vmatpush.msrb.mxu3 %v3729_v52 }
 0x75c   :  { %3781 = vmatpush.msrb.mxu3 %v3726_v4 }
 0x75e   :  { %3782 = vmatpush.msrb.mxu3 %v3723_v10 }
 0x760   :  { %3783 = vmatpush.msrb.mxu3 %v7740_v16 }
 0x762   :  { %3784 = vmatpush.msrb.mxu3 %v7737_v57 }
 0x764   :  { %3785 = vmatpush.msrb.mxu3 %v7731_v41 }
 0x766   :  { %3786 = vmatpush.msrb.mxu3 %v7726_v50 }
 0x768   :  { %3787 = vmatpush.msrb.mxu3 %v7723_v20 }
 0x769   :  { %4103 = vmatmul.msk.f32.vlgmr.msrb.gmra.mxu3 %vm1955_vm5, %v8291_v28 }
 0x771   :  { %4104 = vmatmul.msk.f32.gmra.mxu3 %vm1955_vm5, %v8292_v26 }
 0x77a   :  { %v3766_v30 = vpop.f32.mrf.mxu0 }
 0x782   :  { %v3769_v57 = vpop.f32.mrf.mxu0 }
 0x7ec   :  { %v3789_v9 = vpop.f32.mrf.mxu3 }
 0x7ed   :  { %v3790_v55 = vadd.f32 %v3789_v9, %v3766_v30 }
 0x7ef   :  { %3795 = vst.msk [vmem:[%s7772_s13] sm:$0xff] %vm1312_vm2, %v3790_v55 }
 0x7f4   :  { %v3792_v41 = vpop.f32.mrf.mxu3 }
 0x7f5   :  { %v3793_v11 = vadd.f32 %v3792_v41, %v3769_v57 }
 0x7f7   :  { %3796 = vst.msk [vmem:[%s7772_s13 + $0x8] sm:$0xff] %vm1312_vm2, %v3793_v11 }

</bundles_post_ra>
